<compile_context>
chip_gen: v7x
topology: tpu7x:2x2x1
jax: 0.10.0
libtpu: 0.0.40
codegen_flags: <defaults>
</compile_context>

<pallas_src>
import jax
import jax.numpy as jnp
from jax.experimental import pallas as pl
from jax.experimental.pallas import tpu as pltpu


def _head_kernel(x_ref, w1_ref, b1_ref, pool_ref, w2_ref, b2_ref, o_ref):
    # x_ref:    (Bt*HW, Cin_pad) bf16 — Bt images, channels-last, K padded to 128
    # w1_ref:   (Cin_pad, Cout)  bf16 — conv1x1 weight with BN folded in
    # b1_ref:   (1, Cout)        f32  — conv bias * bn_scale + bn_shift
    # pool_ref: (Bt, Bt*HW)      bf16 — block-diagonal 0/1 mean-pool matrix
    #                                   (the 1/HW divisor lives in w2_ref)
    # w2_ref:   (Cout, C_pad)    bf16 — (fc weight / HW), classes padded to 128
    # b2_ref:   (1, C_pad)       f32
    # o_ref:    (Bt, C_pad)      f32

    # 1x1 conv for all Bt images at once (single big MXU matmul, f32 acc).
    h = jnp.dot(x_ref[...], w1_ref[...], preferred_element_type=jnp.float32)
    # Folded bias/BN + ReLU.
    h = jnp.maximum(h + b1_ref[...], 0.0)                        # (Bt*HW, Cout)

    # AvgPool2d(7): per-image sum over the HW rows as a bf16 MXU matmul; the
    # 1/HW divisor was folded into w2 (in f32) at the wrapper.
    pooled = jnp.dot(pool_ref[...], h.astype(pool_ref.dtype),
                     preferred_element_type=jnp.float32)         # (Bt, Cout)

    # Linear head (bf16 operands, f32 accumulation), lane-dense padded output.
    out = jnp.dot(pooled.astype(w2_ref.dtype), w2_ref[...],
                  preferred_element_type=jnp.float32) + b2_ref[...]
    o_ref[...] = out.astype(o_ref.dtype)


def final_module_forward(x_nchw, params, *, batch_tile=32):
    """x_nchw: (N, Cin, 7, 7) float32.  Returns (N, num_classes) float32."""
    N, Cin, H, W = x_nchw.shape
    assert (H, W) == (7, 7), "AvgPool2d(7, stride=1) head requires a 7x7 map"
    HW = H * W

    # ---- fold BatchNorm (inference) + conv bias into the conv weight/bias ----
    w1 = params["conv_w"] * params["bn_scale"]                       # (Cin, Cout)
    b1 = params["conv_b"] * params["bn_scale"] + params["bn_shift"]  # (1, Cout)
    w2 = params["fc_w"]                                              # (Cout, classes)
    b2 = params["fc_b"]                                              # (1, classes)
    Cout = w1.shape[1]
    num_classes = w2.shape[1]

    # ---- pad classes to a 128-lane multiple; fold 1/HW into fc weight (f32) ----
    C_pad = ((num_classes + 127) // 128) * 128
    w2p = jnp.pad(w2 / float(HW), ((0, 0), (0, C_pad - num_classes)))
    b2p = jnp.pad(b2, ((0, 0), (0, C_pad - num_classes)))

    # ---- pad the contraction dim Cin to a 128-lane multiple (exact) ----
    Cin_pad = ((Cin + 127) // 128) * 128
    w1p = jnp.pad(w1, ((0, Cin_pad - Cin), (0, 0)))

    # ---- batch tiling: Bt images per grid step ----
    Bt = batch_tile
    # bf16 second-minor tile is 16 rows; HW=49 is odd, so Bt must be a
    # multiple of 16 to keep (Bt*HW, Cin_pad) blocks layout-clean.
    assert (Bt * HW) % 16 == 0, "batch_tile*HW must be a multiple of 16"
    Npad = ((N + Bt - 1) // Bt) * Bt

    # ---- bf16 FIRST, then NCHW -> flattened channels-last (half the relayout) ----
    x = x_nchw.astype(jnp.bfloat16)
    x = jnp.transpose(x, (0, 2, 3, 1)).reshape(N, HW, Cin)
    if Npad != N:
        x = jnp.pad(x, ((0, Npad - N), (0, 0), (0, 0)))
    if Cin_pad != Cin:
        x = jnp.pad(x, ((0, 0), (0, 0), (0, Cin_pad - Cin)))
    x = x.reshape(Npad * HW, Cin_pad)

    w1b = w1p.astype(jnp.bfloat16)
    w2b = w2p.astype(jnp.bfloat16)

    # Block-diagonal 0/1 pooling matrix (exact in bf16); divisor lives in w2b.
    row_owner = jnp.repeat(jnp.arange(Bt), HW)                       # (Bt*HW,)
    pool_mat = (jnp.arange(Bt)[:, None] == row_owner[None, :]
                ).astype(jnp.bfloat16)                               # (Bt, Bt*HW)

    grid = (Npad // Bt,)

    # Advisory cost estimate so XLA schedules the surrounding transpose/pad/cast
    # around the custom call sensibly.
    flops = (2 * Npad * HW * Cin_pad * Cout        # 1x1 conv
             + 2 * Npad * Bt * HW * Cout           # pooling matmul
             + 2 * Npad * Cout * C_pad)            # fc
    bytes_accessed = (Npad * HW * Cin_pad * 2                       # x (bf16)
                      + Cin_pad * Cout * 2 + Cout * 4               # w1 + b1
                      + Bt * Bt * HW * 2                            # pool matrix
                      + Cout * C_pad * 2 + C_pad * 4                # w2 + b2
                      + Npad * C_pad * 4)                           # output
    cost = pl.CostEstimate(flops=int(flops), transcendentals=0,
                           bytes_accessed=int(bytes_accessed))

    def _in_specs(single_buffer_consts):
        # Grid-invariant operands don't benefit from double-buffering.
        kw = dict(pipeline_mode=pl.Buffered(1)) if single_buffer_consts else {}
        return [
            pl.BlockSpec((Bt * HW, Cin_pad), lambda i: (i, 0)),      # x (batch tile)
            pl.BlockSpec((Cin_pad, Cout), lambda i: (0, 0), **kw),   # folded conv w
            pl.BlockSpec((1, Cout), lambda i: (0, 0), **kw),         # folded bias
            pl.BlockSpec((Bt, Bt * HW), lambda i: (0, 0), **kw),     # pooling matrix
            pl.BlockSpec((Cout, C_pad), lambda i: (0, 0), **kw),     # fc weight / HW
            pl.BlockSpec((1, C_pad), lambda i: (0, 0), **kw),        # fc bias
        ]

    def _run(single_buffer_consts):
        return pl.pallas_call(
            _head_kernel,
            out_shape=jax.ShapeDtypeStruct((Npad, C_pad), jnp.float32),
            grid_spec=pltpu.PrefetchScalarGridSpec(
                num_scalar_prefetch=0,
                grid=grid,
                in_specs=_in_specs(single_buffer_consts),
                out_specs=pl.BlockSpec((Bt, C_pad), lambda i: (i, 0)),
            ),
            compiler_params=pltpu.CompilerParams(
                dimension_semantics=("parallel",),
                vmem_limit_bytes=48 * 1024 * 1024),
            cost_estimate=cost,
        )(x, w1b, b1, pool_mat, w2b, b2p)

    try:
        out = _run(True)
    except Exception:
        # pipeline_mode=pl.Buffered(1) is a pure VMEM optimization; if this
        # jax/Mosaic version rejects it on the auto-pipelined pallas_call path,
        # fall back to the otherwise-identical default (double-buffered) specs.
        out = _run(False)

    return out[:N, :num_classes]


def init_params(key, in_channels, out_channels, num_classes, eps=1e-5):
    k = jax.random.split(key, 6)
    # conv1x1: kaiming_uniform_(a=0) -> bound = sqrt(6 / fan_in), fan_in = Cin
    bound1 = (6.0 / in_channels) ** 0.5
    conv_w = jax.random.uniform(k[0], (in_channels, out_channels),
                                jnp.float32, -bound1, bound1)
    conv_b = jnp.zeros((1, out_channels), jnp.float32)  # init.constant_(bias, 0)

    # BatchNorm2d, inference mode (running stats), folded into scale/shift.
    # TODO(synk): PyTorch BatchNorm2d in training mode uses batch statistics;
    # this implements standard inference-mode (running-stats) semantics.
    gamma = 1.0 + 0.1 * jax.random.normal(k[1], (out_channels,), jnp.float32)
    beta = 0.1 * jax.random.normal(k[2], (out_channels,), jnp.float32)
    running_mean = 0.05 * jax.random.normal(k[3], (out_channels,), jnp.float32)
    running_var = jnp.ones((out_channels,), jnp.float32)
    bn_scale = (gamma / jnp.sqrt(running_var + eps)).reshape(1, out_channels)
    bn_shift = (beta - running_mean * bn_scale[0]).reshape(1, out_channels)

    # Linear: PyTorch default init ~ U(-1/sqrt(fan_in), 1/sqrt(fan_in))
    bound2 = 1.0 / (out_channels ** 0.5)
    fc_w = jax.random.uniform(k[4], (out_channels, num_classes),
                              jnp.float32, -bound2, bound2)
    fc_b = jax.random.uniform(k[5], (1, num_classes),
                              jnp.float32, -bound2, bound2)

    return dict(conv_w=conv_w, conv_b=conv_b,
                bn_scale=bn_scale, bn_shift=bn_shift,
                fc_w=fc_w, fc_b=fc_b)


def _reference_f32(x_nchw, params):
    """Pure-JAX f32 reference with the original module's semantics."""
    x = jnp.transpose(x_nchw, (0, 2, 3, 1))                          # (N,H,W,Cin)
    h = jnp.einsum("nhwc,cd->nhwd", x, params["conv_w"]) + params["conv_b"][0]
    h = h * params["bn_scale"][0] + params["bn_shift"][0]
    h = jnp.maximum(h, 0.0)
    pooled = jnp.mean(h, axis=(1, 2))                                # (N, Cout)
    return pooled @ params["fc_w"] + params["fc_b"][0]


def _reference_bf16(x_nchw, params):
    """Pure-JAX reference matching the kernel's bf16/f32-accum precision."""
    N, Cin, H, W = x_nchw.shape
    HW = H * W
    w1 = (params["conv_w"] * params["bn_scale"]).astype(jnp.bfloat16)
    b1 = (params["conv_b"] * params["bn_scale"] + params["bn_shift"])[0]
    x = jnp.transpose(x_nchw.astype(jnp.bfloat16), (0, 2, 3, 1)).reshape(N, HW, Cin)
    h = jnp.einsum("nsc,cd->nsd", x, w1,
                   preferred_element_type=jnp.float32) + b1
    h = jnp.maximum(h, 0.0)
    # Kernel pools by summing bf16-cast h in f32, with 1/HW folded into fc w.
    pooled = jnp.sum(h.astype(jnp.bfloat16).astype(jnp.float32), axis=1)  # (N, Cout)
    w2b = (params["fc_w"] / float(HW)).astype(jnp.bfloat16)
    out = jnp.dot(pooled.astype(jnp.bfloat16), w2b,
                  preferred_element_type=jnp.float32) + params["fc_b"][0]
    return out


if __name__ == "__main__":
    # Small shapes consistent with the module: spatial must be 7x7 so
    # AvgPool2d(7, stride=1) + view yields (N, out_channels).  N=64 with a
    # batch tile of 32 gives a 2-step "parallel" grid (keeps both v7x TCs busy).
    N, Cin, Cout, num_classes, H, W = 64, 32, 64, 16, 7, 7

    key = jax.random.PRNGKey(0)
    kx, kp = jax.random.split(key)
    x = jax.random.normal(kx, (N, Cin, H, W), jnp.float32)
    params = init_params(kp, Cin, Cout, num_classes)

    out = final_module_forward(x, params, batch_tile=32)
    out = jax.block_until_ready(out)
    assert out.shape == (N, num_classes), out.shape

    ref16 = _reference_bf16(x, params)   # same precision path as kernel -> tight
    ref32 = _reference_f32(x, params)    # original f32 semantics -> loose
    err16 = float(jnp.max(jnp.abs(out - ref16)))
    err32 = float(jnp.max(jnp.abs(out - ref32)))
    assert jnp.allclose(out, ref16, atol=2e-2, rtol=2e-2), err16
    assert jnp.allclose(out, ref32, atol=8e-2, rtol=8e-2), err32

    print("KERNEL_OK")
</pallas_src>

<mosaic_0001>
module attributes {stable_mosaic.version = 11 : i64} {
  func.func @_head_kernel(%arg0: i32, %arg1: memref<1568x128xbf16, #tpu.memory_space<vmem>>, %arg2: memref<128x64xbf16, #tpu.memory_space<vmem>>, %arg3: memref<1x64xf32, #tpu.memory_space<vmem>>, %arg4: memref<32x1568xbf16, #tpu.memory_space<vmem>>, %arg5: memref<64x128xbf16, #tpu.memory_space<vmem>>, %arg6: memref<1x128xf32, #tpu.memory_space<vmem>>, %arg7: memref<32x128xf32, #tpu.memory_space<vmem>>) attributes {dimension_semantics = [#tpu.dimension_semantics<parallel>], iteration_bounds = array<i64: 2>, scalar_prefetch = 0 : i64, scratch_operands = 0 : i64, tpu.core_type = #tpu.core_type<tc>, window_params = [{transform_indices = @transform_0, window_bounds = array<i64: 1568, 128>}, {pipeline_mode = #tpu.pipeline_mode<synchronous>, transform_indices = @transform_1, window_bounds = array<i64: 128, 64>}, {pipeline_mode = #tpu.pipeline_mode<synchronous>, transform_indices = @transform_2, window_bounds = array<i64: 1, 64>}, {pipeline_mode = #tpu.pipeline_mode<synchronous>, transform_indices = @transform_3, window_bounds = array<i64: 32, 1568>}, {pipeline_mode = #tpu.pipeline_mode<synchronous>, transform_indices = @transform_4, window_bounds = array<i64: 64, 128>}, {pipeline_mode = #tpu.pipeline_mode<synchronous>, transform_indices = @transform_5, window_bounds = array<i64: 1, 128>}, {transform_indices = @transform_6, window_bounds = array<i64: 32, 128>}]} {
    %c0 = arith.constant 0 : index
    %c0_0 = arith.constant 0 : index
    %0 = vector.load %arg1[%c0, %c0_0] : memref<1568x128xbf16, #tpu.memory_space<vmem>>, vector<1568x128xbf16>
    %c0_1 = arith.constant 0 : index
    %c0_2 = arith.constant 0 : index
    %1 = vector.load %arg2[%c0_1, %c0_2] : memref<128x64xbf16, #tpu.memory_space<vmem>>, vector<128x64xbf16>
    %cst = arith.constant dense<0.000000e+00> : vector<1568x64xf32>
    %2 = tpu.matmul %0, %1, %cst {dimension_numbers = #tpu.dot_dimension_numbers<[1], [0], [0], [1], [0, 0, 1, 1], [], []>} : vector<1568x128xbf16>, vector<128x64xbf16>, vector<1568x64xf32> -> vector<1568x64xf32>
    %c0_3 = arith.constant 0 : index
    %c0_4 = arith.constant 0 : index
    %3 = vector.load %arg3[%c0_3, %c0_4] : memref<1x64xf32, #tpu.memory_space<vmem>>, vector<1x64xf32>
    %4 = vector.broadcast %3 : vector<1x64xf32> to vector<1568x64xf32>
    %5 = arith.addf %2, %4 : vector<1568x64xf32>
    %cst_5 = arith.constant 0.000000e+00 : f32
    %6 = vector.broadcast %cst_5 : f32 to vector<1568x64xf32>
    %7 = arith.maximumf %5, %6 : vector<1568x64xf32>
    %c0_6 = arith.constant 0 : index
    %c0_7 = arith.constant 0 : index
    %8 = vector.load %arg4[%c0_6, %c0_7] : memref<32x1568xbf16, #tpu.memory_space<vmem>>, vector<32x1568xbf16>
    %9 = arith.truncf %7 : vector<1568x64xf32> to vector<1568x64xbf16>
    %cst_8 = arith.constant dense<0.000000e+00> : vector<32x64xf32>
    %10 = tpu.matmul %8, %9, %cst_8 {dimension_numbers = #tpu.dot_dimension_numbers<[1], [0], [0], [1], [0, 0, 1, 1], [], []>} : vector<32x1568xbf16>, vector<1568x64xbf16>, vector<32x64xf32> -> vector<32x64xf32>
    %11 = arith.truncf %10 : vector<32x64xf32> to vector<32x64xbf16>
    %c0_9 = arith.constant 0 : index
    %c0_10 = arith.constant 0 : index
    %12 = vector.load %arg5[%c0_9, %c0_10] : memref<64x128xbf16, #tpu.memory_space<vmem>>, vector<64x128xbf16>
    %cst_11 = arith.constant dense<0.000000e+00> : vector<32x128xf32>
    %13 = tpu.matmul %11, %12, %cst_11 {dimension_numbers = #tpu.dot_dimension_numbers<[1], [0], [0], [1], [0, 0, 1, 1], [], []>} : vector<32x64xbf16>, vector<64x128xbf16>, vector<32x128xf32> -> vector<32x128xf32>
    %c0_12 = arith.constant 0 : index
    %c0_13 = arith.constant 0 : index
    %14 = vector.load %arg6[%c0_12, %c0_13] : memref<1x128xf32, #tpu.memory_space<vmem>>, vector<1x128xf32>
    %15 = vector.broadcast %14 : vector<1x128xf32> to vector<32x128xf32>
    %16 = arith.addf %13, %15 : vector<32x128xf32>
    %c0_14 = arith.constant 0 : index
    %c0_15 = arith.constant 0 : index
    %17 = vector.load %arg7[%c0_14, %c0_15] : memref<32x128xf32, #tpu.memory_space<vmem>>, vector<32x128xf32>
    tpu.vector_store %arg7[%c0_14, %c0_15], %16 {strides = array<i32>} : memref<32x128xf32, #tpu.memory_space<vmem>>, vector<32x128xf32>,
    return
  }
  func.func @transform_0(%arg0: i32) -> (i32, i32) {
    %c0_i32 = arith.constant 0 : i32
    %c0_i32_0 = arith.constant 0 : i32
    return %arg0, %c0_i32 : i32, i32
  }
  func.func @transform_1(%arg0: i32) -> (i32, i32) {
    %c0_i32 = arith.constant 0 : i32
    %c0_i32_0 = arith.constant 0 : i32
    %c0_i32_1 = arith.constant 0 : i32
    return %c0_i32, %c0_i32_0 : i32, i32
  }
  func.func @transform_2(%arg0: i32) -> (i32, i32) {
    %c0_i32 = arith.constant 0 : i32
    %c0_i32_0 = arith.constant 0 : i32
    %c0_i32_1 = arith.constant 0 : i32
    return %c0_i32, %c0_i32_0 : i32, i32
  }
  func.func @transform_3(%arg0: i32) -> (i32, i32) {
    %c0_i32 = arith.constant 0 : i32
    %c0_i32_0 = arith.constant 0 : i32
    %c0_i32_1 = arith.constant 0 : i32
    return %c0_i32, %c0_i32_0 : i32, i32
  }
  func.func @transform_4(%arg0: i32) -> (i32, i32) {
    %c0_i32 = arith.constant 0 : i32
    %c0_i32_0 = arith.constant 0 : i32
    %c0_i32_1 = arith.constant 0 : i32
    return %c0_i32, %c0_i32_0 : i32, i32
  }
  func.func @transform_5(%arg0: i32) -> (i32, i32) {
    %c0_i32 = arith.constant 0 : i32
    %c0_i32_0 = arith.constant 0 : i32
    %c0_i32_1 = arith.constant 0 : i32
    return %c0_i32, %c0_i32_0 : i32, i32
  }
  func.func @transform_6(%arg0: i32) -> (i32, i32) {
    %c0_i32 = arith.constant 0 : i32
    %c0_i32_0 = arith.constant 0 : i32
    return %arg0, %c0_i32 : i32, i32
  }
}

module attributes {stable_mosaic.version = 11 : i64} {
  func.func @_head_kernel(%arg0: i32, %arg1: memref<1568x128xbf16, #tpu.memory_space<vmem>>, %arg2: memref<128x64xbf16, #tpu.memory_space<vmem>>, %arg3: memref<1x64xf32, #tpu.memory_space<vmem>>, %arg4: memref<32x1568xbf16, #tpu.memory_space<vmem>>, %arg5: memref<64x128xbf16, #tpu.memory_space<vmem>>, %arg6: memref<1x128xf32, #tpu.memory_space<vmem>>, %arg7: memref<32x128xf32, #tpu.memory_space<vmem>>) attributes {dimension_semantics = [#tpu.dimension_semantics<parallel>], iteration_bounds = array<i64: 2>, scalar_prefetch = 0 : i64, scratch_operands = 0 : i64, tpu.core_type = #tpu.core_type<tc>, window_params = [{transform_indices = @transform_0, window_bounds = array<i64: 1568, 128>}, {pipeline_mode = #tpu.pipeline_mode<synchronous>, transform_indices = @transform_1, window_bounds = array<i64: 128, 64>}, {pipeline_mode = #tpu.pipeline_mode<synchronous>, transform_indices = @transform_2, window_bounds = array<i64: 1, 64>}, {pipeline_mode = #tpu.pipeline_mode<synchronous>, transform_indices = @transform_3, window_bounds = array<i64: 32, 1568>}, {pipeline_mode = #tpu.pipeline_mode<synchronous>, transform_indices = @transform_4, window_bounds = array<i64: 64, 128>}, {pipeline_mode = #tpu.pipeline_mode<synchronous>, transform_indices = @transform_5, window_bounds = array<i64: 1, 128>}, {transform_indices = @transform_6, window_bounds = array<i64: 32, 128>}]} {
    %c0 = arith.constant 0 : index
    %c0_0 = arith.constant 0 : index
    %0 = vector.load %arg1[%c0, %c0_0] : memref<1568x128xbf16, #tpu.memory_space<vmem>>, vector<1568x128xbf16>
    %c0_1 = arith.constant 0 : index
    %c0_2 = arith.constant 0 : index
    %1 = vector.load %arg2[%c0_1, %c0_2] : memref<128x64xbf16, #tpu.memory_space<vmem>>, vector<128x64xbf16>
    %cst = arith.constant dense<0.000000e+00> : vector<1568x64xf32>
    %2 = tpu.matmul %0, %1, %cst {dimension_numbers = #tpu.dot_dimension_numbers<[1], [0], [0], [1], [0, 0, 1, 1], [], []>} : vector<1568x128xbf16>, vector<128x64xbf16>, vector<1568x64xf32> -> vector<1568x64xf32>
    %c0_3 = arith.constant 0 : index
    %c0_4 = arith.constant 0 : index
    %3 = vector.load %arg3[%c0_3, %c0_4] : memref<1x64xf32, #tpu.memory_space<vmem>>, vector<1x64xf32>
    %4 = vector.broadcast %3 : vector<1x64xf32> to vector<1568x64xf32>
    %5 = arith.addf %2, %4 : vector<1568x64xf32>
    %cst_5 = arith.constant 0.000000e+00 : f32
    %6 = vector.broadcast %cst_5 : f32 to vector<1568x64xf32>
    %7 = arith.maximumf %5, %6 : vector<1568x64xf32>
    %c0_6 = arith.constant 0 : index
    %c0_7 = arith.constant 0 : index
    %8 = vector.load %arg4[%c0_6, %c0_7] : memref<32x1568xbf16, #tpu.memory_space<vmem>>, vector<32x1568xbf16>
    %9 = arith.truncf %7 : vector<1568x64xf32> to vector<1568x64xbf16>
    %cst_8 = arith.constant dense<0.000000e+00> : vector<32x64xf32>
    %10 = tpu.matmul %8, %9, %cst_8 {dimension_numbers = #tpu.dot_dimension_numbers<[1], [0], [0], [1], [0, 0, 1, 1], [], []>} : vector<32x1568xbf16>, vector<1568x64xbf16>, vector<32x64xf32> -> vector<32x64xf32>
    %11 = arith.truncf %10 : vector<32x64xf32> to vector<32x64xbf16>
    %c0_9 = arith.constant 0 : index
    %c0_10 = arith.constant 0 : index
    %12 = vector.load %arg5[%c0_9, %c0_10] : memref<64x128xbf16, #tpu.memory_space<vmem>>, vector<64x128xbf16>
    %cst_11 = arith.constant dense<0.000000e+00> : vector<32x128xf32>
    %13 = tpu.matmul %11, %12, %cst_11 {dimension_numbers = #tpu.dot_dimension_numbers<[1], [0], [0], [1], [0, 0, 1, 1], [], []>} : vector<32x64xbf16>, vector<64x128xbf16>, vector<32x128xf32> -> vector<32x128xf32>
    %c0_12 = arith.constant 0 : index
    %c0_13 = arith.constant 0 : index
    %14 = vector.load %arg6[%c0_12, %c0_13] : memref<1x128xf32, #tpu.memory_space<vmem>>, vector<1x128xf32>
    %15 = vector.broadcast %14 : vector<1x128xf32> to vector<32x128xf32>
    %16 = arith.addf %13, %15 : vector<32x128xf32>
    %c0_14 = arith.constant 0 : index
    %c0_15 = arith.constant 0 : index
    %17 = vector.load %arg7[%c0_14, %c0_15] : memref<32x128xf32, #tpu.memory_space<vmem>>, vector<32x128xf32>
    tpu.vector_store %arg7[%c0_14, %c0_15], %16 {strides = array<i32>} : memref<32x128xf32, #tpu.memory_space<vmem>>, vector<32x128xf32>,
    return
  }
  func.func @transform_0(%arg0: i32) -> (i32, i32) {
    %c0_i32 = arith.constant 0 : i32
    %c0_i32_0 = arith.constant 0 : i32
    return %arg0, %c0_i32 : i32, i32
  }
  func.func @transform_1(%arg0: i32) -> (i32, i32) {
    %c0_i32 = arith.constant 0 : i32
    %c0_i32_0 = arith.constant 0 : i32
    %c0_i32_1 = arith.constant 0 : i32
    return %c0_i32, %c0_i32_0 : i32, i32
  }
  func.func @transform_2(%arg0: i32) -> (i32, i32) {
    %c0_i32 = arith.constant 0 : i32
    %c0_i32_0 = arith.constant 0 : i32
    %c0_i32_1 = arith.constant 0 : i32
    return %c0_i32, %c0_i32_0 : i32, i32
  }
  func.func @transform_3(%arg0: i32) -> (i32, i32) {
    %c0_i32 = arith.constant 0 : i32
    %c0_i32_0 = arith.constant 0 : i32
    %c0_i32_1 = arith.constant 0 : i32
    return %c0_i32, %c0_i32_0 : i32, i32
  }
  func.func @transform_4(%arg0: i32) -> (i32, i32) {
    %c0_i32 = arith.constant 0 : i32
    %c0_i32_0 = arith.constant 0 : i32
    %c0_i32_1 = arith.constant 0 : i32
    return %c0_i32, %c0_i32_0 : i32, i32
  }
  func.func @transform_5(%arg0: i32) -> (i32, i32) {
    %c0_i32 = arith.constant 0 : i32
    %c0_i32_0 = arith.constant 0 : i32
    %c0_i32_1 = arith.constant 0 : i32
    return %c0_i32, %c0_i32_0 : i32, i32
  }
  func.func @transform_6(%arg0: i32) -> (i32, i32) {
    %c0_i32 = arith.constant 0 : i32
    %c0_i32_0 = arith.constant 0 : i32
    return %arg0, %c0_i32 : i32, i32
  }
}

</mosaic_0001>

<bundles_post_ra>
// kernel: tpu_custom_call.1
= control target key start
LH: loop header
LB: loop body
LE: loop exit
PB: predicated region body
PF: predicated region fallthrough
CT: control target
= control target key end

     0   :  { %11 = vsyncpa [#allocation3], 0  ;;  %s4769_s0 = inlined_call_operand.hbm [shape: bf16[3136,128], index: 0, kind: input, shape index: {}]   ;;  %s4770_s1 = inlined_call_operand.vmem [shape: bf16[128,64], index: 1, kind: input, shape index: {}]   ;;  %s4771_s2 = inlined_call_operand.vmem [shape: f32[1,64], index: 2, kind: input, shape index: {}]   ;;  %s4772_s3 = inlined_call_operand.hbm [shape: bf16[32,1568], index: 3, kind: input, shape index: {}]   ;;  %s4773_s4 = inlined_call_operand.vmem [shape: bf16[64,128], index: 4, kind: input, shape index: {}]   ;;  %s4774_s5 = inlined_call_operand.vmem [shape: f32[1,128], index: 5, kind: input, shape index: {}]   ;;  %s4775_s6 = inlined_call_operand.hbm [shape: f32[64,128], index: 6, kind: output, shape index: {}]  }
   0x1   :  { %13 = vsyncpa [#allocation3 + $0x1], 0 }
   0x2   :  { %14 = vsyncpa [#allocation6], 0 }
   0x3   :  { %15 = vsyncpa [#allocation4], 0 }
   0x4   :  { %17 = vsyncpa [#allocation4 + $0x1], 0  ;;  %s4037_s21 = smov 0   ;;  %s4039_s22 = smov 0  }
   0x5   :  { %s4041_s23 = smov 0   ;;  %s4043_s24 = smov 0  }
   0x6 LB: > { %s4058_s25 = sadd.s32 4294967295, %s3991_s24   ;;  %s2960_s26 = sadd.s32 4294967294, %s3991_s24   ;;  %s3991_s24 = sphi %s4043_s24, %s4795_s24   ;;  %s3987_s23 = sphi %s4041_s23, %s4794_s23   ;;  %s3983_s22 = sphi %s4039_s22, %s4793_s22   ;;  %s3979_s21 = sphi %s4037_s21, %s4792_s21  }
   0x7   : > { %p43_p0 = scmp.ne.s32.totalorder %s3983_s22, %s3979_s21  ;;  %p4776_p1 = scmp.eq.s32.totalorder %s4058_s25, 0 }
   0x8   : > { %p178_p3 = scmp.eq.s32.totalorder %s2960_s26, 1  ;;  %p2961_p5 = scmp.ge.s32.totalorder %s3991_s24, 1 }
   0x9   : > { %p4067_p4 = por %p4776_p1, %p43_p0  ;;  %p185_p7 = scmp.lt.s32.totalorder %s3991_s24, 3 }
   0xa   : > { %p4072_p6 = por %p178_p3, %p43_p0  ;;  %s3993_s30 = smov [#allocation5]  }
   0xb   : > { %s4779_s27 = scalar_select %p4067_p4, 1, 0 }
   0xc   : > { %s4780_s28 = scalar_select %p4072_p6, 1, 0 }
   0xd   : > { %p4077_p8 = pnand %p2961_p5, %p185_p7  ;;  %s203_s7 = sshll.u32 %s3993_s30, 4  ;;  %s4081_s7 = int_to_ptr.vmem [resolvable:$true] %s203_s7 }
   0xe   : > { %s4093_s9 = sadd.s32 1, %s3991_s24   ;;  %s30_s10 = sadd.s32 1, %s3987_s23 }
   0xf   : > { %s4781_s29 = scalar_select %p4077_p8, 1, 0 }
  0x10   : > { %p3659_p9 = pneg %p4077_p8  ;;  %s27_s11 = ssub.s32 %s3991_s24, %s4093_s9 }
  0x11   : > { %s3863_s14 = scalar_lea.hbm %s4772_s3, 3328 }
  0x12   : > { %p4088_p11 = pnand %p3659_p9, %p4776_p1  ;;  %p3864_p12 = scmp.ne.s32.totalorder %s4772_s3, %s3863_s14 }
  0x13   : > { %p3870_p5 = scmp.lt.u32.totalorder %s3863_s14, %s4772_s3 }
  0x14   : > { %p3865_p13 = pneg %p4088_p11 }
  0x16   : > { %p3866_p0 = pnand %p3865_p13, %p3864_p12 }
  0x18   : > { %p3867_p3 = pneg %p3866_p0 }
  0x1a   : > { %p3872_p7 = pnand %p3870_p5, %p3867_p3 }
  0x1c   : > { %3875 = shalt.err (!%p3872_p7)
}
  0x1d   : > { %s3876_s19 = scalar_lea.vmem %s4081_s7, 3328  ;;  %p3884_p2 = scmp.lt.s32.totalorder %s4081_s7, %s4081_s7 }
  0x1e   : > { %p3877_p9 = scmp.ne.s32.totalorder %s4081_s7, %s3876_s19  ;;  %p3885_p6 = scmp.lt.s32.totalorder %s3876_s19, %s3876_s19 }
  0x20   : > { %p3879_p10 = pnand %p3877_p9, %p3865_p13  ;;  %p3886_p4 = por %p3885_p6, %p3884_p2 }
  0x22   : > { %p3880_p1 = pneg %p3879_p10 }
  0x24   : > { %p3887_p8 = pnand %p3886_p4, %p3880_p1 }
  0x26   : > { %3890 = shalt.err (!%p3887_p8)
}
  0x27   : > { %s3994_s20 = smov 832   ;;  %s3995_s26 = smov 52  }
  0x28   : > { %3662 = dma.hbm_to_vmem [thread:$0]  (!%p4088_p11), %s4772_s3, 3328, %s4081_s7, [#allocation6], %s3994_s20, %s3994_s20, %s3995_s26  }
  0x29   : > { %p28_p2 = scmp.eq.s32.totalorder %s27_s11, 0  ;;  %p37_p1 = scmp.ne.s32.totalorder %s3987_s23, %s3983_s22 }
  0x2a   : > { %p38_p4 = scmp.eq.s32.totalorder %s3991_s24, 0  ;;  %p3672_p6 = scmp.lt.s32.totalorder %s3991_s24, 2 }
  0x2b   : > { %s4124_s13 = scalar_select %p28_p2, %s3987_s23, %s30_s10  }
  0x2c   : > { %p39_p8 = por %p38_p4, %p37_p1  ;;  %p4783_p10 = scmp.eq.s32.totalorder %s4058_s25, 1 }
  0x2d   : > { %s223_s15 = sand.u32 1, %s3987_s23   ;;  %s3115_s16 = smul.u32 12544, %s3991_s24 }
  0x2e   : > { %p4128_p12 = por %p4783_p10, %p37_p1  ;;  %s3649_s17 = smul.u32 784, %s223_s15 }
  0x2f   : > { %s4137_s19 = scalar_lea.hbm %s4769_s0, %s3115_s16  ;;  %p4139_p11 = pnand %p3672_p6, %p39_p8 }
  0x30   : > { %s227_s10 = scalar_lea.vmem [#allocation2], %s3649_s17  ;;  %s4145_s20 = scalar_lea.sflag [#allocation3], %s223_s15 }
  0x31   : > { %s234_s11 = sshll.u32 %s227_s10, 4  ;;  %s3891_s26 = scalar_lea.hbm %s4137_s19, 12544  ;;  %s4143_s11 = int_to_ptr.vmem [resolvable:$true] %s234_s11 }
  0x32   : > { %p3892_p13 = scmp.ne.s32.totalorder %s4137_s19, %s3891_s26  ;;  %p3893_p0 = pneg %p4139_p11 }
  0x33   : > { %s3896_s16 = scalar_lea.hbm %s4769_s0, 25088  ;;  %p3897_p7 = scmp.lt.u32.totalorder %s4137_s19, %s4769_s0 }
  0x34   : > { %p3894_p3 = pnand %p3893_p0, %p3892_p13  ;;  %p3898_p9 = scmp.lt.u32.totalorder %s3896_s16, %s3891_s26 }
  0x35   : > { %p3900_p1 = scmp.lt.u32.totalorder %s3891_s26, %s4137_s19 }
  0x36   : > { %p3895_p5 = pneg %p3894_p3  ;;  %p3899_p2 = por %p3898_p9, %p3897_p7 }
  0x38   : > { %p3901_p4 = por %p3900_p1, %p3899_p2 }
  0x3a   : > { %p3902_p6 = pnand %p3901_p4, %p3895_p5 }
  0x3c   : > { %3905 = shalt.err (!%p3902_p6)
}
  0x3d   : > { %s3906_s15 = scalar_lea.vmem %s4143_s11, 12544  ;;  %s3996_s17 = smov [#allocation2]  }
  0x3e   : > { %p3907_p8 = scmp.ne.s32.totalorder %s4143_s11, %s3906_s15  ;;  %s3911_s10 = sshll.u32 %s3996_s17, 4  ;;  %s3912_s10 = int_to_ptr.vmem [resolvable:$false] %s3911_s10 }
  0x3f   : > { %s3913_s30 = scalar_lea.vmem %s3912_s10, 25088  ;;  %p3914_p3 = scmp.lt.s32.totalorder %s4143_s11, %s3912_s10 }
  0x40   : > { %p3909_p10 = pnand %p3907_p8, %p3893_p0  ;;  %p3915_p7 = scmp.lt.s32.totalorder %s3913_s30, %s3906_s15 }
  0x42   : > { %p3910_p13 = pneg %p3909_p10  ;;  %p3916_p9 = por %p3915_p7, %p3914_p3 }
  0x44   : > { %p3917_p2 = pnand %p3916_p9, %p3910_p13 }
  0x46   : > { %3920 = shalt.err (!%p3917_p2)
}
  0x47   : > { %s3997_s26 = smov 64   ;;  %s3998_s12 = smov 4  }
  0x48   : > { %3666 = dma.hbm_to_vmem [thread:$0]  (!%p4139_p11), %s4137_s19, 12544, %s4143_s11, %s4145_s20, %s3997_s26, %s3997_s26, %s3998_s12  }
  0x49   : > { %p4786_p0 = scmp.ne.s32.totalorder %s4781_s29, 0 }
  0x4a   : > { %s4176_s16 = sand.u32 (!%p4786_p0), 1, %s3983_s22   ;;  %p4787_p5 = scmp.ne.s32.totalorder (!%p4786_p0), %s4779_s27, 0 }
  0x4b   : > { %246 = sbr.rel (%p4786_p0) target bundleno = 1160 (0x488), region = 44  ;;  %s249_s18 = scalar_lea.sflag (!%p4786_p0), [#allocation3], %s4176_s16 }
  0x4c   : > { %s3650_s8 = smul.u32 (!%p4786_p0), 784, %s4176_s16 }
  0x4e   : > { %s4180_s15 = scalar_lea.vmem (!%p4786_p0), [#allocation2], %s3650_s8 }
  0x52   : > { %3966 = dma.done.wait (%p4787_p5), %s249_s18, 12544  }
  0x53   : > { %3968 = vsyncadd (%p4787_p5), %s249_s18, 4294954752  ;;  %p4788_p11 = scmp.eq.s32.totalorder %s4058_s25, 0 }
  0x55   : > { %3970 = dma.done.wait (%p4788_p11), [#allocation6], 3328   ;;  %p4789_p1 = pmov %p4788_p11 }
  0x56   : > { %v3714_v0 = vld [vmem:[%s4770_s1] sm:$0xff]   ;;  %v3715_v1 = vld [vmem:[%s4770_s1 + $0x8] sm:$0xff]   ;;  %v3716_v2 = vld [vmem:[%s4770_s1 + $0x10] sm:$0xff]   ;;  %vm2412_vm0 = vcmask 261120   ;;  %vm2803_vm1 = vcmask 523264   ;;  %s2967_s19 = sshll.u32 %s4176_s16, 5 }
  0x57   : > { %3972 = vsyncadd (%p4789_p1), [#allocation6], 4294963968  ;;  %3401 = vmatprep.subr.bf16.mxu0 %v3714_v0  ;;  %3633 = vmatprep.subr.bf16.mxu1 %v3714_v0  ;;  %v3717_v3 = vld [vmem:[%s4770_s1 + $0x18] sm:$0xff]   ;;  %v3722_v4 = vld [vmem:[%s4180_s15] sm:$0xff]   ;;  %s284_s27 = scalar_lea.vmem [#allocation7], %s2967_s19  ;;  %s3116_s20 = sshll.u32 %s4058_s25, 9 }
  0x58   : > { %3402 = vmatpush3.bf16.msra.mxu0 %v3714_v0  ;;  %3641 = vmatpush3.bf16.msra.mxu1 %v3714_v0  ;;  %v3718_v5 = vld [vmem:[%s4770_s1 + $0x20] sm:$0xff]   ;;  %v3719_v6 = vld [vmem:[%s4770_s1 + $0x28] sm:$0xff]   ;;  %v3720_v7 = vld [vmem:[%s4770_s1 + $0x30] sm:$0xff]   ;;  %s4725_s30 = scalar_lea.hbm %s4775_s6, %s3116_s20  ;;  %s2864_s25 = scalar_lea.sflag [#allocation4], %s4176_s16 }
  0x59   : > { %3403 = vmatprep.subr.bf16.mxu0 %v3715_v1  ;;  %3634 = vmatprep.subr.bf16.mxu1 %v3715_v1  ;;  %v3721_v8 = vld [vmem:[%s4770_s1 + $0x38] sm:$0xff]   ;;  %v3724_v10 = vld [vmem:[%s4180_s15 + $0x10] sm:$0xff]   ;;  %v3726_v12 = vld [vmem:[%s4180_s15 + $0x20] sm:$0xff]   ;;  %s3999_s12 = smov [#allocation7]  }
  0x5a   : > { %3417 = vmatprep.mubr.bf16.mxu0 %v3722_v4  ;;  %v3723_v9 = vld [vmem:[%s4180_s15 + $0x8] sm:$0xff]   ;;  %v3725_v11 = vld [vmem:[%s4180_s15 + $0x18] sm:$0xff]   ;;  %v3728_v14 = vld [vmem:[%s4180_s15 + $0x30] sm:$0xff]   ;;  %s3925_s8 = sshll.u32 %s3999_s12, 4  ;;  %s3926_s8 = int_to_ptr.vmem [resolvable:$false] %s3925_s8 }
  0x5b   : > { %v3727_v13 = vld [vmem:[%s4180_s15 + $0x28] sm:$0xff]   ;;  %v3729_v15 = vld [vmem:[%s4180_s15 + $0x38] sm:$0xff]   ;;  %v3730_v16 = vld [vmem:[%s4180_s15 + $0x40] sm:$0xff]   ;;  %s3927_s18 = scalar_lea.vmem %s3926_s8, 1024 }
  0x5c   : > { %3404 = vmatpush3.bf16.msra.mxu0 %v3715_v1  ;;  %3642 = vmatpush3.bf16.msra.mxu1 %v3715_v1  ;;  %v3731_v17 = vld [vmem:[%s4180_s15 + $0x48] sm:$0xff]   ;;  %v3732_v18 = vld [vmem:[%s4180_s15 + $0x50] sm:$0xff]   ;;  %v3733_v19 = vld [vmem:[%s4180_s15 + $0x58] sm:$0xff]  }
  0x5d   : > { %3405 = vmatprep.subr.bf16.mxu0 %v3716_v2  ;;  %3635 = vmatprep.subr.bf16.mxu1 %v3716_v2  ;;  %v3734_v20 = vld [vmem:[%s4180_s15 + $0x60] sm:$0xff]   ;;  %v3735_v21 = vld [vmem:[%s4180_s15 + $0x68] sm:$0xff]   ;;  %v3736_v22 = vld [vmem:[%s4180_s15 + $0x70] sm:$0xff]  }
  0x5e   : > { %v3737_v23 = vld [vmem:[%s4180_s15 + $0x78] sm:$0xff]   ;;  %v3738_v24 = vld [vmem:[%s4180_s15 + $0x80] sm:$0xff]   ;;  %v3739_v25 = vld [vmem:[%s4180_s15 + $0x88] sm:$0xff]  }
  0x5f   : > { %v3740_v26 = vld [vmem:[%s4180_s15 + $0x90] sm:$0xff]   ;;  %v3741_v27 = vld [vmem:[%s4180_s15 + $0x98] sm:$0xff]   ;;  %v3742_v28 = vld [vmem:[%s4180_s15 + $0xa0] sm:$0xff]  }
  0x60   : > { %3406 = vmatpush3.bf16.msra.mxu0 %v3716_v2  ;;  %3643 = vmatpush3.bf16.msra.mxu1 %v3716_v2  ;;  %v3743_v29 = vld [vmem:[%s4180_s15 + $0xa8] sm:$0xff]   ;;  %v3744_v30 = vld [vmem:[%s4180_s15 + $0xb0] sm:$0xff]   ;;  %v3745_v31 = vld [vmem:[%s4180_s15 + $0xb8] sm:$0xff]  }
  0x61   : > { %3407 = vmatprep.subr.bf16.mxu0 %v3717_v3  ;;  %3636 = vmatprep.subr.bf16.mxu1 %v3717_v3  ;;  %v3746_v32 = vld [vmem:[%s4180_s15 + $0xc0] sm:$0xff]   ;;  %v3778_v33 = vld [vmem:[%s4180_s15 + $0x250] sm:$0xff]   ;;  %v3747_v34 = vld [vmem:[%s4180_s15 + $0xc8] sm:$0xff]  }
  0x62   : > { %v3779_v35 = vld [vmem:[%s4180_s15 + $0x258] sm:$0xff]   ;;  %v3748_v36 = vld [vmem:[%s4180_s15 + $0xd0] sm:$0xff]   ;;  %3565 = vmatprep.mubr.bf16.mxu1 %v3778_v33  ;;  %v3782_v37 = vld [vmem:[%s4180_s15 + $0x260] sm:$0xff]  }
  0x63   : > { %v3749_v38 = vld [vmem:[%s4180_s15 + $0xd8] sm:$0xff]   ;;  %v3783_v39 = vld [vmem:[%s4180_s15 + $0x268] sm:$0xff]   ;;  %v3750_v40 = vld [vmem:[%s4180_s15 + $0xe0] sm:$0xff]  }
  0x64   : > { %3408 = vmatpush3.bf16.msra.mxu0 %v3717_v3  ;;  %3644 = vmatpush3.bf16.msra.mxu1 %v3717_v3  ;;  %v3786_v41 = vld [vmem:[%s4180_s15 + $0x270] sm:$0xff]   ;;  %v3751_v42 = vld [vmem:[%s4180_s15 + $0xe8] sm:$0xff]   ;;  %v3787_v43 = vld [vmem:[%s4180_s15 + $0x278] sm:$0xff]  }
  0x65   : > { %3409 = vmatprep.subr.bf16.mxu0 %v3718_v5  ;;  %3637 = vmatprep.subr.bf16.mxu1 %v3718_v5  ;;  %v3752_v44 = vld [vmem:[%s4180_s15 + $0xf0] sm:$0xff]   ;;  %v3790_v45 = vld [vmem:[%s4180_s15 + $0x280] sm:$0xff]   ;;  %v3753_v46 = vld [vmem:[%s4180_s15 + $0xf8] sm:$0xff]  }
  0x66   : > { %v3791_v47 = vld [vmem:[%s4180_s15 + $0x288] sm:$0xff]   ;;  %v3754_v48 = vld [vmem:[%s4180_s15 + $0x100] sm:$0xff]   ;;  %v3794_v49 = vld [vmem:[%s4180_s15 + $0x290] sm:$0xff]  }
  0x67   : > { %v3755_v50 = vld [vmem:[%s4180_s15 + $0x108] sm:$0xff]   ;;  %v3795_v51 = vld [vmem:[%s4180_s15 + $0x298] sm:$0xff]   ;;  %v3756_v52 = vld [vmem:[%s4180_s15 + $0x110] sm:$0xff]  }
  0x68   : > { %3410 = vmatpush3.bf16.msra.mxu0 %v3718_v5  ;;  %3645 = vmatpush3.bf16.msra.mxu1 %v3718_v5  ;;  %v3798_v53 = vld [vmem:[%s4180_s15 + $0x2a0] sm:$0xff]   ;;  %v3757_v54 = vld [vmem:[%s4180_s15 + $0x118] sm:$0xff]   ;;  %v3799_v55 = vld [vmem:[%s4180_s15 + $0x2a8] sm:$0xff]  }
  0x69   : > { %3411 = vmatprep.subr.bf16.mxu0 %v3719_v6  ;;  %3638 = vmatprep.subr.bf16.mxu1 %v3719_v6  ;;  %v3758_v56 = vld [vmem:[%s4180_s15 + $0x120] sm:$0xff]   ;;  %v3802_v57 = vld [vmem:[%s4180_s15 + $0x2b0] sm:$0xff]   ;;  %v3759_v58 = vld [vmem:[%s4180_s15 + $0x128] sm:$0xff]  }
  0x6a   : > { %v3803_v59 = vld [vmem:[%s4180_s15 + $0x2b8] sm:$0xff]   ;;  %v3760_v60 = vld [vmem:[%s4180_s15 + $0x130] sm:$0xff]   ;;  %v3806_v61 = vld [vmem:[%s4180_s15 + $0x2c0] sm:$0xff]  }
  0x6b   : > { %v3761_v62 = vld [vmem:[%s4180_s15 + $0x138] sm:$0xff]   ;;  %v3807_v63 = vld [vmem:[%s4180_s15 + $0x2c8] sm:$0xff]   ;;  %v3762_v0 = vld [vmem:[%s4180_s15 + $0x140] sm:$0xff]  }
  0x6c   : > { %3412 = vmatpush3.bf16.msra.mxu0 %v3719_v6  ;;  %3646 = vmatpush3.bf16.msra.mxu1 %v3719_v6  ;;  %v3810_v1 = vld [vmem:[%s4180_s15 + $0x2d0] sm:$0xff]   ;;  %v3763_v2 = vld [vmem:[%s4180_s15 + $0x148] sm:$0xff]   ;;  %v3811_v3 = vld [vmem:[%s4180_s15 + $0x2d8] sm:$0xff]  }
  0x6d   : > { %3413 = vmatprep.subr.bf16.mxu0 %v3720_v7  ;;  %3639 = vmatprep.subr.bf16.mxu1 %v3720_v7  ;;  %v3764_v4 = vld [vmem:[%s4180_s15 + $0x150] sm:$0xff]   ;;  %v3814_v5 = vld [vmem:[%s4180_s15 + $0x2e0] sm:$0xff]   ;;  %v3765_v6 = vld [vmem:[%s4180_s15 + $0x158] sm:$0xff]  }
  0x70   : > { %3414 = vmatpush3.bf16.msra.mxu0 %v3720_v7  ;;  %3647 = vmatpush3.bf16.msra.mxu1 %v3720_v7  ;;  %v3815_v7 = vld [vmem:[%s4180_s15 + $0x2e8] sm:$0xff]  }
  0x71   : > { %3415 = vmatprep.subr.bf16.mxu0 %v3721_v8  ;;  %3640 = vmatprep.subr.bf16.mxu1 %v3721_v8 }
  0x74   : > { %3416 = vmatpush3.bf16.msra.mxu0 %v3721_v8  ;;  %3648 = vmatpush3.bf16.msra.mxu1 %v3721_v8  ;;  %v3766_v8 = vld [vmem:[%s4180_s15 + $0x160] sm:$0xff]  }
  0x77   : > { %3418 = vmatmul.mubr.bf16.vlgmr.msra.gmra.mrb[0].mxu0 %v3723_v9  ;;  %3566 = vmatmul.mubr.bf16.vlgmr.msra.gmra.mrb[0].mxu1 %v3779_v35  ;;  %v3816_v9 = vld [vmem:[%s4180_s15 + $0x2f0] sm:$0xff]  }
  0x78   : > { %3421 = vmatprep.mubr.bf16.mxu0 %v3724_v10  ;;  %3569 = vmatprep.mubr.bf16.mxu1 %v3782_v37  ;;  %v3767_v10 = vld [vmem:[%s4180_s15 + $0x168] sm:$0xff]  }
  0x7f   : > { %3422 = vmatmul.mubr.bf16.gmra.mrb[4].mxu0 %v3725_v11  ;;  %3570 = vmatmul.mubr.bf16.gmra.mrb[4].mxu1 %v3783_v39  ;;  %v3817_v11 = vld [vmem:[%s4180_s15 + $0x2f8] sm:$0xff]  }
  0x80   : > { %3425 = vmatprep.mubr.bf16.mxu0 %v3726_v12  ;;  %3573 = vmatprep.mubr.bf16.mxu1 %v3786_v41  ;;  %v3768_v12 = vld [vmem:[%s4180_s15 + $0x170] sm:$0xff]  }
  0x87   : > { %3426 = vmatmul.mubr.bf16.gmra.mrb[8].mxu0 %v3727_v13  ;;  %3574 = vmatmul.mubr.bf16.gmra.mrb[8].mxu1 %v3787_v43  ;;  %v3818_v13 = vld [vmem:[%s4180_s15 + $0x300] sm:$0xff]  }
  0x88   : > { %3429 = vmatprep.mubr.bf16.mxu0 %v3728_v14  ;;  %3577 = vmatprep.mubr.bf16.mxu1 %v3790_v45  ;;  %v3769_v14 = vld [vmem:[%s4180_s15 + $0x178] sm:$0xff]  }
  0x8f   : > { %3430 = vmatmul.mubr.bf16.gmra.mrb[12].mxu0 %v3729_v15  ;;  %3578 = vmatmul.mubr.bf16.gmra.mrb[12].mxu1 %v3791_v47  ;;  %v3819_v15 = vld [vmem:[%s4180_s15 + $0x308] sm:$0xff]   ;;  %v3784_v47 = vld [vmem:[%s4180_s15 + $0x1d0] sm:$0xff]  }
  0x90   : > { %3433 = vmatprep.mubr.bf16.mxu0 %v3730_v16  ;;  %3581 = vmatprep.mubr.bf16.mxu1 %v3794_v49  ;;  %v3770_v16 = vld [vmem:[%s4180_s15 + $0x180] sm:$0xff]  }
  0x97   : > { %3434 = vmatmul.mubr.bf16.gmra.mrb[16].mxu0 %v3731_v17  ;;  %3582 = vmatmul.mubr.bf16.gmra.mrb[16].mxu1 %v3795_v51  ;;  %v3822_v17 = vld [vmem:[#allocation5 + $0x4] ss:$52 sps:$4 sm:$0xff]  }
  0x98   : > { %3437 = vmatprep.mubr.bf16.mxu0 %v3732_v18  ;;  %3585 = vmatprep.mubr.bf16.mxu1 %v3798_v53  ;;  %v3771_v18 = vld [vmem:[%s4180_s15 + $0x188] sm:$0xff]  }
  0x9f   : > { %3438 = vmatmul.mubr.bf16.gmra.mrb[20].mxu0 %v3733_v19  ;;  %3586 = vmatmul.mubr.bf16.gmra.mrb[20].mxu1 %v3799_v55  ;;  %v3772_v19 = vld [vmem:[%s4180_s15 + $0x190] sm:$0xff]  }
  0xa0   : > { %3441 = vmatprep.mubr.bf16.mxu0 %v3734_v20  ;;  %3589 = vmatprep.mubr.bf16.mxu1 %v3802_v57  ;;  %v3773_v20 = vld [vmem:[%s4180_s15 + $0x198] sm:$0xff]  }
  0xa7   : > { %3442 = vmatmul.mubr.bf16.gmra.mrb[24].mxu0 %v3735_v21  ;;  %3590 = vmatmul.mubr.bf16.gmra.mrb[24].mxu1 %v3803_v59  ;;  %v3774_v21 = vld [vmem:[%s4180_s15 + $0x1a0] sm:$0xff]  }
  0xa8   : > { %3445 = vmatprep.mubr.bf16.mxu0 %v3736_v22  ;;  %3593 = vmatprep.mubr.bf16.mxu1 %v3806_v61  ;;  %v3775_v22 = vld [vmem:[%s4180_s15 + $0x1a8] sm:$0xff]  }
  0xaf   : > { %3446 = vmatmul.mubr.bf16.gmra.mrb[28].mxu0 %v3737_v23  ;;  %3594 = vmatmul.mubr.bf16.gmra.mrb[28].mxu1 %v3807_v63  ;;  %v3776_v23 = vld [vmem:[%s4180_s15 + $0x1b0] sm:$0xff]   ;;  %v3788_v63 = vld [vmem:[%s4180_s15 + $0x1e0] sm:$0xff]  }
  0xb0   : > { %3449 = vmatprep.mubr.bf16.mxu0 %v3738_v24  ;;  %3597 = vmatprep.mubr.bf16.mxu1 %v3810_v1  ;;  %v4296_v24 = vld [vmem:[%s4771_s2] ss:$0 sm:$0xff] }
  0xb7   : > { %3450 = vmatmul.mubr.bf16.gmra.mrb[32].mxu0 %v3739_v25  ;;  %3598 = vmatmul.mubr.bf16.gmra.mrb[32].mxu1 %v3811_v3 }
  0xb8   : > { %3453 = vmatprep.mubr.bf16.mxu0 %v3740_v26  ;;  %3601 = vmatprep.mubr.bf16.mxu1 %v3814_v5 }
  0xbf   : > { %3454 = vmatmul.mubr.bf16.gmra.mrb[36].mxu0 %v3741_v27  ;;  %3602 = vmatmul.mubr.bf16.gmra.mrb[36].mxu1 %v3815_v7 }
  0xc0   : > { %3457 = vmatprep.mubr.bf16.mxu0 %v3742_v28  ;;  %3605 = vmatprep.mubr.bf16.mxu1 %v3816_v9  ;;  %v3777_v28 = vld [vmem:[%s4180_s15 + $0x1b8] sm:$0xff]  }
  0xc7   : > { %3458 = vmatmul.mubr.bf16.gmra.mrb[40].mxu0 %v3743_v29  ;;  %3606 = vmatmul.mubr.bf16.gmra.mrb[40].mxu1 %v3817_v11 }
  0xc8   : > { %3461 = vmatprep.mubr.bf16.mxu0 %v3744_v30  ;;  %3609 = vmatprep.mubr.bf16.mxu1 %v3818_v13 }
  0xcf   : > { %3462 = vmatmul.mubr.bf16.gmra.mrb[44].mxu0 %v3745_v31  ;;  %3610 = vmatmul.mubr.bf16.gmra.mrb[44].mxu1 %v3819_v15  ;;  %v3780_v31 = vld [vmem:[%s4180_s15 + $0x1c0] sm:$0xff]   ;;  %v3792_v15 = vld [vmem:[%s4180_s15 + $0x1f0] sm:$0xff]  }
  0xd0   : > { %3465 = vmatprep.mubr.bf16.mxu0 %v3746_v32  ;;  %2451 = vmatprep.mubr.bf16.mxu1 %v3822_v17 }
  0xd7   : > { %3466 = vmatmul.mubr.bf16.gmra.mrb[48].mxu0 %v3747_v34 }
  0xd8   : > { %3469 = vmatprep.mubr.bf16.mxu0 %v3748_v36 }
  0xdf   : > { %3470 = vmatmul.mubr.bf16.gmra.mrb[52].mxu0 %v3749_v38 }
  0xe0   : > { %3473 = vmatprep.mubr.bf16.mxu0 %v3750_v40 }
  0xe7   : > { %3474 = vmatmul.mubr.bf16.gmra.mrb[56].mxu0 %v3751_v42 }
  0xe8   : > { %3477 = vmatprep.mubr.bf16.mxu0 %v3752_v44  ;;  %v3781_v44 = vld [vmem:[%s4180_s15 + $0x1c8] sm:$0xff]  }
  0xef   : > { %3478 = vmatmul.mubr.bf16.gmra.mrb[60].mxu0 %v3753_v46 }
  0xf0   : > { %3481 = vmatprep.mubr.bf16.mxu0 %v3754_v48 }
  0xf7   : > { %3482 = vmatmul.mubr.bf16.gmra.mrb[64].mxu0 %v3755_v50 }
  0xf8   : > { %3485 = vmatprep.mubr.bf16.mxu0 %v3756_v52 }
  0xff   : > { %3486 = vmatmul.mubr.bf16.gmra.mrb[68].mxu0 %v3757_v54 }
 0x100   : > { %3489 = vmatprep.mubr.bf16.mxu0 %v3758_v56 }
 0x107   : > { %3490 = vmatmul.mubr.bf16.gmra.mrb[72].mxu0 %v3759_v58 }
 0x108   : > { %3493 = vmatprep.mubr.bf16.mxu0 %v3760_v60  ;;  %v3785_v60 = vld [vmem:[%s4180_s15 + $0x1d8] sm:$0xff]  }
 0x10f   : > { %3494 = vmatmul.mubr.bf16.gmra.mrb[76].mxu0 %v3761_v62 }
 0x110   : > { %3497 = vmatprep.mubr.bf16.mxu0 %v3762_v0 }
 0x117   : > { %3498 = vmatmul.mubr.bf16.gmra.mrb[80].mxu0 %v3763_v2 }
 0x118   : > { %3501 = vmatprep.mubr.bf16.mxu0 %v3764_v4 }
 0x11f   : > { %3502 = vmatmul.mubr.bf16.gmra.mrb[84].mxu0 %v3765_v6 }
 0x120   : > { %3505 = vmatprep.mubr.bf16.mxu0 %v3766_v8 }
 0x127   : > { %3506 = vmatmul.mubr.bf16.gmra.mrb[88].mxu0 %v3767_v10 }
 0x128   : > { %3509 = vmatprep.mubr.bf16.mxu0 %v3768_v12  ;;  %v3789_v12 = vld [vmem:[%s4180_s15 + $0x1e8] sm:$0xff]  }
 0x12f   : > { %3510 = vmatmul.mubr.bf16.gmra.mrb[92].mxu0 %v3769_v14 }
 0x130   : > { %3513 = vmatprep.mubr.bf16.mxu0 %v3770_v16 }
 0x137   : > { %3514 = vmatmul.mubr.bf16.gmra.mrb[96].mxu0 %v3771_v18 }
 0x138   : > { %3517 = vmatprep.mubr.bf16.mxu0 %v3772_v19 }
 0x13f   : > { %3518 = vmatmul.mubr.bf16.gmra.mrb[100].mxu0 %v3773_v20 }
 0x140   : > { %3521 = vmatprep.mubr.bf16.mxu0 %v3774_v21 }
 0x147   : > { %3522 = vmatmul.mubr.bf16.gmra.mrb[104].mxu0 %v3775_v22 }
 0x148   : > { %3525 = vmatprep.mubr.bf16.mxu0 %v3776_v23 }
 0x14a   : > { %v3419_v25 = vpop.f32.mrb[0].mxu0 }
 0x14b   : > { %v1186_v26 = vadd.f32 %v3419_v25, %v4296_v24  ;;  %v1177_v27 = vpop.f32.mrb[1].mxu0 }
 0x14c   : > { %v1178_v29 = vadd.f32 %v4296_v24, %v1177_v27  ;;  %v3420_v30 = vpop.f32.mrb[2].mxu0 }
 0x14d   : > { %v1189_v32 = vadd.f32 %v3420_v30, %v4296_v24  ;;  %v1180_v33 = vpop.f32.mrb[3].mxu0  ;;  %v1962_v35 = vmax.f32 %v1186_v26, 0.0 }
 0x14e   : > { %v1181_v34 = vadd.f32 %v4296_v24, %v1180_v33  ;;  %v1960_v37 = vmax.f32 %v1178_v29, 0.0  ;;  %v3793_v29 = vld [vmem:[%s4180_s15 + $0x1f8] sm:$0xff]  }
 0x14f   : > { %v1963_v36 = vmax.f32 %v1189_v32, 0.0  ;;  %3526 = vmatmul.mubr.bf16.gmra.mrb[108].mxu0 %v3777_v28  ;;  %v3796_v32 = vld [vmem:[%s4180_s15 + $0x200] sm:$0xff]  }
 0x150   : > { %v1961_v38 = vmax.f32 %v1181_v34, 0.0  ;;  %3529 = vmatprep.mubr.bf16.mxu0 %v3780_v31 }
 0x151   : > { %v4304_v39 = vpack.c.bf16 %v1963_v36, %v1962_v35 }
 0x152   : > { %v4306_v40 = vpack.c.bf16 %v1961_v38, %v1960_v37  ;;  %v3423_v41 = vpop.f32.mrb[4].mxu0 }
 0x153   : > { %v1202_v42 = vadd.f32 %v3423_v41, %v4296_v24  ;;  %v1193_v43 = vpop.f32.mrb[5].mxu0 }
 0x154   : > { %v1194_v45 = vadd.f32 %v4296_v24, %v1193_v43  ;;  %v3424_v46 = vpop.f32.mrb[6].mxu0 }
 0x155   : > { %v1205_v48 = vadd.f32 %v3424_v46, %v4296_v24  ;;  %v1196_v49 = vpop.f32.mrb[7].mxu0  ;;  %v1966_v51 = vmax.f32 %v1202_v42, 0.0 }
 0x156   : > { %v1197_v50 = vadd.f32 %v4296_v24, %v1196_v49  ;;  %v1964_v53 = vmax.f32 %v1194_v45, 0.0 }
 0x157   : > { %v1967_v52 = vmax.f32 %v1205_v48, 0.0  ;;  %3530 = vmatmul.mubr.bf16.gmra.mrb[112].mxu0 %v3781_v44 }
 0x158   : > { %v1965_v54 = vmax.f32 %v1197_v50, 0.0  ;;  %3533 = vmatprep.mubr.bf16.mxu0 %v3784_v47  ;;  %v3797_v47 = vld [vmem:[%s4180_s15 + $0x208] sm:$0xff]   ;;  %v3800_v50 = vld [vmem:[%s4180_s15 + $0x210] sm:$0xff]  }
 0x159   : > { %v4314_v55 = vpack.c.bf16 %v1967_v52, %v1966_v51 }
 0x15a   : > { %v4316_v56 = vpack.c.bf16 %v1965_v54, %v1964_v53  ;;  %v3427_v57 = vpop.f32.mrb[8].mxu0 }
 0x15b   : > { %v1218_v58 = vadd.f32 %v3427_v57, %v4296_v24  ;;  %v1209_v59 = vpop.f32.mrb[9].mxu0 }
 0x15c   : > { %v1210_v61 = vadd.f32 %v4296_v24, %v1209_v59  ;;  %v3428_v62 = vpop.f32.mrb[10].mxu0 }
 0x15d   : > { %v1221_v0 = vadd.f32 %v3428_v62, %v4296_v24  ;;  %v1212_v1 = vpop.f32.mrb[11].mxu0  ;;  %v1970_v3 = vmax.f32 %v1218_v58, 0.0 }
 0x15e   : > { %v1213_v2 = vadd.f32 %v4296_v24, %v1212_v1  ;;  %v1968_v5 = vmax.f32 %v1210_v61, 0.0  ;;  %v3801_v1 = vld [vmem:[%s4180_s15 + $0x218] sm:$0xff]  }
 0x15f   : > { %v1971_v4 = vmax.f32 %v1221_v0, 0.0  ;;  %3534 = vmatmul.mubr.bf16.gmra.mrb[116].mxu0 %v3785_v60 }
 0x160   : > { %v1969_v6 = vmax.f32 %v1213_v2, 0.0  ;;  %3537 = vmatprep.mubr.bf16.mxu0 %v3788_v63 }
 0x161   : > { %v4324_v7 = vpack.c.bf16 %v1971_v4, %v1970_v3  ;;  %v3804_v3 = vld [vmem:[%s4180_s15 + $0x220] sm:$0xff]  }
 0x162   : > { %v4326_v8 = vpack.c.bf16 %v1969_v6, %v1968_v5  ;;  %v3431_v9 = vpop.f32.mrb[12].mxu0 }
 0x163   : > { %v1234_v10 = vadd.f32 %v3431_v9, %v4296_v24  ;;  %v1225_v11 = vpop.f32.mrb[13].mxu0 }
 0x164   : > { %v1226_v13 = vadd.f32 %v4296_v24, %v1225_v11  ;;  %v3432_v14 = vpop.f32.mrb[14].mxu0 }
 0x165   : > { %v1237_v16 = vadd.f32 %v3432_v14, %v4296_v24  ;;  %v1228_v17 = vpop.f32.mrb[15].mxu0  ;;  %v1974_v19 = vmax.f32 %v1234_v10, 0.0 }
 0x166   : > { %v1229_v18 = vadd.f32 %v4296_v24, %v1228_v17  ;;  %v1972_v21 = vmax.f32 %v1226_v13, 0.0  ;;  %v3805_v17 = vld [vmem:[%s4180_s15 + $0x228] sm:$0xff]  }
 0x167   : > { %v1975_v20 = vmax.f32 %v1237_v16, 0.0  ;;  %3538 = vmatmul.mubr.bf16.gmra.mrb[120].mxu0 %v3789_v12 }
 0x168   : > { %v1973_v22 = vmax.f32 %v1229_v18, 0.0  ;;  %3541 = vmatprep.mubr.bf16.mxu0 %v3792_v15 }
 0x169   : > { %v4334_v23 = vpack.c.bf16 %v1975_v20, %v1974_v19  ;;  %v3808_v19 = vld [vmem:[%s4180_s15 + $0x230] sm:$0xff]  }
 0x16a   : > { %v4336_v25 = vpack.c.bf16 %v1973_v22, %v1972_v21  ;;  %v3435_v26 = vpop.f32.mrb[16].mxu0 }
 0x16b   : > { %v1250_v27 = vadd.f32 %v3435_v26, %v4296_v24  ;;  %v1241_v28 = vpop.f32.mrb[17].mxu0 }
 0x16c   : > { %v1242_v30 = vadd.f32 %v4296_v24, %v1241_v28  ;;  %v3436_v31 = vpop.f32.mrb[18].mxu0 }
 0x16d   : > { %v1253_v33 = vadd.f32 %v3436_v31, %v4296_v24  ;;  %v1244_v34 = vpop.f32.mrb[19].mxu0  ;;  %v1978_v36 = vmax.f32 %v1250_v27, 0.0 }
 0x16e   : > { %v1245_v35 = vadd.f32 %v4296_v24, %v1244_v34  ;;  %v1976_v38 = vmax.f32 %v1242_v30, 0.0  ;;  %v3809_v34 = vld [vmem:[%s4180_s15 + $0x238] sm:$0xff]  }
 0x16f   : > { %v1979_v37 = vmax.f32 %v1253_v33, 0.0  ;;  %3542 = vmatmul.mubr.bf16.gmra.mrb[124].mxu0 %v3793_v29 }
 0x170   : > { %v1977_v41 = vmax.f32 %v1245_v35, 0.0  ;;  %3545 = vmatprep.mubr.bf16.mxu0 %v3796_v32 }
 0x171   : > { %v2193_v42 = vpack.c.bf16 %v1979_v37, %v1978_v36  ;;  %v3812_v36 = vld [vmem:[%s4180_s15 + $0x240] sm:$0xff]  }
 0x172   : > { %v2192_v43 = vpack.c.bf16 %v1977_v41, %v1976_v38  ;;  %v3439_v44 = vpop.f32.mrb[20].mxu0 }
 0x173   : > { %v1266_v45 = vadd.f32 %v3439_v44, %v4296_v24  ;;  %v1257_v46 = vpop.f32.mrb[21].mxu0 }
 0x174   : > { %v1258_v48 = vadd.f32 %v4296_v24, %v1257_v46  ;;  %v3440_v49 = vpop.f32.mrb[22].mxu0  ;;  %3223 = vmatprep.subr.bf16.mxu1 %v2192_v43 }
 0x175   : > { %v1269_v51 = vadd.f32 %v3440_v49, %v4296_v24  ;;  %v1260_v52 = vpop.f32.mrb[23].mxu0  ;;  %3224 = vmatpush3.bf16.msra.mxu1 %v4306_v40  ;;  %v1982_v54 = vmax.f32 %v1266_v45, 0.0  ;;  %v3820_v45 = vld [vmem:[#allocation5] ss:$52 sps:$4 sm:$0xff]  }
 0x176   : > { %v1261_v53 = vadd.f32 %v4296_v24, %v1260_v52  ;;  %3225 = vmatprep.subr.bf16.mxu1 %v2193_v42  ;;  %v1980_v58 = vmax.f32 %v1258_v48, 0.0 }
 0x177   : > { %v1983_v57 = vmax.f32 %v1269_v51, 0.0  ;;  %3546 = vmatmul.mubr.bf16.gmra.mrb[128].mxu0 %v3797_v47  ;;  %v3823_v47 = vld [vmem:[#allocation5 + $0x6c] ss:$52 sps:$4 sm:$0xff]  }
 0x178   : > { %v1981_v59 = vmax.f32 %v1261_v53, 0.0  ;;  %3549 = vmatprep.mubr.bf16.mxu0 %v3800_v50  ;;  %v3813_v51 = vld [vmem:[%s4180_s15 + $0x248] sm:$0xff]   ;;  %s2877_s15 = sshll.u32 %s284_s27, 4  ;;  %s4720_s15 = int_to_ptr.vmem [resolvable:$true] %s2877_s15 }
 0x179   : > { %v2195_v60 = vpack.c.bf16 %v1983_v57, %v1982_v54  ;;  %3226 = vmatpush3.bf16.msra.mxu1 %v4304_v39  ;;  %s3921_s26 = scalar_lea.vmem %s4720_s15, 512  ;;  %p3928_p10 = scmp.lt.s32.totalorder %s4720_s15, %s3926_s8 }
 0x17a   : > { %v2194_v61 = vpack.c.bf16 %v1981_v59, %v1980_v58  ;;  %v3443_v62 = vpop.f32.mrb[24].mxu0  ;;  %p3922_p4 = scmp.ne.s32.totalorder %s4720_s15, %s3921_s26  ;;  %p3929_p13 = scmp.lt.s32.totalorder %s3927_s18, %s3921_s26 }
 0x17b   : > { %v1282_v63 = vadd.f32 %v3443_v62, %v4296_v24  ;;  %v1273_v0 = vpop.f32.mrb[25].mxu0  ;;  %v3825_v62 = vld [vmem:[#allocation5 + $0x68] ss:$52 sps:$4 sm:$0xff]  }
 0x17c   : > { %v1274_v40 = vadd.f32 %v4296_v24, %v1273_v0  ;;  %v3444_v2 = vpop.f32.mrb[26].mxu0  ;;  %3227 = vmatprep.subr.bf16.mxu1 %v2194_v61  ;;  %v3828_v0 = vld [vmem:[#allocation5 + $0xc] ss:$52 sps:$4 sm:$0xff]   ;;  %p3923_p6 = pnand %p3922_p4, %p4128_p12  ;;  %p3930_p3 = por %p3929_p13, %p3928_p10 }
 0x17d   : > { %v1285_v4 = vadd.f32 %v3444_v2, %v4296_v24  ;;  %v1276_v5 = vpop.f32.mrb[27].mxu0  ;;  %3228 = vmatpush3.bf16.msra.mxu1 %v4316_v56  ;;  %v1986_v39 = vmax.f32 %v1282_v63, 0.0 }
 0x17e   : > { %v1277_v6 = vadd.f32 %v4296_v24, %v1276_v5  ;;  %3229 = vmatprep.subr.bf16.mxu1 %v2195_v60  ;;  %v1984_v10 = vmax.f32 %v1274_v40, 0.0  ;;  %p3924_p8 = pneg %p3923_p6 }
 0x17f   : > { %v1987_v9 = vmax.f32 %v1285_v4, 0.0  ;;  %3550 = vmatmul.mubr.bf16.gmra.mrb[132].mxu0 %v3801_v1 }
 0x180   : > { %v1985_v11 = vmax.f32 %v1277_v6, 0.0  ;;  %3553 = vmatprep.mubr.bf16.mxu0 %v3804_v3  ;;  %p3931_p7 = pnand %p3930_p3, %p3924_p8 }
 0x181   : > { %v2197_v12 = vpack.c.bf16 %v1987_v9, %v1986_v39  ;;  %3230 = vmatpush3.bf16.msra.mxu1 %v4314_v55 }
 0x182   : > { %v2196_v13 = vpack.c.bf16 %v1985_v11, %v1984_v10  ;;  %v3447_v14 = vpop.f32.mrb[28].mxu0 }
 0x183   : > { %v1298_v15 = vadd.f32 %v3447_v14, %v4296_v24  ;;  %v1289_v16 = vpop.f32.mrb[29].mxu0 }
 0x184   : > { %v1290_v56 = vadd.f32 %v4296_v24, %v1289_v16  ;;  %v3448_v18 = vpop.f32.mrb[30].mxu0  ;;  %3231 = vmatprep.subr.bf16.mxu1 %v2196_v13 }
 0x185   : > { %v1301_v20 = vadd.f32 %v3448_v18, %v4296_v24  ;;  %v1292_v21 = vpop.f32.mrb[31].mxu0  ;;  %3232 = vmatpush3.bf16.msra.mxu1 %v4326_v8  ;;  %v1990_v55 = vmax.f32 %v1298_v15, 0.0 }
 0x186   : > { %v1293_v22 = vadd.f32 %v4296_v24, %v1292_v21  ;;  %3233 = vmatprep.subr.bf16.mxu1 %v2197_v12  ;;  %v1988_v27 = vmax.f32 %v1290_v56, 0.0 }
 0x187   : > { %v1991_v26 = vmax.f32 %v1301_v20, 0.0  ;;  %3554 = vmatmul.mubr.bf16.gmra.mrb[136].mxu0 %v3805_v17 }
 0x188   : > { %v1989_v28 = vmax.f32 %v1293_v22, 0.0  ;;  %3557 = vmatprep.mubr.bf16.mxu0 %v3808_v19 }
 0x189   : > { %v2199_v29 = vpack.c.bf16 %v1991_v26, %v1990_v55  ;;  %3234 = vmatpush3.bf16.msra.mxu1 %v4324_v7 }
 0x18a   : > { %v2198_v30 = vpack.c.bf16 %v1989_v28, %v1988_v27  ;;  %v3451_v31 = vpop.f32.mrb[32].mxu0 }
 0x18b   : > { %v1314_v32 = vadd.f32 %v3451_v31, %v4296_v24  ;;  %v1305_v33 = vpop.f32.mrb[33].mxu0 }
 0x18c   : > { %v1306_v8 = vadd.f32 %v4296_v24, %v1305_v33  ;;  %v3452_v35 = vpop.f32.mrb[34].mxu0  ;;  %3235 = vmatprep.subr.bf16.mxu1 %v2198_v30 }
 0x18d   : > { %v1317_v37 = vadd.f32 %v3452_v35, %v4296_v24  ;;  %v1308_v38 = vpop.f32.mrb[35].mxu0  ;;  %3236 = vmatpush3.bf16.msra.mxu1 %v4336_v25  ;;  %v1994_v7 = vmax.f32 %v1314_v32, 0.0 }
 0x18e   : > { %v1309_v41 = vadd.f32 %v4296_v24, %v1308_v38  ;;  %3237 = vmatprep.subr.bf16.mxu1 %v2199_v29  ;;  %v1992_v43 = vmax.f32 %v1306_v8, 0.0 }
 0x18f   : > { %v1995_v42 = vmax.f32 %v1317_v37, 0.0  ;;  %3558 = vmatmul.mubr.bf16.gmra.mrb[140].mxu0 %v3809_v34 }
 0x190   : > { %v1993_v44 = vmax.f32 %v1309_v41, 0.0  ;;  %3561 = vmatprep.mubr.bf16.mxu0 %v3812_v36 }
 0x191   : > { %v4375_v46 = vpack.c.bf16 %v1995_v42, %v1994_v7  ;;  %3238 = vmatpush3.bf16.msra.mxu1 %v4334_v23 }
 0x192   : > { %v4378_v48 = vpack.c.bf16 %v1993_v44, %v1992_v43  ;;  %v3455_v49 = vpop.f32.mrb[36].mxu0 }
 0x193   : > { %v1330_v25 = vadd.f32 %v3455_v49, %v4296_v24  ;;  %v1321_v50 = vpop.f32.mrb[37].mxu0 }
 0x194   : > { %v1322_v52 = vadd.f32 %v4296_v24, %v1321_v50  ;;  %v3456_v53 = vpop.f32.mrb[38].mxu0  ;;  %2452 = vmatmul.mubr.bf16.vlgmr.msra.gmra.mrb[48].mxu1 %v3820_v45 }
 0x195   : > { %v1333_v54 = vadd.f32 %v3456_v53, %v4296_v24  ;;  %v1324_v57 = vpop.f32.mrb[39].mxu0  ;;  %2459 = vmatprep.mubr.bf16.mxu1 %v3823_v47  ;;  %v1998_v59 = vmax.f32 %v1330_v25, 0.0 }
 0x196   : > { %v1325_v58 = vadd.f32 %v4296_v24, %v1324_v57  ;;  %v1996_v60 = vmax.f32 %v1322_v52, 0.0 }
 0x197   : > { %v1999_v23 = vmax.f32 %v1333_v54, 0.0  ;;  %3562 = vmatmul.mubr.bf16.gmra.mrb[144].mxu0 %v3813_v51 }
 0x198   : > { %v1997_v61 = vmax.f32 %v1325_v58, 0.0 }
 0x199   : > { %v4385_v63 = vpack.c.bf16 %v1999_v23, %v1998_v59 }
 0x19a   : > { %v4387_v1 = vpack.c.bf16 %v1997_v61, %v1996_v60  ;;  %v3459_v40 = vpop.f32.mrb[40].mxu0 }
 0x19b   : > { %v1346_v2 = vadd.f32 %v3459_v40, %v4296_v24  ;;  %v1337_v3 = vpop.f32.mrb[41].mxu0 }
 0x19c   : > { %v1338_v4 = vadd.f32 %v4296_v24, %v1337_v3  ;;  %v3460_v5 = vpop.f32.mrb[42].mxu0  ;;  %2460 = vmatmul.mubr.bf16.gmra.mrb[52].mxu1 %v3825_v62 }
 0x19d   : > { %v1349_v6 = vadd.f32 %v3460_v5, %v4296_v24  ;;  %v1340_v39 = vpop.f32.mrb[43].mxu0  ;;  %2500 = vmatprep.mubr.bf16.mxu1 %v3828_v0  ;;  %v2002_v10 = vmax.f32 %v1346_v2, 0.0 }
 0x19e   : > { %v1341_v9 = vadd.f32 %v4296_v24, %v1340_v39  ;;  %v2000_v12 = vmax.f32 %v1338_v4, 0.0 }
 0x19f   : > { %v2003_v11 = vmax.f32 %v1349_v6, 0.0 }
 0x1a0   : > { %v2001_v13 = vmax.f32 %v1341_v9, 0.0 }
 0x1a1   : > { %v4393_v14 = vpack.c.bf16 %v2003_v11, %v2002_v10 }
 0x1a2   : > { %v4395_v15 = vpack.c.bf16 %v2001_v13, %v2000_v12  ;;  %v3463_v16 = vpop.f32.mrb[44].mxu0 }
 0x1a3   : > { %v1362_v17 = vadd.f32 %v3463_v16, %v4296_v24  ;;  %v1353_v56 = vpop.f32.mrb[45].mxu0 }
 0x1a4   : > { %v1354_v18 = vadd.f32 %v4296_v24, %v1353_v56  ;;  %v3464_v19 = vpop.f32.mrb[46].mxu0 }
 0x1a5   : > { %v1365_v20 = vadd.f32 %v3464_v19, %v4296_v24  ;;  %v1356_v21 = vpop.f32.mrb[47].mxu0  ;;  %v2006_v55 = vmax.f32 %v1362_v17, 0.0 }
 0x1a6   : > { %v1357_v22 = vadd.f32 %v4296_v24, %v1356_v21  ;;  %v2004_v27 = vmax.f32 %v1354_v18, 0.0 }
 0x1a7   : > { %v2007_v26 = vmax.f32 %v1365_v20, 0.0 }
 0x1a8   : > { %v2005_v28 = vmax.f32 %v1357_v22, 0.0 }
 0x1a9   : > { %v4401_v29 = vpack.c.bf16 %v2007_v26, %v2006_v55 }
 0x1aa   : > { %v4403_v30 = vpack.c.bf16 %v2005_v28, %v2004_v27  ;;  %v3467_v31 = vpop.f32.mrb[48].mxu0 }
 0x1ab   : > { %v1378_v32 = vadd.f32 %v3467_v31, %v4296_v24  ;;  %v1369_v33 = vpop.f32.mrb[49].mxu0 }
 0x1ac   : > { %v1370_v34 = vadd.f32 %v4296_v24, %v1369_v33  ;;  %v3468_v8 = vpop.f32.mrb[50].mxu0 }
 0x1ad   : > { %v1381_v35 = vadd.f32 %v3468_v8, %v4296_v24  ;;  %v1372_v36 = vpop.f32.mrb[51].mxu0  ;;  %v2010_v38 = vmax.f32 %v1378_v32, 0.0 }
 0x1ae   : > { %v1373_v37 = vadd.f32 %v4296_v24, %v1372_v36  ;;  %v2008_v7 = vmax.f32 %v1370_v34, 0.0 }
 0x1af   : > { %v2011_v41 = vmax.f32 %v1381_v35, 0.0 }
 0x1b0   : > { %v2009_v42 = vmax.f32 %v1373_v37, 0.0 }
 0x1b1   : > { %v2209_v43 = vpack.c.bf16 %v2011_v41, %v2010_v38  ;;  %v3826_v38 = vld [vmem:[#allocation5 + $0x8] ss:$52 sps:$4 sm:$0xff]  }
 0x1b2   : > { %v2208_v44 = vpack.c.bf16 %v2009_v42, %v2008_v7  ;;  %v3471_v45 = vpop.f32.mrb[52].mxu0  ;;  %v3829_v42 = vld [vmem:[#allocation5 + $0x74] ss:$52 sps:$4 sm:$0xff]  }
 0x1b3   : > { %v1394_v47 = vadd.f32 %v3471_v45, %v4296_v24  ;;  %v1385_v49 = vpop.f32.mrb[53].mxu0 }
 0x1b4   : > { %v1386_v25 = vadd.f32 %v4296_v24, %v1385_v49  ;;  %v3472_v50 = vpop.f32.mrb[54].mxu0  ;;  %3251 = vmatprep.subr.bf16.mxu1 %v2208_v44 }
 0x1b5   : > { %v1397_v51 = vadd.f32 %v3472_v50, %v4296_v24  ;;  %v1388_v52 = vpop.f32.mrb[55].mxu0  ;;  %3252 = vmatpush3.bf16.msra.mxu1 %v4378_v48  ;;  %v2014_v54 = vmax.f32 %v1394_v47, 0.0 }
 0x1b6   : > { %v1389_v53 = vadd.f32 %v4296_v24, %v1388_v52  ;;  %3253 = vmatprep.subr.bf16.mxu1 %v2209_v43  ;;  %v2012_v58 = vmax.f32 %v1386_v25, 0.0 }
 0x1b7   : > { %v2015_v57 = vmax.f32 %v1397_v51, 0.0 }
 0x1b8   : > { %v2013_v59 = vmax.f32 %v1389_v53, 0.0 }
 0x1b9   : > { %v2211_v23 = vpack.c.bf16 %v2015_v57, %v2014_v54  ;;  %3254 = vmatpush3.bf16.msra.mxu1 %v4375_v46 }
 0x1ba   : > { %v2210_v60 = vpack.c.bf16 %v2013_v59, %v2012_v58  ;;  %v3475_v61 = vpop.f32.mrb[56].mxu0 }
 0x1bb   : > { %v1410_v62 = vadd.f32 %v3475_v61, %v4296_v24  ;;  %v1401_v0 = vpop.f32.mrb[57].mxu0 }
 0x1bc   : > { %v1402_v40 = vadd.f32 %v4296_v24, %v1401_v0  ;;  %v3476_v2 = vpop.f32.mrb[58].mxu0  ;;  %3255 = vmatprep.subr.bf16.mxu1 %v2210_v60 }
 0x1bd   : > { %v1413_v48 = vadd.f32 %v3476_v2, %v4296_v24  ;;  %v1404_v3 = vpop.f32.mrb[59].mxu0  ;;  %3256 = vmatpush3.bf16.msra.mxu1 %v4387_v1  ;;  %v2018_v5 = vmax.f32 %v1410_v62, 0.0 }
 0x1be   : > { %v1405_v4 = vadd.f32 %v4296_v24, %v1404_v3  ;;  %3257 = vmatprep.subr.bf16.mxu1 %v2211_v23  ;;  %v2016_v46 = vmax.f32 %v1402_v40, 0.0 }
 0x1bf   : > { %v2019_v6 = vmax.f32 %v1413_v48, 0.0 }
 0x1c0   : > { %v2017_v39 = vmax.f32 %v1405_v4, 0.0 }
 0x1c1   : > { %v2213_v9 = vpack.c.bf16 %v2019_v6, %v2018_v5  ;;  %3258 = vmatpush3.bf16.msra.mxu1 %v4385_v63  ;;  %v3831_v5 = vld [vmem:[#allocation5 + $0x70] ss:$52 sps:$4 sm:$0xff]  }
 0x1c2   : > { %v2212_v10 = vpack.c.bf16 %v2017_v39, %v2016_v46  ;;  %v3479_v11 = vpop.f32.mrb[60].mxu0  ;;  %v3834_v39 = vld [vmem:[#allocation5 + $0x14] ss:$52 sps:$4 sm:$0xff]  }
 0x1c3   : > { %v1426_v12 = vadd.f32 %v3479_v11, %v4296_v24  ;;  %v1417_v13 = vpop.f32.mrb[61].mxu0 }
 0x1c4   : > { %v1418_v16 = vadd.f32 %v4296_v24, %v1417_v13  ;;  %v3480_v17 = vpop.f32.mrb[62].mxu0  ;;  %3259 = vmatprep.subr.bf16.mxu1 %v2212_v10 }
 0x1c5   : > { %v1429_v1 = vadd.f32 %v3480_v17, %v4296_v24  ;;  %v1420_v56 = vpop.f32.mrb[63].mxu0  ;;  %3260 = vmatpush3.bf16.msra.mxu1 %v4395_v15  ;;  %v2022_v19 = vmax.f32 %v1426_v12, 0.0 }
 0x1c6   : > { %v1421_v18 = vadd.f32 %v4296_v24, %v1420_v56  ;;  %3261 = vmatprep.subr.bf16.mxu1 %v2213_v9  ;;  %v2020_v63 = vmax.f32 %v1418_v16, 0.0 }
 0x1c7   : > { %v2023_v20 = vmax.f32 %v1429_v1, 0.0 }
 0x1c8   : > { %v2021_v21 = vmax.f32 %v1421_v18, 0.0 }
 0x1c9   : > { %v2215_v22 = vpack.c.bf16 %v2023_v20, %v2022_v19  ;;  %3262 = vmatpush3.bf16.msra.mxu1 %v4393_v14  ;;  %v3567_v14 = vpop.f32.mrb[0].mxu1 }
 0x1ca   : > { %v2214_v55 = vpack.c.bf16 %v2021_v21, %v2020_v63  ;;  %v3483_v26 = vpop.f32.mrb[64].mxu0  ;;  %v1769_v41 = vpop.f32.mrb[1].mxu1 }
 0x1cb   : > { %v1442_v27 = vadd.f32 %v3483_v26, %v4296_v24  ;;  %v1433_v28 = vpop.f32.mrb[65].mxu0  ;;  %v3568_v43 = vpop.f32.mrb[2].mxu1  ;;  %v1770_v47 = vadd.f32 %v4296_v24, %v1769_v41 }
 0x1cc   : > { %v1434_v31 = vadd.f32 %v4296_v24, %v1433_v28  ;;  %v3484_v32 = vpop.f32.mrb[66].mxu0  ;;  %3263 = vmatprep.subr.bf16.mxu1 %v2214_v55  ;;  %v1781_v49 = vadd.f32 %v3568_v43, %v4296_v24  ;;  %v1772_v25 = vpop.f32.mrb[3].mxu1 }
 0x1cd   : > { %v1445_v15 = vadd.f32 %v3484_v32, %v4296_v24  ;;  %v1436_v33 = vpop.f32.mrb[67].mxu0  ;;  %3264 = vmatpush3.bf16.msra.mxu1 %v4403_v30  ;;  %v2026_v8 = vmax.f32 %v1442_v27, 0.0  ;;  %v1778_v30 = vadd.f32 %v3567_v14, %v4296_v24  ;;  %v1773_v52 = vadd.f32 %v4296_v24, %v1772_v25  ;;  %v3571_v48 = vpop.f32.mrb[4].mxu1 }
 0x1ce   : > { %v1437_v34 = vadd.f32 %v4296_v24, %v1436_v33  ;;  %3265 = vmatprep.subr.bf16.mxu1 %v2215_v22  ;;  %v2024_v36 = vmax.f32 %v1434_v31, 0.0  ;;  %v2108_v57 = vmax.f32 %v1770_v47, 0.0  ;;  %v2111_v58 = vmax.f32 %v1781_v49, 0.0  ;;  %v1785_v6 = vpop.f32.mrb[5].mxu1 }
 0x1cf   : > { %v2027_v35 = vmax.f32 %v1445_v15, 0.0  ;;  %v2110_v54 = vmax.f32 %v1778_v30, 0.0  ;;  %v2109_v60 = vmax.f32 %v1773_v52, 0.0  ;;  %v3572_v9 = vpop.f32.mrb[6].mxu1  ;;  %v1794_v12 = vadd.f32 %v3571_v48, %v4296_v24 }
 0x1d0   : > { %v2025_v37 = vmax.f32 %v1437_v34, 0.0  ;;  %v1786_v13 = vadd.f32 %v4296_v24, %v1785_v6  ;;  %v1797_v16 = vadd.f32 %v3572_v9, %v4296_v24  ;;  %v1788_v17 = vpop.f32.mrb[7].mxu1 }
 0x1d1   : > { %v4432_v7 = vpack.c.bf16 %v2027_v35, %v2026_v8  ;;  %3266 = vmatpush3.bf16.msra.mxu1 %v4401_v29  ;;  %v4445_v62 = vpack.c.bf16 %v2111_v58, %v2110_v54  ;;  %v4447_v2 = vpack.c.bf16 %v2109_v60, %v2108_v57  ;;  %v1789_v18 = vadd.f32 %v4296_v24, %v1788_v17  ;;  %v3575_v34 = vpop.f32.mrb[8].mxu1 }
 0x1d2   : > { %v4435_v44 = vpack.c.bf16 %v2025_v37, %v2024_v36  ;;  %v3487_v45 = vpop.f32.mrb[68].mxu0  ;;  %v2114_v63 = vmax.f32 %v1794_v12, 0.0  ;;  %v2112_v21 = vmax.f32 %v1786_v13, 0.0  ;;  %v2115_v22 = vmax.f32 %v1797_v16, 0.0  ;;  %v1801_v14 = vpop.f32.mrb[9].mxu1 }
 0x1d3   : > { %v1458_v50 = vadd.f32 %v3487_v45, %v4296_v24  ;;  %v1449_v51 = vpop.f32.mrb[69].mxu0  ;;  %v2113_v27 = vmax.f32 %v1789_v18, 0.0  ;;  %v3576_v37 = vpop.f32.mrb[10].mxu1  ;;  %v1802_v43 = vadd.f32 %v4296_v24, %v1801_v14 }
 0x1d4   : > { %v1450_v53 = vadd.f32 %v4296_v24, %v1449_v51  ;;  %v3488_v29 = vpop.f32.mrb[70].mxu0  ;;  %2501 = vmatmul.mubr.bf16.vlgmr.msra.gmra.mrb[56].mxu1 %v3826_v38  ;;  %v4461_v31 = vpack.c.bf16 %v2115_v22, %v2114_v63  ;;  %v1813_v45 = vadd.f32 %v3576_v37, %v4296_v24  ;;  %v1804_v30 = vpop.f32.mrb[11].mxu1 }
 0x1d5   : > { %v1461_v59 = vadd.f32 %v3488_v29, %v4296_v24  ;;  %v1452_v23 = vpop.f32.mrb[71].mxu0  ;;  %2508 = vmatprep.mubr.bf16.mxu1 %v3829_v42  ;;  %v2030_v0 = vmax.f32 %v1458_v50, 0.0  ;;  %v4463_v33 = vpack.c.bf16 %v2113_v27, %v2112_v21  ;;  %v1810_v42 = vadd.f32 %v3575_v34, %v4296_v24 }
 0x1d6   : > { %v1453_v61 = vadd.f32 %v4296_v24, %v1452_v23  ;;  %v2028_v3 = vmax.f32 %v1450_v53, 0.0  ;;  %v1805_v25 = vadd.f32 %v4296_v24, %v1804_v30  ;;  %v2116_v53 = vmax.f32 %v1802_v43, 0.0 }
 0x1d7   : > { %v2031_v40 = vmax.f32 %v1461_v59, 0.0  ;;  %v2118_v52 = vmax.f32 %v1810_v42, 0.0  ;;  %v2119_v29 = vmax.f32 %v1813_v45, 0.0 }
 0x1d8   : > { %v2029_v4 = vmax.f32 %v1453_v61, 0.0  ;;  %v2117_v58 = vmax.f32 %v1805_v25, 0.0 }
 0x1d9   : > { %v4449_v46 = vpack.c.bf16 %v2031_v40, %v2030_v0  ;;  %v4477_v23 = vpack.c.bf16 %v2119_v29, %v2118_v52  ;;  %v3579_v40 = vpop.f32.mrb[12].mxu1 }
 0x1da   : > { %v4451_v10 = vpack.c.bf16 %v2029_v4, %v2028_v3  ;;  %v3491_v11 = vpop.f32.mrb[72].mxu0  ;;  %v4479_v0 = vpack.c.bf16 %v2117_v58, %v2116_v53  ;;  %v1817_v4 = vpop.f32.mrb[13].mxu1 }
 0x1db   : > { %v1474_v1 = vadd.f32 %v3491_v11, %v4296_v24  ;;  %v1465_v56 = vpop.f32.mrb[73].mxu0  ;;  %v3580_v6 = vpop.f32.mrb[14].mxu1  ;;  %v1826_v11 = vadd.f32 %v3579_v40, %v4296_v24  ;;  %v1818_v12 = vadd.f32 %v4296_v24, %v1817_v4 }
 0x1dc   : > { %v1466_v19 = vadd.f32 %v4296_v24, %v1465_v56  ;;  %v3492_v20 = vpop.f32.mrb[74].mxu0  ;;  %2509 = vmatmul.mubr.bf16.gmra.mrb[60].mxu1 %v3831_v5  ;;  %v1829_v13 = vadd.f32 %v3580_v6, %v4296_v24  ;;  %v1820_v16 = vpop.f32.mrb[15].mxu1 }
 0x1dd   : > { %v1477_v55 = vadd.f32 %v3492_v20, %v4296_v24  ;;  %v1468_v26 = vpop.f32.mrb[75].mxu0  ;;  %2549 = vmatprep.mubr.bf16.mxu1 %v3834_v39  ;;  %v2034_v32 = vmax.f32 %v1474_v1, 0.0  ;;  %v1821_v56 = vadd.f32 %v4296_v24, %v1820_v16  ;;  %v2122_v20 = vmax.f32 %v1826_v11, 0.0 }
 0x1de   : > { %v1469_v28 = vadd.f32 %v4296_v24, %v1468_v26  ;;  %v2032_v8 = vmax.f32 %v1466_v19, 0.0  ;;  %v2120_v63 = vmax.f32 %v1818_v12, 0.0  ;;  %v2123_v21 = vmax.f32 %v1829_v13, 0.0 }
 0x1df   : > { %v2035_v15 = vmax.f32 %v1477_v55, 0.0  ;;  %v2121_v26 = vmax.f32 %v1821_v56, 0.0 }
 0x1e0   : > { %v2033_v35 = vmax.f32 %v1469_v28, 0.0  ;;  %v4493_v28 = vpack.c.bf16 %v2123_v21, %v2122_v20 }
 0x1e1   : > { %v4465_v36 = vpack.c.bf16 %v2035_v15, %v2034_v32  ;;  %v4495_v34 = vpack.c.bf16 %v2121_v26, %v2120_v63 }
 0x1e2   : > { %v4467_v38 = vpack.c.bf16 %v2033_v35, %v2032_v8  ;;  %v3495_v41 = vpop.f32.mrb[76].mxu0  ;;  %v3583_v8 = vpop.f32.mrb[16].mxu1 }
 0x1e3   : > { %v1490_v47 = vadd.f32 %v3495_v41, %v4296_v24  ;;  %v1481_v49 = vpop.f32.mrb[77].mxu0  ;;  %v1833_v37 = vpop.f32.mrb[17].mxu1  ;;  %v1842_v30 = vadd.f32 %v3583_v8, %v4296_v24 }
 0x1e4   : > { %v1482_v50 = vadd.f32 %v4296_v24, %v1481_v49  ;;  %v3496_v51 = vpop.f32.mrb[78].mxu0  ;;  %v3584_v42 = vpop.f32.mrb[18].mxu1 }
 0x1e5   : > { %v1493_v54 = vadd.f32 %v3496_v51, %v4296_v24  ;;  %v1484_v57 = vpop.f32.mrb[79].mxu0  ;;  %v2038_v60 = vmax.f32 %v1490_v47, 0.0  ;;  %v1834_v47 = vadd.f32 %v4296_v24, %v1833_v37  ;;  %v1845_v49 = vadd.f32 %v3584_v42, %v4296_v24  ;;  %v1836_v25 = vpop.f32.mrb[19].mxu1 }
 0x1e6   : > { %v1485_v59 = vadd.f32 %v4296_v24, %v1484_v57  ;;  %v2036_v48 = vmax.f32 %v1482_v50, 0.0  ;;  %v1837_v52 = vadd.f32 %v4296_v24, %v1836_v25 }
 0x1e7   : > { %v2039_v61 = vmax.f32 %v1493_v54, 0.0  ;;  %v2126_v54 = vmax.f32 %v1842_v30, 0.0  ;;  %v2124_v57 = vmax.f32 %v1834_v47, 0.0  ;;  %v2127_v58 = vmax.f32 %v1845_v49, 0.0 }
 0x1e8   : > { %v2037_v3 = vmax.f32 %v1485_v59, 0.0 }
 0x1e9   : > { %v4481_v5 = vpack.c.bf16 %v2039_v61, %v2038_v60  ;;  %v2125_v61 = vmax.f32 %v1837_v52, 0.0 }
 0x1ea   : > { %v4483_v39 = vpack.c.bf16 %v2037_v3, %v2036_v48  ;;  %v3499_v9 = vpop.f32.mrb[80].mxu0  ;;  %v4506_v48 = vpack.c.bf16 %v2127_v58, %v2126_v54  ;;  %v3587_v3 = vpop.f32.mrb[20].mxu1 }
 0x1eb   : > { %v1506_v17 = vadd.f32 %v3499_v9, %v4296_v24  ;;  %v1497_v1 = vpop.f32.mrb[81].mxu0  ;;  %v4508_v9 = vpack.c.bf16 %v2125_v61, %v2124_v57  ;;  %v1858_v11 = vadd.f32 %v3587_v3, %v4296_v24  ;;  %v1849_v12 = vpop.f32.mrb[21].mxu1 }
 0x1ec   : > { %v1498_v18 = vadd.f32 %v4296_v24, %v1497_v1  ;;  %v3500_v19 = vpop.f32.mrb[82].mxu0  ;;  %v3588_v1 = vpop.f32.mrb[22].mxu1 }
 0x1ed   : > { %v1509_v22 = vadd.f32 %v3500_v19, %v4296_v24  ;;  %v1500_v55 = vpop.f32.mrb[83].mxu0  ;;  %v2042_v32 = vmax.f32 %v1506_v17, 0.0  ;;  %v1850_v17 = vadd.f32 %v4296_v24, %v1849_v12  ;;  %v2130_v56 = vmax.f32 %v1858_v11, 0.0  ;;  %v1852_v19 = vpop.f32.mrb[23].mxu1 }
 0x1ee   : > { %v1501_v27 = vadd.f32 %v4296_v24, %v1500_v55  ;;  %v2040_v35 = vmax.f32 %v1498_v18, 0.0  ;;  %v1861_v18 = vadd.f32 %v3588_v1, %v4296_v24  ;;  %v3591_v42 = vpop.f32.mrb[24].mxu1 }
 0x1ef   : > { %v2043_v15 = vmax.f32 %v1509_v22, 0.0  ;;  %v2128_v21 = vmax.f32 %v1850_v17, 0.0  ;;  %v1853_v22 = vadd.f32 %v4296_v24, %v1852_v19  ;;  %v1874_v30 = vadd.f32 %v3591_v42, %v4296_v24  ;;  %v1865_v47 = vpop.f32.mrb[25].mxu1 }
 0x1f0   : > { %v2041_v14 = vmax.f32 %v1501_v27, 0.0  ;;  %v2131_v27 = vmax.f32 %v1861_v18, 0.0 }
 0x1f1   : > { %v2225_v41 = vpack.c.bf16 %v2043_v15, %v2042_v32  ;;  %v2129_v8 = vmax.f32 %v1853_v22, 0.0 }
 0x1f2   : > { %v2224_v43 = vpack.c.bf16 %v2041_v14, %v2040_v35  ;;  %v3503_v45 = vpop.f32.mrb[84].mxu0  ;;  %v4519_v14 = vpack.c.bf16 %v2131_v27, %v2130_v56 }
 0x1f3   : > { %v1522_v50 = vadd.f32 %v3503_v45, %v4296_v24  ;;  %v1513_v51 = vpop.f32.mrb[85].mxu0 }
 0x1f4   : > { %v1514_v53 = vadd.f32 %v4296_v24, %v1513_v51  ;;  %v3504_v29 = vpop.f32.mrb[86].mxu0  ;;  %3279 = vmatprep.subr.bf16.mxu1 %v2224_v43  ;;  %v3592_v51 = vpop.f32.mrb[26].mxu1 }
 0x1f5   : > { %v1525_v59 = vadd.f32 %v3504_v29, %v4296_v24  ;;  %v1516_v60 = vpop.f32.mrb[87].mxu0  ;;  %3280 = vmatpush3.bf16.msra.mxu1 %v4435_v44  ;;  %v2046_v4 = vmax.f32 %v1522_v50, 0.0  ;;  %v1866_v50 = vadd.f32 %v4296_v24, %v1865_v47  ;;  %v1868_v29 = vpop.f32.mrb[27].mxu1 }
 0x1f6   : > { %v1517_v40 = vadd.f32 %v4296_v24, %v1516_v60  ;;  %3281 = vmatprep.subr.bf16.mxu1 %v2225_v41  ;;  %v2044_v13 = vmax.f32 %v1514_v53, 0.0  ;;  %v4522_v41 = vpack.c.bf16 %v2129_v8, %v2128_v21  ;;  %v1877_v53 = vadd.f32 %v3592_v51, %v4296_v24  ;;  %v3595_v17 = vpop.f32.mrb[28].mxu1 }
 0x1f7   : > { %v2047_v6 = vmax.f32 %v1525_v59, 0.0  ;;  %v2132_v58 = vmax.f32 %v1866_v50, 0.0  ;;  %v4531_v59 = vld [vmem:[%s4771_s2] ss:$0 sm:$0xff]  ;;  %v1881_v18 = vpop.f32.mrb[29].mxu1 }
 0x1f8   : > { %v2045_v16 = vmax.f32 %v1517_v40, 0.0  ;;  %v1869_v60 = vadd.f32 %v4531_v59, %v1868_v29  ;;  %v2135_v3 = vmax.f32 %v1877_v53, 0.0  ;;  %v1890_v56 = vadd.f32 %v4531_v59, %v3595_v17  ;;  %v3596_v21 = vpop.f32.mrb[30].mxu1 }
 0x1f9   : > { %v2227_v44 = vpack.c.bf16 %v2047_v6, %v2046_v4  ;;  %3282 = vmatpush3.bf16.msra.mxu1 %v4432_v7 }
 0x1fa   : > { %v2226_v20 = vpack.c.bf16 %v2045_v16, %v2044_v13  ;;  %v3507_v63 = vpop.f32.mrb[88].mxu0 }
 0x1fb   : > { %v1538_v55 = vadd.f32 %v3507_v63, %v4296_v24  ;;  %v1529_v26 = vpop.f32.mrb[89].mxu0  ;;  %v1882_v63 = vadd.f32 %v4531_v59, %v1881_v18 }
 0x1fc   : > { %v1530_v32 = vadd.f32 %v4296_v24, %v1529_v26  ;;  %v3508_v15 = vpop.f32.mrb[90].mxu0  ;;  %3283 = vmatprep.subr.bf16.mxu1 %v2226_v20  ;;  %v1884_v26 = vpop.f32.mrb[31].mxu1 }
 0x1fd   : > { %v1541_v7 = vadd.f32 %v3508_v15, %v4296_v24  ;;  %v1532_v35 = vpop.f32.mrb[91].mxu0  ;;  %3284 = vmatpush3.bf16.msra.mxu1 %v4451_v10  ;;  %v2050_v43 = vmax.f32 %v1538_v55, 0.0  ;;  %v2134_v10 = vmax.f32 %v1874_v30, 0.0  ;;  %v1893_v55 = vadd.f32 %v4531_v59, %v3596_v21  ;;  %v3599_v50 = vpop.f32.mrb[32].mxu1 }
 0x1fe   : > { %v1533_v37 = vadd.f32 %v4296_v24, %v1532_v35  ;;  %3285 = vmatprep.subr.bf16.mxu1 %v2227_v44  ;;  %v2048_v49 = vmax.f32 %v1530_v32, 0.0  ;;  %v2133_v24 = vmax.f32 %v1869_v60, 0.0  ;;  %v2136_v15 = vmax.f32 %v1882_v63, 0.0  ;;  %v1897_v53 = vpop.f32.mrb[33].mxu1 }
 0x1ff   : > { %v2051_v45 = vmax.f32 %v1541_v7, 0.0  ;;  %v4538_v12 = vpack.c.bf16 %v2135_v3, %v2134_v10  ;;  %v1885_v8 = vadd.f32 %v4531_v59, %v1884_v26  ;;  %v1906_v10 = vadd.f32 %v4531_v59, %v3599_v50  ;;  %v3600_v60 = vpop.f32.mrb[34].mxu1 }
 0x200   : > { %v2049_v25 = vmax.f32 %v1533_v37, 0.0  ;;  %v4541_v16 = vpack.c.bf16 %v2133_v24, %v2132_v58  ;;  %v2139_v37 = vmax.f32 %v1893_v55, 0.0  ;;  %v1898_v58 = vadd.f32 %v4531_v59, %v1897_v53 }
 0x201   : > { %v2229_v52 = vpack.c.bf16 %v2051_v45, %v2050_v43  ;;  %3286 = vmatpush3.bf16.msra.mxu1 %v4449_v46  ;;  %v2137_v45 = vmax.f32 %v1885_v8, 0.0  ;;  %v1909_v3 = vadd.f32 %v4531_v59, %v3600_v60  ;;  %v3837_v8 = vld [vmem:[#allocation5 + $0x78] ss:$52 sps:$4 sm:$0xff]  }
 0x202   : > { %v2228_v54 = vpack.c.bf16 %v2049_v25, %v2048_v49  ;;  %v3511_v57 = vpop.f32.mrb[92].mxu0 }
 0x203   : > { %v1554_v61 = vadd.f32 %v4531_v59, %v3511_v57  ;;  %v1545_v40 = vpop.f32.mrb[93].mxu0  ;;  %v4555_v25 = vpack.c.bf16 %v2137_v45, %v2136_v15  ;;  %v3832_v57 = vld [vmem:[#allocation5 + $0x10] ss:$52 sps:$4 sm:$0xff]  }
 0x204   : > { %v1546_v46 = vadd.f32 %v4531_v59, %v1545_v40  ;;  %v3512_v4 = vpop.f32.mrb[94].mxu0  ;;  %3287 = vmatprep.subr.bf16.mxu1 %v2228_v54  ;;  %v2142_v40 = vmax.f32 %v1906_v10, 0.0 }
 0x205   : > { %v1557_v6 = vadd.f32 %v4531_v59, %v3512_v4  ;;  %v1548_v11 = vpop.f32.mrb[95].mxu0  ;;  %3288 = vmatpush3.bf16.msra.mxu1 %v4467_v38  ;;  %v2054_v1 = vmax.f32 %v1554_v61, 0.0  ;;  %v2138_v38 = vmax.f32 %v1890_v56, 0.0  ;;  %v3835_v61 = vld [vmem:[#allocation5 + $0x7c] ss:$52 sps:$4 sm:$0xff]  }
 0x206   : > { %v1549_v13 = vadd.f32 %v4531_v59, %v1548_v11  ;;  %3289 = vmatprep.subr.bf16.mxu1 %v2229_v52  ;;  %v2052_v19 = vmax.f32 %v1546_v46, 0.0  ;;  %v1900_v46 = vpop.f32.mrb[35].mxu1 }
 0x207   : > { %v2055_v44 = vmax.f32 %v1557_v6, 0.0  ;;  %v4552_v47 = vpack.c.bf16 %v2139_v37, %v2138_v38  ;;  %v2140_v6 = vmax.f32 %v1898_v58, 0.0  ;;  %v1901_v11 = vadd.f32 %v4531_v59, %v1900_v46 }
 0x208   : > { %v2053_v20 = vmax.f32 %v1549_v13, 0.0 }
 0x209   : > { %v2231_v22 = vpack.c.bf16 %v2055_v44, %v2054_v1  ;;  %3290 = vmatpush3.bf16.msra.mxu1 %v4465_v36  ;;  %v2143_v1 = vmax.f32 %v1909_v3, 0.0 }
 0x20a   : > { %v2230_v27 = vpack.c.bf16 %v2053_v20, %v2052_v19  ;;  %v3515_v32 = vpop.f32.mrb[96].mxu0 }
 0x20b   : > { %v1570_v7 = vadd.f32 %v4531_v59, %v3515_v32  ;;  %v1561_v35 = vpop.f32.mrb[97].mxu0  ;;  %v4569_v20 = vpack.c.bf16 %v2143_v1, %v2142_v40 }
 0x20c   : > { %v1562_v42 = vadd.f32 %v4531_v59, %v1561_v35  ;;  %v3516_v43 = vpop.f32.mrb[98].mxu0  ;;  %3291 = vmatprep.subr.bf16.mxu1 %v2230_v27 }
 0x20d   : > { %v1573_v36 = vadd.f32 %v4531_v59, %v3516_v43  ;;  %v1564_v30 = vpop.f32.mrb[99].mxu0  ;;  %3292 = vmatpush3.bf16.msra.mxu1 %v4483_v39  ;;  %v2058_v51 = vmax.f32 %v1570_v7, 0.0 }
 0x20e   : > { %v1565_v49 = vadd.f32 %v4531_v59, %v1564_v30  ;;  %3293 = vmatprep.subr.bf16.mxu1 %v2231_v22  ;;  %v2056_v29 = vmax.f32 %v1562_v42, 0.0  ;;  %v3603_v22 = vpop.f32.mrb[36].mxu1  ;;  %v3840_v42 = vld [vmem:[#allocation5 + $0x1c] ss:$52 sps:$4 sm:$0xff]  }
 0x20f   : > { %v2059_v52 = vmax.f32 %v1573_v36, 0.0  ;;  %v1922_v26 = vadd.f32 %v4531_v59, %v3603_v22  ;;  %v1913_v27 = vpop.f32.mrb[37].mxu1 }
 0x210   : > { %v2057_v54 = vmax.f32 %v1565_v49, 0.0  ;;  %v1914_v7 = vadd.f32 %v4531_v59, %v1913_v27  ;;  %v3604_v35 = vpop.f32.mrb[38].mxu1 }
 0x211   : > { %v4559_v39 = vpack.c.bf16 %v2059_v52, %v2058_v51  ;;  %3294 = vmatpush3.bf16.msra.mxu1 %v4481_v5  ;;  %v2141_v5 = vmax.f32 %v1901_v11, 0.0  ;;  %v2146_v43 = vmax.f32 %v1922_v26, 0.0  ;;  %v1925_v45 = vadd.f32 %v4531_v59, %v3604_v35  ;;  %v1916_v36 = vpop.f32.mrb[39].mxu1 }
 0x212   : > { %v4563_v4 = vpack.c.bf16 %v2057_v54, %v2056_v29  ;;  %v3519_v24 = vpop.f32.mrb[100].mxu0  ;;  %v2144_v50 = vmax.f32 %v1914_v7, 0.0  ;;  %v1917_v51 = vadd.f32 %v4531_v59, %v1916_v36  ;;  %v3607_v46 = vpop.f32.mrb[40].mxu1 }
 0x213   : > { %v1586_v13 = vadd.f32 %v4531_v59, %v3519_v24  ;;  %v1577_v17 = vpop.f32.mrb[101].mxu0  ;;  %v4572_v21 = vpack.c.bf16 %v2141_v5, %v2140_v6  ;;  %v2147_v53 = vmax.f32 %v1925_v45, 0.0  ;;  %v1938_v11 = vadd.f32 %v4531_v59, %v3607_v46 }
 0x214   : > { %v1578_v44 = vadd.f32 %v4531_v59, %v1577_v17  ;;  %v3520_v56 = vpop.f32.mrb[102].mxu0  ;;  %2550 = vmatmul.mubr.bf16.vlgmr.msra.gmra.mrb[64].mxu1 %v3832_v57  ;;  %v2145_v57 = vmax.f32 %v1917_v51, 0.0 }
 0x215   : > { %v1589_v18 = vadd.f32 %v4531_v59, %v3520_v56  ;;  %v1580_v19 = vpop.f32.mrb[103].mxu0  ;;  %2557 = vmatprep.mubr.bf16.mxu1 %v3835_v61  ;;  %v2062_v38 = vmax.f32 %v1586_v13, 0.0  ;;  %v4585_v61 = vpack.c.bf16 %v2147_v53, %v2146_v43  ;;  %v1929_v13 = vpop.f32.mrb[41].mxu1 }
 0x216   : > { %v1581_v63 = vadd.f32 %v4531_v59, %v1580_v19  ;;  %v2060_v32 = vmax.f32 %v1578_v44, 0.0  ;;  %v4588_v3 = vpack.c.bf16 %v2145_v57, %v2144_v50  ;;  %v1930_v44 = vadd.f32 %v4531_v59, %v1929_v13  ;;  %v3608_v56 = vpop.f32.mrb[42].mxu1 }
 0x217   : > { %v2063_v55 = vmax.f32 %v1589_v18, 0.0  ;;  %v2150_v18 = vmax.f32 %v1938_v11, 0.0  ;;  %v1941_v19 = vadd.f32 %v4531_v59, %v3608_v56 }
 0x218   : > { %v2061_v15 = vmax.f32 %v1581_v63, 0.0  ;;  %v1932_v63 = vpop.f32.mrb[43].mxu1 }
 0x219   : > { %v4576_v37 = vpack.c.bf16 %v2063_v55, %v2062_v38  ;;  %v2148_v55 = vmax.f32 %v1930_v44, 0.0  ;;  %v1933_v26 = vadd.f32 %v4531_v59, %v1932_v63  ;;  %v3611_v50 = vpop.f32.mrb[44].mxu1 }
 0x21a   : > { %v4579_v30 = vpack.c.bf16 %v2061_v15, %v2060_v32  ;;  %v3523_v49 = vpop.f32.mrb[104].mxu0  ;;  %v2151_v15 = vmax.f32 %v1941_v19, 0.0  ;;  %v1945_v53 = vpop.f32.mrb[45].mxu1 }
 0x21b   : > { %v1602_v52 = vadd.f32 %v4531_v59, %v3523_v49  ;;  %v1593_v10 = vpop.f32.mrb[105].mxu0  ;;  %v2149_v35 = vmax.f32 %v1933_v26, 0.0  ;;  %v1946_v57 = vadd.f32 %v4531_v59, %v1945_v53 }
 0x21c   : > { %v1594_v29 = vadd.f32 %v4531_v59, %v1593_v10  ;;  %v3524_v54 = vpop.f32.mrb[106].mxu0  ;;  %2558 = vmatmul.mubr.bf16.gmra.mrb[68].mxu1 %v3837_v8  ;;  %v4601_v45 = vpack.c.bf16 %v2151_v15, %v2150_v18  ;;  %v1954_v10 = vadd.f32 %v4531_v59, %v3611_v50 }
 0x21d   : > { %v1605_v58 = vadd.f32 %v4531_v59, %v3524_v54  ;;  %v1596_v60 = vpop.f32.mrb[107].mxu0  ;;  %2598 = vmatprep.mubr.bf16.mxu1 %v3840_v42  ;;  %v2066_v24 = vmax.f32 %v1602_v52, 0.0  ;;  %v4604_v49 = vpack.c.bf16 %v2149_v35, %v2148_v55  ;;  %v2152_v13 = vmax.f32 %v1946_v57, 0.0 }
 0x21e   : > { %v1597_v40 = vadd.f32 %v4531_v59, %v1596_v60  ;;  %v2064_v17 = vmax.f32 %v1594_v29, 0.0 }
 0x21f   : > { %v2067_v6 = vmax.f32 %v1605_v58, 0.0  ;;  %v3612_v58 = vpop.f32.mrb[46].mxu1 }
 0x220   : > { %v2065_v1 = vmax.f32 %v1597_v40, 0.0  ;;  %v2154_v40 = vmax.f32 %v1954_v10, 0.0  ;;  %v1957_v46 = vadd.f32 %v4531_v59, %v3612_v58 }
 0x221   : > { %v4592_v5 = vpack.c.bf16 %v2067_v6, %v2066_v24  ;;  %v1948_v24 = vpop.f32.mrb[47].mxu1 }
 0x222   : > { %v4595_v22 = vpack.c.bf16 %v2065_v1, %v2064_v17  ;;  %v3527_v38 = vpop.f32.mrb[108].mxu0  ;;  %v1949_v17 = vadd.f32 %v4531_v59, %v1948_v24  ;;  %v2155_v56 = vmax.f32 %v1957_v46, 0.0 }
 0x223   : > { %v1618_v27 = vadd.f32 %v4531_v59, %v3527_v38  ;;  %v1609_v32 = vpop.f32.mrb[109].mxu0 }
 0x224   : > { %v1610_v8 = vadd.f32 %v4531_v59, %v1609_v32  ;;  %v3528_v7 = vpop.f32.mrb[110].mxu0  ;;  %v2153_v63 = vmax.f32 %v1949_v17, 0.0  ;;  %v4617_v26 = vpack.c.bf16 %v2155_v56, %v2154_v40 }
 0x225   : > { %v1621_v42 = vadd.f32 %v4531_v59, %v3528_v7  ;;  %v1612_v43 = vpop.f32.mrb[111].mxu0  ;;  %v2070_v51 = vmax.f32 %v1618_v27, 0.0 }
 0x226   : > { %v1613_v36 = vadd.f32 %v4531_v59, %v1612_v43  ;;  %v2068_v29 = vmax.f32 %v1610_v8, 0.0  ;;  %v4620_v32 = vpack.c.bf16 %v2153_v63, %v2152_v13 }
 0x227   : > { %v2071_v52 = vmax.f32 %v1621_v42, 0.0 }
 0x228   : > { %v2069_v54 = vmax.f32 %v1613_v36, 0.0 }
 0x229   : > { %v4608_v60 = vpack.c.bf16 %v2071_v52, %v2070_v51 }
 0x22a   : > { %v4611_v6 = vpack.c.bf16 %v2069_v54, %v2068_v29  ;;  %v3531_v11 = vpop.f32.mrb[112].mxu0 }
 0x22b   : > { %v1634_v1 = vadd.f32 %v4531_v59, %v3531_v11  ;;  %v1625_v44 = vpop.f32.mrb[113].mxu0 }
 0x22c   : > { %v1626_v18 = vadd.f32 %v4531_v59, %v1625_v44  ;;  %v3532_v19 = vpop.f32.mrb[114].mxu0 }
 0x22d   : > { %v1637_v38 = vadd.f32 %v4531_v59, %v3532_v19  ;;  %v1628_v55 = vpop.f32.mrb[115].mxu0  ;;  %v2074_v15 = vmax.f32 %v1634_v1, 0.0 }
 0x22e   : > { %v1629_v27 = vadd.f32 %v4531_v59, %v1628_v55  ;;  %v2072_v7 = vmax.f32 %v1626_v18, 0.0 }
 0x22f   : > { %v2075_v8 = vmax.f32 %v1637_v38, 0.0 }
 0x230   : > { %v2073_v35 = vmax.f32 %v1629_v27, 0.0 }
 0x231   : > { %v2241_v42 = vpack.c.bf16 %v2075_v8, %v2074_v15 }
 0x232   : > { %v2240_v43 = vpack.c.bf16 %v2073_v35, %v2072_v7  ;;  %v3535_v36 = vpop.f32.mrb[116].mxu0 }
 0x233   : > { %v1650_v50 = vadd.f32 %v4531_v59, %v3535_v36  ;;  %v1641_v51 = vpop.f32.mrb[117].mxu0 }
 0x234   : > { %v1642_v52 = vadd.f32 %v4531_v59, %v1641_v51  ;;  %v3536_v10 = vpop.f32.mrb[118].mxu0  ;;  %3307 = vmatprep.subr.bf16.mxu1 %v2240_v43 }
 0x235   : > { %v1653_v53 = vadd.f32 %v4531_v59, %v3536_v10  ;;  %v1644_v29 = vpop.f32.mrb[119].mxu0  ;;  %3308 = vmatpush3.bf16.msra.mxu1 %v4563_v4  ;;  %v2078_v57 = vmax.f32 %v1650_v50, 0.0 }
 0x236   : > { %v1645_v54 = vadd.f32 %v4531_v59, %v1644_v29  ;;  %3309 = vmatprep.subr.bf16.mxu1 %v2241_v42  ;;  %v2076_v40 = vmax.f32 %v1642_v52, 0.0 }
 0x237   : > { %v2079_v58 = vmax.f32 %v1653_v53, 0.0 }
 0x238   : > { %v2077_v46 = vmax.f32 %v1645_v54, 0.0 }
 0x239   : > { %v2243_v24 = vpack.c.bf16 %v2079_v58, %v2078_v57  ;;  %3310 = vmatpush3.bf16.msra.mxu1 %v4559_v39 }
 0x23a   : > { %v2242_v11 = vpack.c.bf16 %v2077_v46, %v2076_v40  ;;  %v3539_v13 = vpop.f32.mrb[120].mxu0 }
 0x23b   : > { %v1666_v17 = vadd.f32 %v4531_v59, %v3539_v13  ;;  %v1657_v1 = vpop.f32.mrb[121].mxu0 }
 0x23c   : > { %v1658_v44 = vadd.f32 %v4531_v59, %v1657_v1  ;;  %v3540_v56 = vpop.f32.mrb[122].mxu0  ;;  %3311 = vmatprep.subr.bf16.mxu1 %v2242_v11 }
 0x23d   : > { %v1669_v4 = vadd.f32 %v4531_v59, %v3540_v56  ;;  %v1660_v18 = vpop.f32.mrb[123].mxu0  ;;  %3312 = vmatpush3.bf16.msra.mxu1 %v4579_v30  ;;  %v2082_v63 = vmax.f32 %v1666_v17, 0.0 }
 0x23e   : > { %v1661_v19 = vadd.f32 %v4531_v59, %v1660_v18  ;;  %3313 = vmatprep.subr.bf16.mxu1 %v2243_v24  ;;  %v2080_v39 = vmax.f32 %v1658_v44, 0.0  ;;  %v3838_v44 = vld [vmem:[#allocation5 + $0x18] ss:$52 sps:$4 sm:$0xff]  }
 0x23f   : > { %v2083_v38 = vmax.f32 %v1669_v4, 0.0  ;;  %v3841_v4 = vld [vmem:[#allocation5 + $0x84] ss:$52 sps:$4 sm:$0xff]  }
 0x240   : > { %v2081_v55 = vmax.f32 %v1661_v19, 0.0 }
 0x241   : > { %v2245_v27 = vpack.c.bf16 %v2083_v38, %v2082_v63  ;;  %3314 = vmatpush3.bf16.msra.mxu1 %v4576_v37 }
 0x242   : > { %v2244_v15 = vpack.c.bf16 %v2081_v55, %v2080_v39  ;;  %v3543_v8 = vpop.f32.mrb[124].mxu0 }
 0x243   : > { %v1682_v7 = vadd.f32 %v4531_v59, %v3543_v8  ;;  %v1673_v35 = vpop.f32.mrb[125].mxu0 }
 0x244   : > { %v1674_v42 = vadd.f32 %v4531_v59, %v1673_v35  ;;  %v3544_v43 = vpop.f32.mrb[126].mxu0  ;;  %3315 = vmatprep.subr.bf16.mxu1 %v2244_v15 }
 0x245   : > { %v1685_v30 = vadd.f32 %v4531_v59, %v3544_v43  ;;  %v1676_v36 = vpop.f32.mrb[127].mxu0  ;;  %3316 = vmatpush3.bf16.msra.mxu1 %v4595_v22  ;;  %v2086_v51 = vmax.f32 %v1682_v7, 0.0 }
 0x246   : > { %v1677_v50 = vadd.f32 %v4531_v59, %v1676_v36  ;;  %3317 = vmatprep.subr.bf16.mxu1 %v2245_v27  ;;  %v2084_v37 = vmax.f32 %v1674_v42, 0.0  ;;  %v3843_v42 = vld [vmem:[#allocation5 + $0x80] ss:$52 sps:$4 sm:$0xff]  }
 0x247   : > { %v2087_v52 = vmax.f32 %v1685_v30, 0.0  ;;  %v3846_v30 = vld [vmem:[#allocation5 + $0x24] ss:$52 sps:$4 sm:$0xff]  }
 0x248   : > { %v2085_v10 = vmax.f32 %v1677_v50, 0.0 }
 0x249   : > { %v2247_v53 = vpack.c.bf16 %v2087_v52, %v2086_v51  ;;  %3318 = vmatpush3.bf16.msra.mxu1 %v4592_v5 }
 0x24a   : > { %v2246_v29 = vpack.c.bf16 %v2085_v10, %v2084_v37  ;;  %v3547_v54 = vpop.f32.mrb[128].mxu0 }
 0x24b   : > { %v1698_v57 = vadd.f32 %v4531_v59, %v3547_v54  ;;  %v1689_v58 = vpop.f32.mrb[129].mxu0 }
 0x24c   : > { %v1690_v40 = vadd.f32 %v4531_v59, %v1689_v58  ;;  %v3548_v46 = vpop.f32.mrb[130].mxu0  ;;  %3319 = vmatprep.subr.bf16.mxu1 %v2246_v29 }
 0x24d   : > { %v1701_v22 = vadd.f32 %v4531_v59, %v3548_v46  ;;  %v1692_v24 = vpop.f32.mrb[131].mxu0  ;;  %3320 = vmatpush3.bf16.msra.mxu1 %v4611_v6  ;;  %v2090_v13 = vmax.f32 %v1698_v57, 0.0 }
 0x24e   : > { %v1693_v11 = vadd.f32 %v4531_v59, %v1692_v24  ;;  %3321 = vmatprep.subr.bf16.mxu1 %v2247_v53  ;;  %v2088_v5 = vmax.f32 %v1690_v40, 0.0 }
 0x24f   : > { %v2091_v17 = vmax.f32 %v1701_v22, 0.0 }
 0x250   : > { %v2089_v1 = vmax.f32 %v1693_v11, 0.0 }
 0x251   : > { %v4645_v56 = vpack.c.bf16 %v2091_v17, %v2090_v13  ;;  %3322 = vmatpush3.bf16.msra.mxu1 %v4608_v60 }
 0x252   : > { %v4648_v18 = vpack.c.bf16 %v2089_v1, %v2088_v5  ;;  %v3551_v19 = vpop.f32.mrb[132].mxu0 }
 0x253   : > { %v1714_v63 = vadd.f32 %v4531_v59, %v3551_v19  ;;  %v1705_v38 = vpop.f32.mrb[133].mxu0 }
 0x254   : > { %v1706_v6 = vadd.f32 %v4531_v59, %v1705_v38  ;;  %v3552_v39 = vpop.f32.mrb[134].mxu0  ;;  %2599 = vmatmul.mubr.bf16.vlgmr.msra.gmra.mrb[72].mxu1 %v3838_v44 }
 0x255   : > { %v1717_v55 = vadd.f32 %v4531_v59, %v3552_v39  ;;  %v1708_v27 = vpop.f32.mrb[135].mxu0  ;;  %2606 = vmatprep.mubr.bf16.mxu1 %v3841_v4  ;;  %v2094_v8 = vmax.f32 %v1714_v63, 0.0 }
 0x256   : > { %v1709_v15 = vadd.f32 %v4531_v59, %v1708_v27  ;;  %v2092_v60 = vmax.f32 %v1706_v6, 0.0 }
 0x257   : > { %v2095_v7 = vmax.f32 %v1717_v55, 0.0 }
 0x258   : > { %v2093_v35 = vmax.f32 %v1709_v15, 0.0 }
 0x259   : > { %v4654_v43 = vpack.c.bf16 %v2095_v7, %v2094_v8 }
 0x25a   : > { %v2250_v36 = vpack.c.bf16 %v2093_v35, %v2092_v60  ;;  %v3555_v50 = vpop.f32.mrb[136].mxu0 }
 0x25b   : > { %v1730_v51 = vadd.f32 %v4531_v59, %v3555_v50  ;;  %v1721_v52 = vpop.f32.mrb[137].mxu0 }
 0x25c   : > { %v1722_v37 = vadd.f32 %v4531_v59, %v1721_v52  ;;  %v3556_v10 = vpop.f32.mrb[138].mxu0  ;;  %2607 = vmatmul.mubr.bf16.gmra.mrb[76].mxu1 %v3843_v42 }
 0x25d   : > { %v1733_v53 = vadd.f32 %v4531_v59, %v3556_v10  ;;  %v1724_v29 = vpop.f32.mrb[139].mxu0  ;;  %2647 = vmatprep.mubr.bf16.mxu1 %v3846_v30  ;;  %v2098_v57 = vmax.f32 %v1730_v51, 0.0 }
 0x25e   : > { %v1725_v54 = vadd.f32 %v4531_v59, %v1724_v29  ;;  %v2096_v40 = vmax.f32 %v1722_v37, 0.0 }
 0x25f   : > { %v2099_v58 = vmax.f32 %v1733_v53, 0.0 }
 0x260   : > { %v2097_v46 = vmax.f32 %v1725_v54, 0.0 }
 0x261   : > { %v2253_v22 = vpack.c.bf16 %v2099_v58, %v2098_v57 }
 0x262   : > { %v2252_v24 = vpack.c.bf16 %v2097_v46, %v2096_v40  ;;  %v3559_v11 = vpop.f32.mrb[140].mxu0 }
 0x263   : > { %v1746_v13 = vadd.f32 %v4531_v59, %v3559_v11  ;;  %v1737_v17 = vpop.f32.mrb[141].mxu0 }
 0x264   : > { %v1738_v5 = vadd.f32 %v4531_v59, %v1737_v17  ;;  %v3560_v1 = vpop.f32.mrb[142].mxu0 }
 0x265   : > { %v1749_v44 = vadd.f32 %v4531_v59, %v3560_v1  ;;  %v1740_v4 = vpop.f32.mrb[143].mxu0  ;;  %v2102_v63 = vmax.f32 %v1746_v13, 0.0 }
 0x266   : > { %v1741_v19 = vadd.f32 %v4531_v59, %v1740_v4  ;;  %v2100_v39 = vmax.f32 %v1738_v5, 0.0 }
 0x267   : > { %v2103_v38 = vmax.f32 %v1749_v44, 0.0  ;;  %v3239_v6 = vpop.f32.mrb[48].mxu1 }
 0x268   : > { %v2101_v55 = vmax.f32 %v1741_v19, 0.0  ;;  %v3240_v27 = vpop.f32.mrb[49].mxu1 }
 0x269   : > { %v2255_v15 = vpack.c.bf16 %v2103_v38, %v2102_v63  ;;  %v4664_v8 = vadd.f32 %v3240_v27, %v3239_v6  ;;  %v3242_v7 = vpop.f32.mrb[50].mxu1 }
 0x26a   : > { %v2254_v60 = vpack.c.bf16 %v2101_v55, %v2100_v39  ;;  %v3563_v35 = vpop.f32.mrb[144].mxu0  ;;  %v3243_v42 = vpop.f32.mrb[51].mxu1 }
 0x26b   : > { %v1762_v30 = vadd.f32 %v4531_v59, %v3563_v35  ;;  %v1753_v50 = vpop.f32.mrb[145].mxu0  ;;  %v4667_v51 = vadd.f32 %v3243_v42, %v3242_v7  ;;  %v3859_v35 = vld [vmem:[%s4773_s4 + $0x8] sm:$0xff]   ;;  %v3860_v42 = vld [vmem:[%s4773_s4 + $0x10] sm:$0xff]  }
 0x26c   : > { %v1754_v52 = vadd.f32 %v4531_v59, %v1753_v50  ;;  %v3564_v37 = vpop.f32.mrb[146].mxu0 }
 0x26d   : > { %v1765_v10 = vadd.f32 %v4531_v59, %v3564_v37  ;;  %v1756_v53 = vpop.f32.mrb[147].mxu0  ;;  %v2106_v54 = vmax.f32 %v1762_v30, 0.0  ;;  %v3861_v30 = vld [vmem:[%s4773_s4 + $0x18] sm:$0xff]  }
 0x26e   : > { %v1757_v29 = vadd.f32 %v4531_v59, %v1756_v53  ;;  %v2104_v40 = vmax.f32 %v1754_v52, 0.0  ;;  %v3844_v59 = vld [vmem:[#allocation5 + $0x20] ss:$52 sps:$4 sm:$0xff]  }
 0x26f   : > { %v2107_v57 = vmax.f32 %v1765_v10, 0.0  ;;  %v3245_v58 = vpop.f32.mrb[52].mxu1 }
 0x270   : > { %v2105_v46 = vmax.f32 %v1757_v29, 0.0  ;;  %v3246_v11 = vpop.f32.mrb[53].mxu1 }
 0x271   : > { %v2257_v13 = vpack.c.bf16 %v2107_v57, %v2106_v54  ;;  %v3247_v17 = vadd.f32 %v3246_v11, %v3245_v58  ;;  %v3248_v5 = vpop.f32.mrb[54].mxu1 }
 0x272   : > { %v2256_v1 = vpack.c.bf16 %v2105_v46, %v2104_v40  ;;  %v3249_v44 = vpop.f32.mrb[55].mxu1 }
 0x273   : > { %v3250_v4 = vadd.f32 %v3249_v44, %v3248_v5 }
 0x274   : > { %3335 = vmatprep.subr.bf16.mxu1 %v2256_v1 }
 0x275   : > { %3336 = vmatpush3.bf16.msra.mxu1 %v4648_v18  ;;  %v3856_v18 = vld [vmem:[#allocation5 + $0x30] ss:$52 sps:$4 sm:$0xff]  }
 0x276   : > { %3337 = vmatprep.subr.bf16.mxu1 %v2257_v13 }
 0x279   : > { %3338 = vmatpush3.bf16.msra.mxu1 %v4645_v56  ;;  %v3847_v56 = vld [vmem:[#allocation5 + $0x8c] ss:$52 sps:$4 sm:$0xff]  }
 0x27a   : > { %3339 = vmatprep.subr.bf16.mxu1 %v4447_v2  ;;  %v3852_v2 = vld [vmem:[#allocation5 + $0x2c] ss:$52 sps:$4 sm:$0xff]  }
 0x27d   : > { %3340 = vmatpush3.bf16.msra.mxu1 %v2250_v36 }
 0x27e   : > { %3341 = vmatprep.subr.bf16.mxu1 %v4445_v62  ;;  %v3849_v62 = vld [vmem:[#allocation5 + $0x88] ss:$52 sps:$4 sm:$0xff]  }
 0x281   : > { %3342 = vmatpush3.bf16.msra.mxu1 %v4654_v43 }
 0x282   : > { %3343 = vmatprep.subr.bf16.mxu1 %v4463_v33 }
 0x285   : > { %3344 = vmatpush3.bf16.msra.mxu1 %v2252_v24 }
 0x286   : > { %3345 = vmatprep.subr.bf16.mxu1 %v4461_v31 }
 0x289   : > { %3346 = vmatpush3.bf16.msra.mxu1 %v2253_v22 }
 0x28a   : > { %3347 = vmatprep.subr.bf16.mxu1 %v4479_v0 }
 0x28d   : > { %3348 = vmatpush3.bf16.msra.mxu1 %v2254_v60  ;;  %v3858_v60 = vld [vmem:[%s4773_s4] sm:$0xff]  }
 0x28e   : > { %3349 = vmatprep.subr.bf16.mxu1 %v4477_v23 }
 0x291   : > { %3350 = vmatpush3.bf16.msra.mxu1 %v2255_v15 }
 0x292   : > { %3363 = vmatprep.subr.bf16.mxu1 %v4555_v25 }
 0x294   : > { %2648 = vmatmul.mubr.bf16.vlgmr.msra.gmra.mrb[80].mxu1 %v3844_v59 }
 0x295   : > { %3364 = vmatpush3.bf16.msra.mxu1 %v4495_v34  ;;  %2655 = vmatprep.mubr.bf16.mxu1 %v3847_v56 }
 0x296   : > { %3365 = vmatprep.subr.bf16.mxu1 %v4552_v47  ;;  %v3850_v47 = vld [vmem:[#allocation5 + $0x28] ss:$52 sps:$4 sm:$0xff]  }
 0x299   : > { %3366 = vmatpush3.bf16.msra.mxu1 %v4493_v28 }
 0x29a   : > { %3367 = vmatprep.subr.bf16.mxu1 %v4572_v21 }
 0x29c   : > { %2656 = vmatmul.mubr.bf16.gmra.mrb[84].mxu1 %v3849_v62 }
 0x29d   : > { %3368 = vmatpush3.bf16.msra.mxu1 %v4508_v9  ;;  %2696 = vmatprep.mubr.bf16.mxu1 %v3852_v2 }
 0x29e   : > { %3369 = vmatprep.subr.bf16.mxu1 %v4569_v20 }
 0x2a1   : > { %3370 = vmatpush3.bf16.msra.mxu1 %v4506_v48 }
 0x2a2   : > { %3371 = vmatprep.subr.bf16.mxu1 %v4588_v3 }
 0x2a5   : > { %3372 = vmatpush3.bf16.msra.mxu1 %v4522_v41 }
 0x2a6   : > { %3373 = vmatprep.subr.bf16.mxu1 %v4585_v61 }
 0x2a7   : > { %v3267_v31 = vpop.f32.mrb[56].mxu1 }
 0x2a8   : > { %v3268_v33 = vpop.f32.mrb[57].mxu1 }
 0x2a9   : > { %3374 = vmatpush3.bf16.msra.mxu1 %v4519_v14  ;;  %v3269_v23 = vadd.f32 %v3268_v33, %v3267_v31  ;;  %v3270_v0 = vpop.f32.mrb[58].mxu1  ;;  %v3853_v14 = vld [vmem:[#allocation5 + $0x94] ss:$52 sps:$4 sm:$0xff]  }
 0x2aa   : > { %3375 = vmatprep.subr.bf16.mxu1 %v4604_v49  ;;  %v3271_v28 = vpop.f32.mrb[59].mxu1 }
 0x2ab   : > { %v2503_v34 = vadd.f32 %v3269_v23, %v4664_v8  ;;  %v3272_v9 = vadd.f32 %v3271_v28, %v3270_v0 }
 0x2ad   : > { %3376 = vmatpush3.bf16.msra.mxu1 %v4541_v16  ;;  %v2506_v48 = vadd.f32 %v3272_v9, %v4667_v51 }
 0x2ae   : > { %3377 = vmatprep.subr.bf16.mxu1 %v4601_v45  ;;  %v3855_v45 = vld [vmem:[#allocation5 + $0x90] ss:$52 sps:$4 sm:$0xff]  }
 0x2af   : > { %v3273_v41 = vpop.f32.mrb[60].mxu1 }
 0x2b0   : > { %v3274_v25 = vpop.f32.mrb[61].mxu1 }
 0x2b1   : > { %3378 = vmatpush3.bf16.msra.mxu1 %v4538_v12  ;;  %v3275_v20 = vadd.f32 %v3274_v25, %v3273_v41  ;;  %v3276_v21 = vpop.f32.mrb[62].mxu1  ;;  %v3857_v12 = vld [vmem:[#allocation5 + $0x98] ss:$52 sps:$4 sm:$0xff]  }
 0x2b2   : > { %3613 = vmatprep.subr.bf16.mxu1 %v4620_v32  ;;  %v3277_v61 = vpop.f32.mrb[63].mxu1 }
 0x2b3   : > { %v2511_v3 = vadd.f32 %v3275_v20, %v3247_v17  ;;  %v3278_v49 = vadd.f32 %v3277_v61, %v3276_v21 }
 0x2b4   : > { %2697 = vmatmul.mubr.bf16.vlgmr.msra.gmra.mrb[88].mxu1 %v3850_v47 }
 0x2b5   : > { %3614 = vmatpush3.bf16.msra.mxu1 %v4620_v32  ;;  %2704 = vmatprep.mubr.bf16.mxu1 %v3853_v14  ;;  %v2514_v16 = vadd.f32 %v3278_v49, %v3250_v4 }
 0x2b6   : > { %3615 = vmatprep.subr.bf16.mxu1 %v4617_v26 }
 0x2b9   : > { %3616 = vmatpush3.bf16.msra.mxu1 %v4617_v26 }
 0x2ba   : > { %3621 = vmatprep.subr.bf16.mxu1 %v3858_v60 }
 0x2bc   : > { %2705 = vmatmul.mubr.bf16.gmra.mrb[92].mxu1 %v3855_v45 }
 0x2bd   : > { %3617 = vmatprep.mubr.msk.bf16.mxu1 %vm2412_vm0, %v3856_v18 }
 0x2c4   : > { %3618 = vmatmul.mubr.msk.bf16.vlgmr.msra.gmra.mrb[96].mxu1 %vm2412_vm0, %v3857_v12 }
 0x2c5   : > { %3622 = vmatpush3.bf16.msra.mxu1 %v3858_v60 }
 0x2c6   : > { %3623 = vmatprep.subr.bf16.mxu1 %v3859_v35 }
 0x2c9   : > { %3624 = vmatpush3.bf16.msra.mxu1 %v3859_v35 }
 0x2ca   : > { %3625 = vmatprep.subr.bf16.mxu1 %v3860_v42 }
 0x2cd   : > { %3626 = vmatpush3.bf16.msra.mxu1 %v3860_v42 }
 0x2ce   : > { %3627 = vmatprep.subr.bf16.mxu1 %v3861_v30 }
 0x2d1   : > { %3628 = vmatpush3.bf16.msra.mxu1 %v3861_v30 }
 0x2e7   : > { %v3295_v43 = vpop.f32.mrb[64].mxu1 }
 0x2e8   : > { %v3296_v36 = vpop.f32.mrb[65].mxu1 }
 0x2e9   : > { %v3297_v22 = vadd.f32 %v3296_v36, %v3295_v43  ;;  %v3298_v24 = vpop.f32.mrb[66].mxu1 }
 0x2ea   : > { %v3299_v19 = vpop.f32.mrb[67].mxu1 }
 0x2eb   : > { %v2552_v63 = vadd.f32 %v3297_v22, %v2503_v34  ;;  %v3300_v32 = vadd.f32 %v3299_v19, %v3298_v24 }
 0x2ed   : > { %v2555_v38 = vadd.f32 %v3300_v32, %v2506_v48 }
 0x2ef   : > { %v3301_v6 = vpop.f32.mrb[68].mxu1 }
 0x2f0   : > { %v3302_v39 = vpop.f32.mrb[69].mxu1 }
 0x2f1   : > { %v3303_v55 = vadd.f32 %v3302_v39, %v3301_v6  ;;  %v3304_v27 = vpop.f32.mrb[70].mxu1 }
 0x2f2   : > { %v3305_v15 = vpop.f32.mrb[71].mxu1 }
 0x2f3   : > { %v2560_v26 = vadd.f32 %v3303_v55, %v2511_v3  ;;  %v3306_v8 = vadd.f32 %v3305_v15, %v3304_v27 }
 0x2f5   : > { %v2563_v7 = vadd.f32 %v3306_v8, %v2514_v16  ;;  %v3103_v8 = vld [vmem:[%s4774_s5] ss:$0 sm:$0xff] }
 0x327   : > { %v3323_v50 = vpop.f32.mrb[72].mxu1 }
 0x328   : > { %v3324_v51 = vpop.f32.mrb[73].mxu1 }
 0x329   : > { %v3325_v52 = vadd.f32 %v3324_v51, %v3323_v50  ;;  %v3326_v37 = vpop.f32.mrb[74].mxu1 }
 0x32a   : > { %v3327_v10 = vpop.f32.mrb[75].mxu1 }
 0x32b   : > { %v2601_v53 = vadd.f32 %v3325_v52, %v2552_v63  ;;  %v3328_v29 = vadd.f32 %v3327_v10, %v3326_v37 }
 0x32d   : > { %v2604_v54 = vadd.f32 %v3328_v29, %v2555_v38 }
 0x32f   : > { %v3329_v57 = vpop.f32.mrb[76].mxu1 }
 0x330   : > { %v3330_v58 = vpop.f32.mrb[77].mxu1 }
 0x331   : > { %v3331_v40 = vadd.f32 %v3330_v58, %v3329_v57  ;;  %v3332_v46 = vpop.f32.mrb[78].mxu1 }
 0x332   : > { %v3333_v11 = vpop.f32.mrb[79].mxu1 }
 0x333   : > { %v2609_v13 = vadd.f32 %v3331_v40, %v2560_v26  ;;  %v3334_v17 = vadd.f32 %v3333_v11, %v3332_v46 }
 0x335   : > { %v2612_v5 = vadd.f32 %v3334_v17, %v2563_v7 }
 0x367   : > { %v3351_v1 = vpop.f32.mrb[80].mxu1 }
 0x368   : > { %v3352_v44 = vpop.f32.mrb[81].mxu1 }
 0x369   : > { %v3353_v4 = vadd.f32 %v3352_v44, %v3351_v1  ;;  %v3354_v59 = vpop.f32.mrb[82].mxu1 }
 0x36a   : > { %v3355_v56 = vpop.f32.mrb[83].mxu1 }
 0x36b   : > { %v2650_v62 = vadd.f32 %v3353_v4, %v2601_v53  ;;  %v3356_v2 = vadd.f32 %v3355_v56, %v3354_v59 }
 0x36d   : > { %v2653_v31 = vadd.f32 %v3356_v2, %v2604_v54 }
 0x36f   : > { %v3357_v33 = vpop.f32.mrb[84].mxu1 }
 0x370   : > { %v3358_v23 = vpop.f32.mrb[85].mxu1 }
 0x371   : > { %v3359_v0 = vadd.f32 %v3358_v23, %v3357_v33  ;;  %v3360_v28 = vpop.f32.mrb[86].mxu1 }
 0x372   : > { %v3361_v34 = vpop.f32.mrb[87].mxu1 }
 0x373   : > { %v2658_v9 = vadd.f32 %v3359_v0, %v2609_v13  ;;  %v3362_v48 = vadd.f32 %v3361_v34, %v3360_v28 }
 0x375   : > { %v2661_v41 = vadd.f32 %v3362_v48, %v2612_v5 }
 0x387   : > { %v3379_v47 = vpop.f32.mrb[88].mxu1 }
 0x388   : > { %v3380_v25 = vpop.f32.mrb[89].mxu1 }
 0x389   : > { %v3381_v14 = vadd.f32 %v3380_v25, %v3379_v47  ;;  %v3382_v20 = vpop.f32.mrb[90].mxu1 }
 0x38a   : > { %v3383_v21 = vpop.f32.mrb[91].mxu1 }
 0x38b   : > { %v3384_v61 = vadd.f32 %v3383_v21, %v3382_v20  ;;  %v2699_v3 = vadd.f32 %v3381_v14, %v2650_v62 }
 0x38d   : > { %v2702_v49 = vadd.f32 %v3384_v61, %v2653_v31 }
 0x38f   : > { %v3385_v16 = vpop.f32.mrb[92].mxu1 }
 0x390   : > { %v3386_v45 = vpop.f32.mrb[93].mxu1 }
 0x391   : > { %v3387_v18 = vadd.f32 %v3386_v45, %v3385_v16  ;;  %v3388_v12 = vpop.f32.mrb[94].mxu1 }
 0x392   : > { %v3389_v43 = vpop.f32.mrb[95].mxu1 }
 0x393   : > { %v3390_v36 = vadd.f32 %v3389_v43, %v3388_v12  ;;  %v2707_v22 = vadd.f32 %v3387_v18, %v2658_v9 }
 0x395   : > { %v2710_v24 = vadd.f32 %v3390_v36, %v2661_v41 }
 0x397   : > { %v3619_v19 = vpop.f32.mrb[96].mxu1 }
 0x398   : > { %v2756_v63 = vadd.f32 %v3619_v19, %v2707_v22  ;;  %v2747_v32 = vpop.f32.mrb[97].mxu1 }
 0x399   : > { %v2748_v38 = vadd.f32 %v2747_v32, %v2699_v3  ;;  %v3620_v6 = vpop.f32.mrb[98].mxu1 }
 0x39a   : > { %v2759_v39 = vadd.f32 %v3620_v6, %v2710_v24  ;;  %v2750_v55 = vpop.f32.mrb[99].mxu1 }
 0x39b   : > { %v2751_v27 = vadd.f32 %v2750_v55, %v2702_v49 }
 0x39c   : > { %v2763_v15 = vpack.c.bf16 %v2759_v39, %v2756_v63 }
 0x39d   : > { %v2762_v26 = vpack.c.bf16 %v2751_v27, %v2748_v38 }
 0x39f   : > { %3629 = vmatprep.mubr.msk.bf16.mxu1 %vm2803_vm1, %v2762_v26 }
 0x3a0   : > { %3630 = vmatmul.mubr.msk.bf16.vlgmr.msra.gmra.mrb[100].mxu1 %vm2803_vm1, %v2763_v15 }
 0x473   : > { %v3631_v7 = vpop.f32.mrb[100].mxu1 }
 0x474   : > { %v2853_v60 = vadd.f32 %v3631_v7, %v3103_v8  ;;  %v2844_v35 = vpop.f32.mrb[101].mxu1 }
 0x475   : > { %v2845_v42 = vadd.f32 %v3103_v8, %v2844_v35  ;;  %v3632_v30 = vpop.f32.mrb[102].mxu1 }
 0x476   : > { %2861 = vst [vmem:[%s284_s27 + $0x10] sm:$0xff] %v2853_v60  ;;  %v2856_v50 = vadd.f32 %v3632_v30, %v3103_v8  ;;  %v2847_v51 = vpop.f32.mrb[103].mxu1 }
 0x477   : > { %2859 = vst [vmem:[%s284_s27] sm:$0xff] %v2845_v42  ;;  %v2848_v52 = vadd.f32 %v3103_v8, %v2847_v51 }
 0x478   : > { %2862 = vst [vmem:[%s284_s27 + $0x18] sm:$0xff] %v2856_v50 }
 0x479   : > { %2860 = vst [vmem:[%s284_s27 + $0x8] sm:$0xff] %v2848_v52 }
 0x47a   : > { %3934 = shalt.err (!%p3931_p7)
}
 0x47b   : > { %s3935_s29 = scalar_lea.hbm %s4725_s30, 512  ;;  %s3939_s11 = scalar_lea.hbm %s4775_s6, 1024 }
 0x47c   : > { %p3936_p9 = scmp.ne.s32.totalorder %s4725_s30, %s3935_s29  ;;  %p3940_p5 = scmp.lt.u32.totalorder %s4725_s30, %s4775_s6 }
 0x47d   : > { %p3941_p11 = scmp.lt.u32.totalorder %s3939_s11, %s3935_s29  ;;  %p3943_p4 = scmp.lt.u32.totalorder %s3935_s29, %s4725_s30 }
 0x47e   : > { %p3937_p2 = pnand %p3936_p9, %p4128_p12 }
 0x47f   : > { %p3942_p1 = por %p3941_p11, %p3940_p5 }
 0x480   : > { %p3938_p0 = pneg %p3937_p2 }
 0x481   : > { %p3944_p6 = por %p3943_p4, %p3942_p1 }
 0x483   : > { %p3945_p8 = pnand %p3944_p6, %p3938_p0 }
 0x485   : > { %3948 = shalt.err (!%p3945_p8)
}
 0x486   : > { %s4000_s17 = smov 128   ;;  %s4001_s10 = smov 8  }
 0x487   : > { %3657 = dma.vmem_to_hbm [thread:$0]  (%p4128_p12), %s4720_s15, 512, %s4725_s30, %s2864_s25, %s4000_s17, %s4000_s17, %s4001_s10  }
 0x488 PF: > { %s2892_s26 = sand.u32 1, %s3979_s21   ;;  %p4790_p10 = scmp.ne.s32.totalorder %s4780_s28, 0 }
 0x489   : > { %p4791_p13 = scmp.ge.s32.totalorder %s3991_s24, 2  ;;  %s2893_s12 = scalar_lea.sflag [#allocation4], %s2892_s26 }
 0x48b   : > { %p3668_p3 = pnand %p4791_p13, %p4790_p10 }
 0x48d   : > { %3974 = dma.done.wait (!%p3668_p3), %s2893_s12, 512  }
 0x48e   : > { %3976 = vsyncadd (!%p3668_p3), %s2893_s12, 4294966784  ;;  %p20_p7 = scmp.ge.s32.totalorder %s4093_s9, 4   ;;  %s4792_s21 = smov %s3983_s22 }
 0x48f   : > { %s4793_s22 = smov %s3987_s23  ;;  %s4794_s23 = smov %s4124_s13 }
 0x490   : > { %s4795_s24 = smov %s4093_s9  ;;  %22 = sbr.rel (!%p20_p7) target bundleno = 6 (0x6), region = 93 }
 0x497   :  { %2898 = vsyncpa [#allocation3], 1 }
 0x498   :  { %2900 = vsyncpa [#allocation3 + $0x1], 1 }
 0x499   :  { %2901 = vsyncpa [#allocation6], 1 }
 0x49a   :  { %2902 = vsyncpa [#allocation4], 1 }
 0x49b   :  { %2904 = vsyncpa [#allocation4 + $0x1], 1 }

// kernel: tpu_custom_call.1
= control target key start
LH: loop header
LB: loop body
LE: loop exit
PB: predicated region body
PF: predicated region fallthrough
CT: control target
= control target key end

     0   :  { %11 = vsyncpa [#allocation3], 0  ;;  %s4769_s0 = inlined_call_operand.hbm [shape: bf16[3136,128], index: 0, kind: input, shape index: {}]   ;;  %s4770_s1 = inlined_call_operand.vmem [shape: bf16[128,64], index: 1, kind: input, shape index: {}]   ;;  %s4771_s2 = inlined_call_operand.vmem [shape: f32[1,64], index: 2, kind: input, shape index: {}]   ;;  %s4772_s3 = inlined_call_operand.hbm [shape: bf16[32,1568], index: 3, kind: input, shape index: {}]   ;;  %s4773_s4 = inlined_call_operand.vmem [shape: bf16[64,128], index: 4, kind: input, shape index: {}]   ;;  %s4774_s5 = inlined_call_operand.vmem [shape: f32[1,128], index: 5, kind: input, shape index: {}]   ;;  %s4775_s6 = inlined_call_operand.hbm [shape: f32[64,128], index: 6, kind: output, shape index: {}]  }
   0x1   :  { %13 = vsyncpa [#allocation3 + $0x1], 0 }
   0x2   :  { %14 = vsyncpa [#allocation6], 0 }
   0x3   :  { %15 = vsyncpa [#allocation4], 0 }
   0x4   :  { %17 = vsyncpa [#allocation4 + $0x1], 0  ;;  %s4037_s21 = smov 0   ;;  %s4039_s22 = smov 0  }
   0x5   :  { %s4041_s23 = smov 0   ;;  %s4043_s24 = smov 0  }
   0x6 LB: > { %s4058_s25 = sadd.s32 4294967295, %s3991_s24   ;;  %s2960_s26 = sadd.s32 4294967294, %s3991_s24   ;;  %s3991_s24 = sphi %s4043_s24, %s4795_s24   ;;  %s3987_s23 = sphi %s4041_s23, %s4794_s23   ;;  %s3983_s22 = sphi %s4039_s22, %s4793_s22   ;;  %s3979_s21 = sphi %s4037_s21, %s4792_s21  }
   0x7   : > { %p43_p0 = scmp.ne.s32.totalorder %s3983_s22, %s3979_s21  ;;  %p4776_p1 = scmp.eq.s32.totalorder %s4058_s25, 0 }
   0x8   : > { %p178_p3 = scmp.eq.s32.totalorder %s2960_s26, 1  ;;  %p2961_p5 = scmp.ge.s32.totalorder %s3991_s24, 1 }
   0x9   : > { %p4067_p4 = por %p4776_p1, %p43_p0  ;;  %p185_p7 = scmp.lt.s32.totalorder %s3991_s24, 3 }
   0xa   : > { %p4072_p6 = por %p178_p3, %p43_p0  ;;  %s3993_s30 = smov [#allocation5]  }
   0xb   : > { %s4779_s27 = scalar_select %p4067_p4, 1, 0 }
   0xc   : > { %s4780_s28 = scalar_select %p4072_p6, 1, 0 }
   0xd   : > { %p4077_p8 = pnand %p2961_p5, %p185_p7  ;;  %s203_s7 = sshll.u32 %s3993_s30, 4  ;;  %s4081_s7 = int_to_ptr.vmem [resolvable:$true] %s203_s7 }
   0xe   : > { %s4093_s9 = sadd.s32 1, %s3991_s24   ;;  %s30_s10 = sadd.s32 1, %s3987_s23 }
   0xf   : > { %s4781_s29 = scalar_select %p4077_p8, 1, 0 }
  0x10   : > { %p3659_p9 = pneg %p4077_p8  ;;  %s27_s11 = ssub.s32 %s3991_s24, %s4093_s9 }
  0x11   : > { %s3863_s14 = scalar_lea.hbm %s4772_s3, 3328 }
  0x12   : > { %p4088_p11 = pnand %p3659_p9, %p4776_p1  ;;  %p3864_p12 = scmp.ne.s32.totalorder %s4772_s3, %s3863_s14 }
  0x13   : > { %p3870_p5 = scmp.lt.u32.totalorder %s3863_s14, %s4772_s3 }
  0x14   : > { %p3865_p13 = pneg %p4088_p11 }
  0x16   : > { %p3866_p0 = pnand %p3865_p13, %p3864_p12 }
  0x18   : > { %p3867_p3 = pneg %p3866_p0 }
  0x1a   : > { %p3872_p7 = pnand %p3870_p5, %p3867_p3 }
  0x1c   : > { %3875 = shalt.err (!%p3872_p7)
}
  0x1d   : > { %s3876_s19 = scalar_lea.vmem %s4081_s7, 3328  ;;  %p3884_p2 = scmp.lt.s32.totalorder %s4081_s7, %s4081_s7 }
  0x1e   : > { %p3877_p9 = scmp.ne.s32.totalorder %s4081_s7, %s3876_s19  ;;  %p3885_p6 = scmp.lt.s32.totalorder %s3876_s19, %s3876_s19 }
  0x20   : > { %p3879_p10 = pnand %p3877_p9, %p3865_p13  ;;  %p3886_p4 = por %p3885_p6, %p3884_p2 }
  0x22   : > { %p3880_p1 = pneg %p3879_p10 }
  0x24   : > { %p3887_p8 = pnand %p3886_p4, %p3880_p1 }
  0x26   : > { %3890 = shalt.err (!%p3887_p8)
}
  0x27   : > { %s3994_s20 = smov 832   ;;  %s3995_s26 = smov 52  }
  0x28   : > { %3662 = dma.hbm_to_vmem [thread:$0]  (!%p4088_p11), %s4772_s3, 3328, %s4081_s7, [#allocation6], %s3994_s20, %s3994_s20, %s3995_s26  }
  0x29   : > { %p28_p2 = scmp.eq.s32.totalorder %s27_s11, 0  ;;  %p37_p1 = scmp.ne.s32.totalorder %s3987_s23, %s3983_s22 }
  0x2a   : > { %p38_p4 = scmp.eq.s32.totalorder %s3991_s24, 0  ;;  %p3672_p6 = scmp.lt.s32.totalorder %s3991_s24, 2 }
  0x2b   : > { %s4124_s13 = scalar_select %p28_p2, %s3987_s23, %s30_s10  }
  0x2c   : > { %p39_p8 = por %p38_p4, %p37_p1  ;;  %p4783_p10 = scmp.eq.s32.totalorder %s4058_s25, 1 }
  0x2d   : > { %s223_s15 = sand.u32 1, %s3987_s23   ;;  %s3115_s16 = smul.u32 12544, %s3991_s24 }
  0x2e   : > { %p4128_p12 = por %p4783_p10, %p37_p1  ;;  %s3649_s17 = smul.u32 784, %s223_s15 }
  0x2f   : > { %s4137_s19 = scalar_lea.hbm %s4769_s0, %s3115_s16  ;;  %p4139_p11 = pnand %p3672_p6, %p39_p8 }
  0x30   : > { %s227_s10 = scalar_lea.vmem [#allocation2], %s3649_s17  ;;  %s4145_s20 = scalar_lea.sflag [#allocation3], %s223_s15 }
  0x31   : > { %s234_s11 = sshll.u32 %s227_s10, 4  ;;  %s3891_s26 = scalar_lea.hbm %s4137_s19, 12544  ;;  %s4143_s11 = int_to_ptr.vmem [resolvable:$true] %s234_s11 }
  0x32   : > { %p3892_p13 = scmp.ne.s32.totalorder %s4137_s19, %s3891_s26  ;;  %p3893_p0 = pneg %p4139_p11 }
  0x33   : > { %s3896_s16 = scalar_lea.hbm %s4769_s0, 25088  ;;  %p3897_p7 = scmp.lt.u32.totalorder %s4137_s19, %s4769_s0 }
  0x34   : > { %p3894_p3 = pnand %p3893_p0, %p3892_p13  ;;  %p3898_p9 = scmp.lt.u32.totalorder %s3896_s16, %s3891_s26 }
  0x35   : > { %p3900_p1 = scmp.lt.u32.totalorder %s3891_s26, %s4137_s19 }
  0x36   : > { %p3895_p5 = pneg %p3894_p3  ;;  %p3899_p2 = por %p3898_p9, %p3897_p7 }
  0x38   : > { %p3901_p4 = por %p3900_p1, %p3899_p2 }
  0x3a   : > { %p3902_p6 = pnand %p3901_p4, %p3895_p5 }
  0x3c   : > { %3905 = shalt.err (!%p3902_p6)
}
  0x3d   : > { %s3906_s15 = scalar_lea.vmem %s4143_s11, 12544  ;;  %s3996_s17 = smov [#allocation2]  }
  0x3e   : > { %p3907_p8 = scmp.ne.s32.totalorder %s4143_s11, %s3906_s15  ;;  %s3911_s10 = sshll.u32 %s3996_s17, 4  ;;  %s3912_s10 = int_to_ptr.vmem [resolvable:$false] %s3911_s10 }
  0x3f   : > { %s3913_s30 = scalar_lea.vmem %s3912_s10, 25088  ;;  %p3914_p3 = scmp.lt.s32.totalorder %s4143_s11, %s3912_s10 }
  0x40   : > { %p3909_p10 = pnand %p3907_p8, %p3893_p0  ;;  %p3915_p7 = scmp.lt.s32.totalorder %s3913_s30, %s3906_s15 }
  0x42   : > { %p3910_p13 = pneg %p3909_p10  ;;  %p3916_p9 = por %p3915_p7, %p3914_p3 }
  0x44   : > { %p3917_p2 = pnand %p3916_p9, %p3910_p13 }
  0x46   : > { %3920 = shalt.err (!%p3917_p2)
}
  0x47   : > { %s3997_s26 = smov 64   ;;  %s3998_s12 = smov 4  }
  0x48   : > { %3666 = dma.hbm_to_vmem [thread:$0]  (!%p4139_p11), %s4137_s19, 12544, %s4143_s11, %s4145_s20, %s3997_s26, %s3997_s26, %s3998_s12  }
  0x49   : > { %p4786_p0 = scmp.ne.s32.totalorder %s4781_s29, 0 }
  0x4a   : > { %s4176_s16 = sand.u32 (!%p4786_p0), 1, %s3983_s22   ;;  %p4787_p5 = scmp.ne.s32.totalorder (!%p4786_p0), %s4779_s27, 0 }
  0x4b   : > { %246 = sbr.rel (%p4786_p0) target bundleno = 1160 (0x488), region = 44  ;;  %s249_s18 = scalar_lea.sflag (!%p4786_p0), [#allocation3], %s4176_s16 }
  0x4c   : > { %s3650_s8 = smul.u32 (!%p4786_p0), 784, %s4176_s16 }
  0x4e   : > { %s4180_s15 = scalar_lea.vmem (!%p4786_p0), [#allocation2], %s3650_s8 }
  0x52   : > { %3966 = dma.done.wait (%p4787_p5), %s249_s18, 12544  }
  0x53   : > { %3968 = vsyncadd (%p4787_p5), %s249_s18, 4294954752  ;;  %p4788_p11 = scmp.eq.s32.totalorder %s4058_s25, 0 }
  0x55   : > { %3970 = dma.done.wait (%p4788_p11), [#allocation6], 3328   ;;  %p4789_p1 = pmov %p4788_p11 }
  0x56   : > { %v3714_v0 = vld [vmem:[%s4770_s1] sm:$0xff]   ;;  %v3715_v1 = vld [vmem:[%s4770_s1 + $0x8] sm:$0xff]   ;;  %v3716_v2 = vld [vmem:[%s4770_s1 + $0x10] sm:$0xff]   ;;  %vm2412_vm0 = vcmask 261120   ;;  %vm2803_vm1 = vcmask 523264   ;;  %s2967_s19 = sshll.u32 %s4176_s16, 5 }
  0x57   : > { %3972 = vsyncadd (%p4789_p1), [#allocation6], 4294963968  ;;  %3401 = vmatprep.subr.bf16.mxu0 %v3714_v0  ;;  %3633 = vmatprep.subr.bf16.mxu1 %v3714_v0  ;;  %v3717_v3 = vld [vmem:[%s4770_s1 + $0x18] sm:$0xff]   ;;  %v3722_v4 = vld [vmem:[%s4180_s15] sm:$0xff]   ;;  %s284_s27 = scalar_lea.vmem [#allocation7], %s2967_s19  ;;  %s3116_s20 = sshll.u32 %s4058_s25, 9 }
  0x58   : > { %3402 = vmatpush3.bf16.msra.mxu0 %v3714_v0  ;;  %3641 = vmatpush3.bf16.msra.mxu1 %v3714_v0  ;;  %v3718_v5 = vld [vmem:[%s4770_s1 + $0x20] sm:$0xff]   ;;  %v3719_v6 = vld [vmem:[%s4770_s1 + $0x28] sm:$0xff]   ;;  %v3720_v7 = vld [vmem:[%s4770_s1 + $0x30] sm:$0xff]   ;;  %s4725_s30 = scalar_lea.hbm %s4775_s6, %s3116_s20  ;;  %s2864_s25 = scalar_lea.sflag [#allocation4], %s4176_s16 }
  0x59   : > { %3403 = vmatprep.subr.bf16.mxu0 %v3715_v1  ;;  %3634 = vmatprep.subr.bf16.mxu1 %v3715_v1  ;;  %v3721_v8 = vld [vmem:[%s4770_s1 + $0x38] sm:$0xff]   ;;  %v3724_v10 = vld [vmem:[%s4180_s15 + $0x10] sm:$0xff]   ;;  %v3726_v12 = vld [vmem:[%s4180_s15 + $0x20] sm:$0xff]   ;;  %s3999_s12 = smov [#allocation7]  }
  0x5a   : > { %3417 = vmatprep.mubr.bf16.mxu0 %v3722_v4  ;;  %v3723_v9 = vld [vmem:[%s4180_s15 + $0x8] sm:$0xff]   ;;  %v3725_v11 = vld [vmem:[%s4180_s15 + $0x18] sm:$0xff]   ;;  %v3728_v14 = vld [vmem:[%s4180_s15 + $0x30] sm:$0xff]   ;;  %s3925_s8 = sshll.u32 %s3999_s12, 4  ;;  %s3926_s8 = int_to_ptr.vmem [resolvable:$false] %s3925_s8 }
  0x5b   : > { %v3727_v13 = vld [vmem:[%s4180_s15 + $0x28] sm:$0xff]   ;;  %v3729_v15 = vld [vmem:[%s4180_s15 + $0x38] sm:$0xff]   ;;  %v3730_v16 = vld [vmem:[%s4180_s15 + $0x40] sm:$0xff]   ;;  %s3927_s18 = scalar_lea.vmem %s3926_s8, 1024 }
  0x5c   : > { %3404 = vmatpush3.bf16.msra.mxu0 %v3715_v1  ;;  %3642 = vmatpush3.bf16.msra.mxu1 %v3715_v1  ;;  %v3731_v17 = vld [vmem:[%s4180_s15 + $0x48] sm:$0xff]   ;;  %v3732_v18 = vld [vmem:[%s4180_s15 + $0x50] sm:$0xff]   ;;  %v3733_v19 = vld [vmem:[%s4180_s15 + $0x58] sm:$0xff]  }
  0x5d   : > { %3405 = vmatprep.subr.bf16.mxu0 %v3716_v2  ;;  %3635 = vmatprep.subr.bf16.mxu1 %v3716_v2  ;;  %v3734_v20 = vld [vmem:[%s4180_s15 + $0x60] sm:$0xff]   ;;  %v3735_v21 = vld [vmem:[%s4180_s15 + $0x68] sm:$0xff]   ;;  %v3736_v22 = vld [vmem:[%s4180_s15 + $0x70] sm:$0xff]  }
  0x5e   : > { %v3737_v23 = vld [vmem:[%s4180_s15 + $0x78] sm:$0xff]   ;;  %v3738_v24 = vld [vmem:[%s4180_s15 + $0x80] sm:$0xff]   ;;  %v3739_v25 = vld [vmem:[%s4180_s15 + $0x88] sm:$0xff]  }
  0x5f   : > { %v3740_v26 = vld [vmem:[%s4180_s15 + $0x90] sm:$0xff]   ;;  %v3741_v27 = vld [vmem:[%s4180_s15 + $0x98] sm:$0xff]   ;;  %v3742_v28 = vld [vmem:[%s4180_s15 + $0xa0] sm:$0xff]  }
  0x60   : > { %3406 = vmatpush3.bf16.msra.mxu0 %v3716_v2  ;;  %3643 = vmatpush3.bf16.msra.mxu1 %v3716_v2  ;;  %v3743_v29 = vld [vmem:[%s4180_s15 + $0xa8] sm:$0xff]   ;;  %v3744_v30 = vld [vmem:[%s4180_s15 + $0xb0] sm:$0xff]   ;;  %v3745_v31 = vld [vmem:[%s4180_s15 + $0xb8] sm:$0xff]  }
  0x61   : > { %3407 = vmatprep.subr.bf16.mxu0 %v3717_v3  ;;  %3636 = vmatprep.subr.bf16.mxu1 %v3717_v3  ;;  %v3746_v32 = vld [vmem:[%s4180_s15 + $0xc0] sm:$0xff]   ;;  %v3778_v33 = vld [vmem:[%s4180_s15 + $0x250] sm:$0xff]   ;;  %v3747_v34 = vld [vmem:[%s4180_s15 + $0xc8] sm:$0xff]  }
  0x62   : > { %v3779_v35 = vld [vmem:[%s4180_s15 + $0x258] sm:$0xff]   ;;  %v3748_v36 = vld [vmem:[%s4180_s15 + $0xd0] sm:$0xff]   ;;  %3565 = vmatprep.mubr.bf16.mxu1 %v3778_v33  ;;  %v3782_v37 = vld [vmem:[%s4180_s15 + $0x260] sm:$0xff]  }
  0x63   : > { %v3749_v38 = vld [vmem:[%s4180_s15 + $0xd8] sm:$0xff]   ;;  %v3783_v39 = vld [vmem:[%s4180_s15 + $0x268] sm:$0xff]   ;;  %v3750_v40 = vld [vmem:[%s4180_s15 + $0xe0] sm:$0xff]  }
  0x64   : > { %3408 = vmatpush3.bf16.msra.mxu0 %v3717_v3  ;;  %3644 = vmatpush3.bf16.msra.mxu1 %v3717_v3  ;;  %v3786_v41 = vld [vmem:[%s4180_s15 + $0x270] sm:$0xff]   ;;  %v3751_v42 = vld [vmem:[%s4180_s15 + $0xe8] sm:$0xff]   ;;  %v3787_v43 = vld [vmem:[%s4180_s15 + $0x278] sm:$0xff]  }
  0x65   : > { %3409 = vmatprep.subr.bf16.mxu0 %v3718_v5  ;;  %3637 = vmatprep.subr.bf16.mxu1 %v3718_v5  ;;  %v3752_v44 = vld [vmem:[%s4180_s15 + $0xf0] sm:$0xff]   ;;  %v3790_v45 = vld [vmem:[%s4180_s15 + $0x280] sm:$0xff]   ;;  %v3753_v46 = vld [vmem:[%s4180_s15 + $0xf8] sm:$0xff]  }
  0x66   : > { %v3791_v47 = vld [vmem:[%s4180_s15 + $0x288] sm:$0xff]   ;;  %v3754_v48 = vld [vmem:[%s4180_s15 + $0x100] sm:$0xff]   ;;  %v3794_v49 = vld [vmem:[%s4180_s15 + $0x290] sm:$0xff]  }
  0x67   : > { %v3755_v50 = vld [vmem:[%s4180_s15 + $0x108] sm:$0xff]   ;;  %v3795_v51 = vld [vmem:[%s4180_s15 + $0x298] sm:$0xff]   ;;  %v3756_v52 = vld [vmem:[%s4180_s15 + $0x110] sm:$0xff]  }
  0x68   : > { %3410 = vmatpush3.bf16.msra.mxu0 %v3718_v5  ;;  %3645 = vmatpush3.bf16.msra.mxu1 %v3718_v5  ;;  %v3798_v53 = vld [vmem:[%s4180_s15 + $0x2a0] sm:$0xff]   ;;  %v3757_v54 = vld [vmem:[%s4180_s15 + $0x118] sm:$0xff]   ;;  %v3799_v55 = vld [vmem:[%s4180_s15 + $0x2a8] sm:$0xff]  }
  0x69   : > { %3411 = vmatprep.subr.bf16.mxu0 %v3719_v6  ;;  %3638 = vmatprep.subr.bf16.mxu1 %v3719_v6  ;;  %v3758_v56 = vld [vmem:[%s4180_s15 + $0x120] sm:$0xff]   ;;  %v3802_v57 = vld [vmem:[%s4180_s15 + $0x2b0] sm:$0xff]   ;;  %v3759_v58 = vld [vmem:[%s4180_s15 + $0x128] sm:$0xff]  }
  0x6a   : > { %v3803_v59 = vld [vmem:[%s4180_s15 + $0x2b8] sm:$0xff]   ;;  %v3760_v60 = vld [vmem:[%s4180_s15 + $0x130] sm:$0xff]   ;;  %v3806_v61 = vld [vmem:[%s4180_s15 + $0x2c0] sm:$0xff]  }
  0x6b   : > { %v3761_v62 = vld [vmem:[%s4180_s15 + $0x138] sm:$0xff]   ;;  %v3807_v63 = vld [vmem:[%s4180_s15 + $0x2c8] sm:$0xff]   ;;  %v3762_v0 = vld [vmem:[%s4180_s15 + $0x140] sm:$0xff]  }
  0x6c   : > { %3412 = vmatpush3.bf16.msra.mxu0 %v3719_v6  ;;  %3646 = vmatpush3.bf16.msra.mxu1 %v3719_v6  ;;  %v3810_v1 = vld [vmem:[%s4180_s15 + $0x2d0] sm:$0xff]   ;;  %v3763_v2 = vld [vmem:[%s4180_s15 + $0x148] sm:$0xff]   ;;  %v3811_v3 = vld [vmem:[%s4180_s15 + $0x2d8] sm:$0xff]  }
  0x6d   : > { %3413 = vmatprep.subr.bf16.mxu0 %v3720_v7  ;;  %3639 = vmatprep.subr.bf16.mxu1 %v3720_v7  ;;  %v3764_v4 = vld [vmem:[%s4180_s15 + $0x150] sm:$0xff]   ;;  %v3814_v5 = vld [vmem:[%s4180_s15 + $0x2e0] sm:$0xff]   ;;  %v3765_v6 = vld [vmem:[%s4180_s15 + $0x158] sm:$0xff]  }
  0x70   : > { %3414 = vmatpush3.bf16.msra.mxu0 %v3720_v7  ;;  %3647 = vmatpush3.bf16.msra.mxu1 %v3720_v7  ;;  %v3815_v7 = vld [vmem:[%s4180_s15 + $0x2e8] sm:$0xff]  }
  0x71   : > { %3415 = vmatprep.subr.bf16.mxu0 %v3721_v8  ;;  %3640 = vmatprep.subr.bf16.mxu1 %v3721_v8 }
  0x74   : > { %3416 = vmatpush3.bf16.msra.mxu0 %v3721_v8  ;;  %3648 = vmatpush3.bf16.msra.mxu1 %v3721_v8  ;;  %v3766_v8 = vld [vmem:[%s4180_s15 + $0x160] sm:$0xff]  }
  0x77   : > { %3418 = vmatmul.mubr.bf16.vlgmr.msra.gmra.mrb[0].mxu0 %v3723_v9  ;;  %3566 = vmatmul.mubr.bf16.vlgmr.msra.gmra.mrb[0].mxu1 %v3779_v35  ;;  %v3816_v9 = vld [vmem:[%s4180_s15 + $0x2f0] sm:$0xff]  }
  0x78   : > { %3421 = vmatprep.mubr.bf16.mxu0 %v3724_v10  ;;  %3569 = vmatprep.mubr.bf16.mxu1 %v3782_v37  ;;  %v3767_v10 = vld [vmem:[%s4180_s15 + $0x168] sm:$0xff]  }
  0x7f   : > { %3422 = vmatmul.mubr.bf16.gmra.mrb[4].mxu0 %v3725_v11  ;;  %3570 = vmatmul.mubr.bf16.gmra.mrb[4].mxu1 %v3783_v39  ;;  %v3817_v11 = vld [vmem:[%s4180_s15 + $0x2f8] sm:$0xff]  }
  0x80   : > { %3425 = vmatprep.mubr.bf16.mxu0 %v3726_v12  ;;  %3573 = vmatprep.mubr.bf16.mxu1 %v3786_v41  ;;  %v3768_v12 = vld [vmem:[%s4180_s15 + $0x170] sm:$0xff]  }
  0x87   : > { %3426 = vmatmul.mubr.bf16.gmra.mrb[8].mxu0 %v3727_v13  ;;  %3574 = vmatmul.mubr.bf16.gmra.mrb[8].mxu1 %v3787_v43  ;;  %v3818_v13 = vld [vmem:[%s4180_s15 + $0x300] sm:$0xff]  }
  0x88   : > { %3429 = vmatprep.mubr.bf16.mxu0 %v3728_v14  ;;  %3577 = vmatprep.mubr.bf16.mxu1 %v3790_v45  ;;  %v3769_v14 = vld [vmem:[%s4180_s15 + $0x178] sm:$0xff]  }
  0x8f   : > { %3430 = vmatmul.mubr.bf16.gmra.mrb[12].mxu0 %v3729_v15  ;;  %3578 = vmatmul.mubr.bf16.gmra.mrb[12].mxu1 %v3791_v47  ;;  %v3819_v15 = vld [vmem:[%s4180_s15 + $0x308] sm:$0xff]   ;;  %v3784_v47 = vld [vmem:[%s4180_s15 + $0x1d0] sm:$0xff]  }
  0x90   : > { %3433 = vmatprep.mubr.bf16.mxu0 %v3730_v16  ;;  %3581 = vmatprep.mubr.bf16.mxu1 %v3794_v49  ;;  %v3770_v16 = vld [vmem:[%s4180_s15 + $0x180] sm:$0xff]  }
  0x97   : > { %3434 = vmatmul.mubr.bf16.gmra.mrb[16].mxu0 %v3731_v17  ;;  %3582 = vmatmul.mubr.bf16.gmra.mrb[16].mxu1 %v3795_v51  ;;  %v3822_v17 = vld [vmem:[#allocation5 + $0x4] ss:$52 sps:$4 sm:$0xff]  }
  0x98   : > { %3437 = vmatprep.mubr.bf16.mxu0 %v3732_v18  ;;  %3585 = vmatprep.mubr.bf16.mxu1 %v3798_v53  ;;  %v3771_v18 = vld [vmem:[%s4180_s15 + $0x188] sm:$0xff]  }
  0x9f   : > { %3438 = vmatmul.mubr.bf16.gmra.mrb[20].mxu0 %v3733_v19  ;;  %3586 = vmatmul.mubr.bf16.gmra.mrb[20].mxu1 %v3799_v55  ;;  %v3772_v19 = vld [vmem:[%s4180_s15 + $0x190] sm:$0xff]  }
  0xa0   : > { %3441 = vmatprep.mubr.bf16.mxu0 %v3734_v20  ;;  %3589 = vmatprep.mubr.bf16.mxu1 %v3802_v57  ;;  %v3773_v20 = vld [vmem:[%s4180_s15 + $0x198] sm:$0xff]  }
  0xa7   : > { %3442 = vmatmul.mubr.bf16.gmra.mrb[24].mxu0 %v3735_v21  ;;  %3590 = vmatmul.mubr.bf16.gmra.mrb[24].mxu1 %v3803_v59  ;;  %v3774_v21 = vld [vmem:[%s4180_s15 + $0x1a0] sm:$0xff]  }
  0xa8   : > { %3445 = vmatprep.mubr.bf16.mxu0 %v3736_v22  ;;  %3593 = vmatprep.mubr.bf16.mxu1 %v3806_v61  ;;  %v3775_v22 = vld [vmem:[%s4180_s15 + $0x1a8] sm:$0xff]  }
  0xaf   : > { %3446 = vmatmul.mubr.bf16.gmra.mrb[28].mxu0 %v3737_v23  ;;  %3594 = vmatmul.mubr.bf16.gmra.mrb[28].mxu1 %v3807_v63  ;;  %v3776_v23 = vld [vmem:[%s4180_s15 + $0x1b0] sm:$0xff]   ;;  %v3788_v63 = vld [vmem:[%s4180_s15 + $0x1e0] sm:$0xff]  }
  0xb0   : > { %3449 = vmatprep.mubr.bf16.mxu0 %v3738_v24  ;;  %3597 = vmatprep.mubr.bf16.mxu1 %v3810_v1  ;;  %v4296_v24 = vld [vmem:[%s4771_s2] ss:$0 sm:$0xff] }
  0xb7   : > { %3450 = vmatmul.mubr.bf16.gmra.mrb[32].mxu0 %v3739_v25  ;;  %3598 = vmatmul.mubr.bf16.gmra.mrb[32].mxu1 %v3811_v3 }
  0xb8   : > { %3453 = vmatprep.mubr.bf16.mxu0 %v3740_v26  ;;  %3601 = vmatprep.mubr.bf16.mxu1 %v3814_v5 }
  0xbf   : > { %3454 = vmatmul.mubr.bf16.gmra.mrb[36].mxu0 %v3741_v27  ;;  %3602 = vmatmul.mubr.bf16.gmra.mrb[36].mxu1 %v3815_v7 }
  0xc0   : > { %3457 = vmatprep.mubr.bf16.mxu0 %v3742_v28  ;;  %3605 = vmatprep.mubr.bf16.mxu1 %v3816_v9  ;;  %v3777_v28 = vld [vmem:[%s4180_s15 + $0x1b8] sm:$0xff]  }
  0xc7   : > { %3458 = vmatmul.mubr.bf16.gmra.mrb[40].mxu0 %v3743_v29  ;;  %3606 = vmatmul.mubr.bf16.gmra.mrb[40].mxu1 %v3817_v11 }
  0xc8   : > { %3461 = vmatprep.mubr.bf16.mxu0 %v3744_v30  ;;  %3609 = vmatprep.mubr.bf16.mxu1 %v3818_v13 }
  0xcf   : > { %3462 = vmatmul.mubr.bf16.gmra.mrb[44].mxu0 %v3745_v31  ;;  %3610 = vmatmul.mubr.bf16.gmra.mrb[44].mxu1 %v3819_v15  ;;  %v3780_v31 = vld [vmem:[%s4180_s15 + $0x1c0] sm:$0xff]   ;;  %v3792_v15 = vld [vmem:[%s4180_s15 + $0x1f0] sm:$0xff]  }
  0xd0   : > { %3465 = vmatprep.mubr.bf16.mxu0 %v3746_v32  ;;  %2451 = vmatprep.mubr.bf16.mxu1 %v3822_v17 }
  0xd7   : > { %3466 = vmatmul.mubr.bf16.gmra.mrb[48].mxu0 %v3747_v34 }
  0xd8   : > { %3469 = vmatprep.mubr.bf16.mxu0 %v3748_v36 }
  0xdf   : > { %3470 = vmatmul.mubr.bf16.gmra.mrb[52].mxu0 %v3749_v38 }
  0xe0   : > { %3473 = vmatprep.mubr.bf16.mxu0 %v3750_v40 }
  0xe7   : > { %3474 = vmatmul.mubr.bf16.gmra.mrb[56].mxu0 %v3751_v42 }
  0xe8   : > { %3477 = vmatprep.mubr.bf16.mxu0 %v3752_v44  ;;  %v3781_v44 = vld [vmem:[%s4180_s15 + $0x1c8] sm:$0xff]  }
  0xef   : > { %3478 = vmatmul.mubr.bf16.gmra.mrb[60].mxu0 %v3753_v46 }
  0xf0   : > { %3481 = vmatprep.mubr.bf16.mxu0 %v3754_v48 }
  0xf7   : > { %3482 = vmatmul.mubr.bf16.gmra.mrb[64].mxu0 %v3755_v50 }
  0xf8   : > { %3485 = vmatprep.mubr.bf16.mxu0 %v3756_v52 }
  0xff   : > { %3486 = vmatmul.mubr.bf16.gmra.mrb[68].mxu0 %v3757_v54 }
 0x100   : > { %3489 = vmatprep.mubr.bf16.mxu0 %v3758_v56 }
 0x107   : > { %3490 = vmatmul.mubr.bf16.gmra.mrb[72].mxu0 %v3759_v58 }
 0x108   : > { %3493 = vmatprep.mubr.bf16.mxu0 %v3760_v60  ;;  %v3785_v60 = vld [vmem:[%s4180_s15 + $0x1d8] sm:$0xff]  }
 0x10f   : > { %3494 = vmatmul.mubr.bf16.gmra.mrb[76].mxu0 %v3761_v62 }
 0x110   : > { %3497 = vmatprep.mubr.bf16.mxu0 %v3762_v0 }
 0x117   : > { %3498 = vmatmul.mubr.bf16.gmra.mrb[80].mxu0 %v3763_v2 }
 0x118   : > { %3501 = vmatprep.mubr.bf16.mxu0 %v3764_v4 }
 0x11f   : > { %3502 = vmatmul.mubr.bf16.gmra.mrb[84].mxu0 %v3765_v6 }
 0x120   : > { %3505 = vmatprep.mubr.bf16.mxu0 %v3766_v8 }
 0x127   : > { %3506 = vmatmul.mubr.bf16.gmra.mrb[88].mxu0 %v3767_v10 }
 0x128   : > { %3509 = vmatprep.mubr.bf16.mxu0 %v3768_v12  ;;  %v3789_v12 = vld [vmem:[%s4180_s15 + $0x1e8] sm:$0xff]  }
 0x12f   : > { %3510 = vmatmul.mubr.bf16.gmra.mrb[92].mxu0 %v3769_v14 }
 0x130   : > { %3513 = vmatprep.mubr.bf16.mxu0 %v3770_v16 }
 0x137   : > { %3514 = vmatmul.mubr.bf16.gmra.mrb[96].mxu0 %v3771_v18 }
 0x138   : > { %3517 = vmatprep.mubr.bf16.mxu0 %v3772_v19 }
 0x13f   : > { %3518 = vmatmul.mubr.bf16.gmra.mrb[100].mxu0 %v3773_v20 }
 0x140   : > { %3521 = vmatprep.mubr.bf16.mxu0 %v3774_v21 }
 0x147   : > { %3522 = vmatmul.mubr.bf16.gmra.mrb[104].mxu0 %v3775_v22 }
 0x148   : > { %3525 = vmatprep.mubr.bf16.mxu0 %v3776_v23 }
 0x14a   : > { %v3419_v25 = vpop.f32.mrb[0].mxu0 }
 0x14b   : > { %v1186_v26 = vadd.f32 %v3419_v25, %v4296_v24  ;;  %v1177_v27 = vpop.f32.mrb[1].mxu0 }
 0x14c   : > { %v1178_v29 = vadd.f32 %v4296_v24, %v1177_v27  ;;  %v3420_v30 = vpop.f32.mrb[2].mxu0 }
 0x14d   : > { %v1189_v32 = vadd.f32 %v3420_v30, %v4296_v24  ;;  %v1180_v33 = vpop.f32.mrb[3].mxu0  ;;  %v1962_v35 = vmax.f32 %v1186_v26, 0.0 }
 0x14e   : > { %v1181_v34 = vadd.f32 %v4296_v24, %v1180_v33  ;;  %v1960_v37 = vmax.f32 %v1178_v29, 0.0  ;;  %v3793_v29 = vld [vmem:[%s4180_s15 + $0x1f8] sm:$0xff]  }
 0x14f   : > { %v1963_v36 = vmax.f32 %v1189_v32, 0.0  ;;  %3526 = vmatmul.mubr.bf16.gmra.mrb[108].mxu0 %v3777_v28  ;;  %v3796_v32 = vld [vmem:[%s4180_s15 + $0x200] sm:$0xff]  }
 0x150   : > { %v1961_v38 = vmax.f32 %v1181_v34, 0.0  ;;  %3529 = vmatprep.mubr.bf16.mxu0 %v3780_v31 }
 0x151   : > { %v4304_v39 = vpack.c.bf16 %v1963_v36, %v1962_v35 }
 0x152   : > { %v4306_v40 = vpack.c.bf16 %v1961_v38, %v1960_v37  ;;  %v3423_v41 = vpop.f32.mrb[4].mxu0 }
 0x153   : > { %v1202_v42 = vadd.f32 %v3423_v41, %v4296_v24  ;;  %v1193_v43 = vpop.f32.mrb[5].mxu0 }
 0x154   : > { %v1194_v45 = vadd.f32 %v4296_v24, %v1193_v43  ;;  %v3424_v46 = vpop.f32.mrb[6].mxu0 }
 0x155   : > { %v1205_v48 = vadd.f32 %v3424_v46, %v4296_v24  ;;  %v1196_v49 = vpop.f32.mrb[7].mxu0  ;;  %v1966_v51 = vmax.f32 %v1202_v42, 0.0 }
 0x156   : > { %v1197_v50 = vadd.f32 %v4296_v24, %v1196_v49  ;;  %v1964_v53 = vmax.f32 %v1194_v45, 0.0 }
 0x157   : > { %v1967_v52 = vmax.f32 %v1205_v48, 0.0  ;;  %3530 = vmatmul.mubr.bf16.gmra.mrb[112].mxu0 %v3781_v44 }
 0x158   : > { %v1965_v54 = vmax.f32 %v1197_v50, 0.0  ;;  %3533 = vmatprep.mubr.bf16.mxu0 %v3784_v47  ;;  %v3797_v47 = vld [vmem:[%s4180_s15 + $0x208] sm:$0xff]   ;;  %v3800_v50 = vld [vmem:[%s4180_s15 + $0x210] sm:$0xff]  }
 0x159   : > { %v4314_v55 = vpack.c.bf16 %v1967_v52, %v1966_v51 }
 0x15a   : > { %v4316_v56 = vpack.c.bf16 %v1965_v54, %v1964_v53  ;;  %v3427_v57 = vpop.f32.mrb[8].mxu0 }
 0x15b   : > { %v1218_v58 = vadd.f32 %v3427_v57, %v4296_v24  ;;  %v1209_v59 = vpop.f32.mrb[9].mxu0 }
 0x15c   : > { %v1210_v61 = vadd.f32 %v4296_v24, %v1209_v59  ;;  %v3428_v62 = vpop.f32.mrb[10].mxu0 }
 0x15d   : > { %v1221_v0 = vadd.f32 %v3428_v62, %v4296_v24  ;;  %v1212_v1 = vpop.f32.mrb[11].mxu0  ;;  %v1970_v3 = vmax.f32 %v1218_v58, 0.0 }
 0x15e   : > { %v1213_v2 = vadd.f32 %v4296_v24, %v1212_v1  ;;  %v1968_v5 = vmax.f32 %v1210_v61, 0.0  ;;  %v3801_v1 = vld [vmem:[%s4180_s15 + $0x218] sm:$0xff]  }
 0x15f   : > { %v1971_v4 = vmax.f32 %v1221_v0, 0.0  ;;  %3534 = vmatmul.mubr.bf16.gmra.mrb[116].mxu0 %v3785_v60 }
 0x160   : > { %v1969_v6 = vmax.f32 %v1213_v2, 0.0  ;;  %3537 = vmatprep.mubr.bf16.mxu0 %v3788_v63 }
 0x161   : > { %v4324_v7 = vpack.c.bf16 %v1971_v4, %v1970_v3  ;;  %v3804_v3 = vld [vmem:[%s4180_s15 + $0x220] sm:$0xff]  }
 0x162   : > { %v4326_v8 = vpack.c.bf16 %v1969_v6, %v1968_v5  ;;  %v3431_v9 = vpop.f32.mrb[12].mxu0 }
 0x163   : > { %v1234_v10 = vadd.f32 %v3431_v9, %v4296_v24  ;;  %v1225_v11 = vpop.f32.mrb[13].mxu0 }
 0x164   : > { %v1226_v13 = vadd.f32 %v4296_v24, %v1225_v11  ;;  %v3432_v14 = vpop.f32.mrb[14].mxu0 }
 0x165   : > { %v1237_v16 = vadd.f32 %v3432_v14, %v4296_v24  ;;  %v1228_v17 = vpop.f32.mrb[15].mxu0  ;;  %v1974_v19 = vmax.f32 %v1234_v10, 0.0 }
 0x166   : > { %v1229_v18 = vadd.f32 %v4296_v24, %v1228_v17  ;;  %v1972_v21 = vmax.f32 %v1226_v13, 0.0  ;;  %v3805_v17 = vld [vmem:[%s4180_s15 + $0x228] sm:$0xff]  }
 0x167   : > { %v1975_v20 = vmax.f32 %v1237_v16, 0.0  ;;  %3538 = vmatmul.mubr.bf16.gmra.mrb[120].mxu0 %v3789_v12 }
 0x168   : > { %v1973_v22 = vmax.f32 %v1229_v18, 0.0  ;;  %3541 = vmatprep.mubr.bf16.mxu0 %v3792_v15 }
 0x169   : > { %v4334_v23 = vpack.c.bf16 %v1975_v20, %v1974_v19  ;;  %v3808_v19 = vld [vmem:[%s4180_s15 + $0x230] sm:$0xff]  }
 0x16a   : > { %v4336_v25 = vpack.c.bf16 %v1973_v22, %v1972_v21  ;;  %v3435_v26 = vpop.f32.mrb[16].mxu0 }
 0x16b   : > { %v1250_v27 = vadd.f32 %v3435_v26, %v4296_v24  ;;  %v1241_v28 = vpop.f32.mrb[17].mxu0 }
 0x16c   : > { %v1242_v30 = vadd.f32 %v4296_v24, %v1241_v28  ;;  %v3436_v31 = vpop.f32.mrb[18].mxu0 }
 0x16d   : > { %v1253_v33 = vadd.f32 %v3436_v31, %v4296_v24  ;;  %v1244_v34 = vpop.f32.mrb[19].mxu0  ;;  %v1978_v36 = vmax.f32 %v1250_v27, 0.0 }
 0x16e   : > { %v1245_v35 = vadd.f32 %v4296_v24, %v1244_v34  ;;  %v1976_v38 = vmax.f32 %v1242_v30, 0.0  ;;  %v3809_v34 = vld [vmem:[%s4180_s15 + $0x238] sm:$0xff]  }
 0x16f   : > { %v1979_v37 = vmax.f32 %v1253_v33, 0.0  ;;  %3542 = vmatmul.mubr.bf16.gmra.mrb[124].mxu0 %v3793_v29 }
 0x170   : > { %v1977_v41 = vmax.f32 %v1245_v35, 0.0  ;;  %3545 = vmatprep.mubr.bf16.mxu0 %v3796_v32 }
 0x171   : > { %v2193_v42 = vpack.c.bf16 %v1979_v37, %v1978_v36  ;;  %v3812_v36 = vld [vmem:[%s4180_s15 + $0x240] sm:$0xff]  }
 0x172   : > { %v2192_v43 = vpack.c.bf16 %v1977_v41, %v1976_v38  ;;  %v3439_v44 = vpop.f32.mrb[20].mxu0 }
 0x173   : > { %v1266_v45 = vadd.f32 %v3439_v44, %v4296_v24  ;;  %v1257_v46 = vpop.f32.mrb[21].mxu0 }
 0x174   : > { %v1258_v48 = vadd.f32 %v4296_v24, %v1257_v46  ;;  %v3440_v49 = vpop.f32.mrb[22].mxu0  ;;  %3223 = vmatprep.subr.bf16.mxu1 %v2192_v43 }
 0x175   : > { %v1269_v51 = vadd.f32 %v3440_v49, %v4296_v24  ;;  %v1260_v52 = vpop.f32.mrb[23].mxu0  ;;  %3224 = vmatpush3.bf16.msra.mxu1 %v4306_v40  ;;  %v1982_v54 = vmax.f32 %v1266_v45, 0.0  ;;  %v3820_v45 = vld [vmem:[#allocation5] ss:$52 sps:$4 sm:$0xff]  }
 0x176   : > { %v1261_v53 = vadd.f32 %v4296_v24, %v1260_v52  ;;  %3225 = vmatprep.subr.bf16.mxu1 %v2193_v42  ;;  %v1980_v58 = vmax.f32 %v1258_v48, 0.0 }
 0x177   : > { %v1983_v57 = vmax.f32 %v1269_v51, 0.0  ;;  %3546 = vmatmul.mubr.bf16.gmra.mrb[128].mxu0 %v3797_v47  ;;  %v3823_v47 = vld [vmem:[#allocation5 + $0x6c] ss:$52 sps:$4 sm:$0xff]  }
 0x178   : > { %v1981_v59 = vmax.f32 %v1261_v53, 0.0  ;;  %3549 = vmatprep.mubr.bf16.mxu0 %v3800_v50  ;;  %v3813_v51 = vld [vmem:[%s4180_s15 + $0x248] sm:$0xff]   ;;  %s2877_s15 = sshll.u32 %s284_s27, 4  ;;  %s4720_s15 = int_to_ptr.vmem [resolvable:$true] %s2877_s15 }
 0x179   : > { %v2195_v60 = vpack.c.bf16 %v1983_v57, %v1982_v54  ;;  %3226 = vmatpush3.bf16.msra.mxu1 %v4304_v39  ;;  %s3921_s26 = scalar_lea.vmem %s4720_s15, 512  ;;  %p3928_p10 = scmp.lt.s32.totalorder %s4720_s15, %s3926_s8 }
 0x17a   : > { %v2194_v61 = vpack.c.bf16 %v1981_v59, %v1980_v58  ;;  %v3443_v62 = vpop.f32.mrb[24].mxu0  ;;  %p3922_p4 = scmp.ne.s32.totalorder %s4720_s15, %s3921_s26  ;;  %p3929_p13 = scmp.lt.s32.totalorder %s3927_s18, %s3921_s26 }
 0x17b   : > { %v1282_v63 = vadd.f32 %v3443_v62, %v4296_v24  ;;  %v1273_v0 = vpop.f32.mrb[25].mxu0  ;;  %v3825_v62 = vld [vmem:[#allocation5 + $0x68] ss:$52 sps:$4 sm:$0xff]  }
 0x17c   : > { %v1274_v40 = vadd.f32 %v4296_v24, %v1273_v0  ;;  %v3444_v2 = vpop.f32.mrb[26].mxu0  ;;  %3227 = vmatprep.subr.bf16.mxu1 %v2194_v61  ;;  %v3828_v0 = vld [vmem:[#allocation5 + $0xc] ss:$52 sps:$4 sm:$0xff]   ;;  %p3923_p6 = pnand %p3922_p4, %p4128_p12  ;;  %p3930_p3 = por %p3929_p13, %p3928_p10 }
 0x17d   : > { %v1285_v4 = vadd.f32 %v3444_v2, %v4296_v24  ;;  %v1276_v5 = vpop.f32.mrb[27].mxu0  ;;  %3228 = vmatpush3.bf16.msra.mxu1 %v4316_v56  ;;  %v1986_v39 = vmax.f32 %v1282_v63, 0.0 }
 0x17e   : > { %v1277_v6 = vadd.f32 %v4296_v24, %v1276_v5  ;;  %3229 = vmatprep.subr.bf16.mxu1 %v2195_v60  ;;  %v1984_v10 = vmax.f32 %v1274_v40, 0.0  ;;  %p3924_p8 = pneg %p3923_p6 }
 0x17f   : > { %v1987_v9 = vmax.f32 %v1285_v4, 0.0  ;;  %3550 = vmatmul.mubr.bf16.gmra.mrb[132].mxu0 %v3801_v1 }
 0x180   : > { %v1985_v11 = vmax.f32 %v1277_v6, 0.0  ;;  %3553 = vmatprep.mubr.bf16.mxu0 %v3804_v3  ;;  %p3931_p7 = pnand %p3930_p3, %p3924_p8 }
 0x181   : > { %v2197_v12 = vpack.c.bf16 %v1987_v9, %v1986_v39  ;;  %3230 = vmatpush3.bf16.msra.mxu1 %v4314_v55 }
 0x182   : > { %v2196_v13 = vpack.c.bf16 %v1985_v11, %v1984_v10  ;;  %v3447_v14 = vpop.f32.mrb[28].mxu0 }
 0x183   : > { %v1298_v15 = vadd.f32 %v3447_v14, %v4296_v24  ;;  %v1289_v16 = vpop.f32.mrb[29].mxu0 }
 0x184   : > { %v1290_v56 = vadd.f32 %v4296_v24, %v1289_v16  ;;  %v3448_v18 = vpop.f32.mrb[30].mxu0  ;;  %3231 = vmatprep.subr.bf16.mxu1 %v2196_v13 }
 0x185   : > { %v1301_v20 = vadd.f32 %v3448_v18, %v4296_v24  ;;  %v1292_v21 = vpop.f32.mrb[31].mxu0  ;;  %3232 = vmatpush3.bf16.msra.mxu1 %v4326_v8  ;;  %v1990_v55 = vmax.f32 %v1298_v15, 0.0 }
 0x186   : > { %v1293_v22 = vadd.f32 %v4296_v24, %v1292_v21  ;;  %3233 = vmatprep.subr.bf16.mxu1 %v2197_v12  ;;  %v1988_v27 = vmax.f32 %v1290_v56, 0.0 }
 0x187   : > { %v1991_v26 = vmax.f32 %v1301_v20, 0.0  ;;  %3554 = vmatmul.mubr.bf16.gmra.mrb[136].mxu0 %v3805_v17 }
 0x188   : > { %v1989_v28 = vmax.f32 %v1293_v22, 0.0  ;;  %3557 = vmatprep.mubr.bf16.mxu0 %v3808_v19 }
 0x189   : > { %v2199_v29 = vpack.c.bf16 %v1991_v26, %v1990_v55  ;;  %3234 = vmatpush3.bf16.msra.mxu1 %v4324_v7 }
 0x18a   : > { %v2198_v30 = vpack.c.bf16 %v1989_v28, %v1988_v27  ;;  %v3451_v31 = vpop.f32.mrb[32].mxu0 }
 0x18b   : > { %v1314_v32 = vadd.f32 %v3451_v31, %v4296_v24  ;;  %v1305_v33 = vpop.f32.mrb[33].mxu0 }
 0x18c   : > { %v1306_v8 = vadd.f32 %v4296_v24, %v1305_v33  ;;  %v3452_v35 = vpop.f32.mrb[34].mxu0  ;;  %3235 = vmatprep.subr.bf16.mxu1 %v2198_v30 }
 0x18d   : > { %v1317_v37 = vadd.f32 %v3452_v35, %v4296_v24  ;;  %v1308_v38 = vpop.f32.mrb[35].mxu0  ;;  %3236 = vmatpush3.bf16.msra.mxu1 %v4336_v25  ;;  %v1994_v7 = vmax.f32 %v1314_v32, 0.0 }
 0x18e   : > { %v1309_v41 = vadd.f32 %v4296_v24, %v1308_v38  ;;  %3237 = vmatprep.subr.bf16.mxu1 %v2199_v29  ;;  %v1992_v43 = vmax.f32 %v1306_v8, 0.0 }
 0x18f   : > { %v1995_v42 = vmax.f32 %v1317_v37, 0.0  ;;  %3558 = vmatmul.mubr.bf16.gmra.mrb[140].mxu0 %v3809_v34 }
 0x190   : > { %v1993_v44 = vmax.f32 %v1309_v41, 0.0  ;;  %3561 = vmatprep.mubr.bf16.mxu0 %v3812_v36 }
 0x191   : > { %v4375_v46 = vpack.c.bf16 %v1995_v42, %v1994_v7  ;;  %3238 = vmatpush3.bf16.msra.mxu1 %v4334_v23 }
 0x192   : > { %v4378_v48 = vpack.c.bf16 %v1993_v44, %v1992_v43  ;;  %v3455_v49 = vpop.f32.mrb[36].mxu0 }
 0x193   : > { %v1330_v25 = vadd.f32 %v3455_v49, %v4296_v24  ;;  %v1321_v50 = vpop.f32.mrb[37].mxu0 }
 0x194   : > { %v1322_v52 = vadd.f32 %v4296_v24, %v1321_v50  ;;  %v3456_v53 = vpop.f32.mrb[38].mxu0  ;;  %2452 = vmatmul.mubr.bf16.vlgmr.msra.gmra.mrb[48].mxu1 %v3820_v45 }
 0x195   : > { %v1333_v54 = vadd.f32 %v3456_v53, %v4296_v24  ;;  %v1324_v57 = vpop.f32.mrb[39].mxu0  ;;  %2459 = vmatprep.mubr.bf16.mxu1 %v3823_v47  ;;  %v1998_v59 = vmax.f32 %v1330_v25, 0.0 }
 0x196   : > { %v1325_v58 = vadd.f32 %v4296_v24, %v1324_v57  ;;  %v1996_v60 = vmax.f32 %v1322_v52, 0.0 }
 0x197   : > { %v1999_v23 = vmax.f32 %v1333_v54, 0.0  ;;  %3562 = vmatmul.mubr.bf16.gmra.mrb[144].mxu0 %v3813_v51 }
 0x198   : > { %v1997_v61 = vmax.f32 %v1325_v58, 0.0 }
 0x199   : > { %v4385_v63 = vpack.c.bf16 %v1999_v23, %v1998_v59 }
 0x19a   : > { %v4387_v1 = vpack.c.bf16 %v1997_v61, %v1996_v60  ;;  %v3459_v40 = vpop.f32.mrb[40].mxu0 }
 0x19b   : > { %v1346_v2 = vadd.f32 %v3459_v40, %v4296_v24  ;;  %v1337_v3 = vpop.f32.mrb[41].mxu0 }
 0x19c   : > { %v1338_v4 = vadd.f32 %v4296_v24, %v1337_v3  ;;  %v3460_v5 = vpop.f32.mrb[42].mxu0  ;;  %2460 = vmatmul.mubr.bf16.gmra.mrb[52].mxu1 %v3825_v62 }
 0x19d   : > { %v1349_v6 = vadd.f32 %v3460_v5, %v4296_v24  ;;  %v1340_v39 = vpop.f32.mrb[43].mxu0  ;;  %2500 = vmatprep.mubr.bf16.mxu1 %v3828_v0  ;;  %v2002_v10 = vmax.f32 %v1346_v2, 0.0 }
 0x19e   : > { %v1341_v9 = vadd.f32 %v4296_v24, %v1340_v39  ;;  %v2000_v12 = vmax.f32 %v1338_v4, 0.0 }
 0x19f   : > { %v2003_v11 = vmax.f32 %v1349_v6, 0.0 }
 0x1a0   : > { %v2001_v13 = vmax.f32 %v1341_v9, 0.0 }
 0x1a1   : > { %v4393_v14 = vpack.c.bf16 %v2003_v11, %v2002_v10 }
 0x1a2   : > { %v4395_v15 = vpack.c.bf16 %v2001_v13, %v2000_v12  ;;  %v3463_v16 = vpop.f32.mrb[44].mxu0 }
 0x1a3   : > { %v1362_v17 = vadd.f32 %v3463_v16, %v4296_v24  ;;  %v1353_v56 = vpop.f32.mrb[45].mxu0 }
 0x1a4   : > { %v1354_v18 = vadd.f32 %v4296_v24, %v1353_v56  ;;  %v3464_v19 = vpop.f32.mrb[46].mxu0 }
 0x1a5   : > { %v1365_v20 = vadd.f32 %v3464_v19, %v4296_v24  ;;  %v1356_v21 = vpop.f32.mrb[47].mxu0  ;;  %v2006_v55 = vmax.f32 %v1362_v17, 0.0 }
 0x1a6   : > { %v1357_v22 = vadd.f32 %v4296_v24, %v1356_v21  ;;  %v2004_v27 = vmax.f32 %v1354_v18, 0.0 }
 0x1a7   : > { %v2007_v26 = vmax.f32 %v1365_v20, 0.0 }
 0x1a8   : > { %v2005_v28 = vmax.f32 %v1357_v22, 0.0 }
 0x1a9   : > { %v4401_v29 = vpack.c.bf16 %v2007_v26, %v2006_v55 }
 0x1aa   : > { %v4403_v30 = vpack.c.bf16 %v2005_v28, %v2004_v27  ;;  %v3467_v31 = vpop.f32.mrb[48].mxu0 }
 0x1ab   : > { %v1378_v32 = vadd.f32 %v3467_v31, %v4296_v24  ;;  %v1369_v33 = vpop.f32.mrb[49].mxu0 }
 0x1ac   : > { %v1370_v34 = vadd.f32 %v4296_v24, %v1369_v33  ;;  %v3468_v8 = vpop.f32.mrb[50].mxu0 }
 0x1ad   : > { %v1381_v35 = vadd.f32 %v3468_v8, %v4296_v24  ;;  %v1372_v36 = vpop.f32.mrb[51].mxu0  ;;  %v2010_v38 = vmax.f32 %v1378_v32, 0.0 }
 0x1ae   : > { %v1373_v37 = vadd.f32 %v4296_v24, %v1372_v36  ;;  %v2008_v7 = vmax.f32 %v1370_v34, 0.0 }
 0x1af   : > { %v2011_v41 = vmax.f32 %v1381_v35, 0.0 }
 0x1b0   : > { %v2009_v42 = vmax.f32 %v1373_v37, 0.0 }
 0x1b1   : > { %v2209_v43 = vpack.c.bf16 %v2011_v41, %v2010_v38  ;;  %v3826_v38 = vld [vmem:[#allocation5 + $0x8] ss:$52 sps:$4 sm:$0xff]  }
 0x1b2   : > { %v2208_v44 = vpack.c.bf16 %v2009_v42, %v2008_v7  ;;  %v3471_v45 = vpop.f32.mrb[52].mxu0  ;;  %v3829_v42 = vld [vmem:[#allocation5 + $0x74] ss:$52 sps:$4 sm:$0xff]  }
 0x1b3   : > { %v1394_v47 = vadd.f32 %v3471_v45, %v4296_v24  ;;  %v1385_v49 = vpop.f32.mrb[53].mxu0 }
 0x1b4   : > { %v1386_v25 = vadd.f32 %v4296_v24, %v1385_v49  ;;  %v3472_v50 = vpop.f32.mrb[54].mxu0  ;;  %3251 = vmatprep.subr.bf16.mxu1 %v2208_v44 }
 0x1b5   : > { %v1397_v51 = vadd.f32 %v3472_v50, %v4296_v24  ;;  %v1388_v52 = vpop.f32.mrb[55].mxu0  ;;  %3252 = vmatpush3.bf16.msra.mxu1 %v4378_v48  ;;  %v2014_v54 = vmax.f32 %v1394_v47, 0.0 }
 0x1b6   : > { %v1389_v53 = vadd.f32 %v4296_v24, %v1388_v52  ;;  %3253 = vmatprep.subr.bf16.mxu1 %v2209_v43  ;;  %v2012_v58 = vmax.f32 %v1386_v25, 0.0 }
 0x1b7   : > { %v2015_v57 = vmax.f32 %v1397_v51, 0.0 }
 0x1b8   : > { %v2013_v59 = vmax.f32 %v1389_v53, 0.0 }
 0x1b9   : > { %v2211_v23 = vpack.c.bf16 %v2015_v57, %v2014_v54  ;;  %3254 = vmatpush3.bf16.msra.mxu1 %v4375_v46 }
 0x1ba   : > { %v2210_v60 = vpack.c.bf16 %v2013_v59, %v2012_v58  ;;  %v3475_v61 = vpop.f32.mrb[56].mxu0 }
 0x1bb   : > { %v1410_v62 = vadd.f32 %v3475_v61, %v4296_v24  ;;  %v1401_v0 = vpop.f32.mrb[57].mxu0 }
 0x1bc   : > { %v1402_v40 = vadd.f32 %v4296_v24, %v1401_v0  ;;  %v3476_v2 = vpop.f32.mrb[58].mxu0  ;;  %3255 = vmatprep.subr.bf16.mxu1 %v2210_v60 }
 0x1bd   : > { %v1413_v48 = vadd.f32 %v3476_v2, %v4296_v24  ;;  %v1404_v3 = vpop.f32.mrb[59].mxu0  ;;  %3256 = vmatpush3.bf16.msra.mxu1 %v4387_v1  ;;  %v2018_v5 = vmax.f32 %v1410_v62, 0.0 }
 0x1be   : > { %v1405_v4 = vadd.f32 %v4296_v24, %v1404_v3  ;;  %3257 = vmatprep.subr.bf16.mxu1 %v2211_v23  ;;  %v2016_v46 = vmax.f32 %v1402_v40, 0.0 }
 0x1bf   : > { %v2019_v6 = vmax.f32 %v1413_v48, 0.0 }
 0x1c0   : > { %v2017_v39 = vmax.f32 %v1405_v4, 0.0 }
 0x1c1   : > { %v2213_v9 = vpack.c.bf16 %v2019_v6, %v2018_v5  ;;  %3258 = vmatpush3.bf16.msra.mxu1 %v4385_v63  ;;  %v3831_v5 = vld [vmem:[#allocation5 + $0x70] ss:$52 sps:$4 sm:$0xff]  }
 0x1c2   : > { %v2212_v10 = vpack.c.bf16 %v2017_v39, %v2016_v46  ;;  %v3479_v11 = vpop.f32.mrb[60].mxu0  ;;  %v3834_v39 = vld [vmem:[#allocation5 + $0x14] ss:$52 sps:$4 sm:$0xff]  }
 0x1c3   : > { %v1426_v12 = vadd.f32 %v3479_v11, %v4296_v24  ;;  %v1417_v13 = vpop.f32.mrb[61].mxu0 }
 0x1c4   : > { %v1418_v16 = vadd.f32 %v4296_v24, %v1417_v13  ;;  %v3480_v17 = vpop.f32.mrb[62].mxu0  ;;  %3259 = vmatprep.subr.bf16.mxu1 %v2212_v10 }
 0x1c5   : > { %v1429_v1 = vadd.f32 %v3480_v17, %v4296_v24  ;;  %v1420_v56 = vpop.f32.mrb[63].mxu0  ;;  %3260 = vmatpush3.bf16.msra.mxu1 %v4395_v15  ;;  %v2022_v19 = vmax.f32 %v1426_v12, 0.0 }
 0x1c6   : > { %v1421_v18 = vadd.f32 %v4296_v24, %v1420_v56  ;;  %3261 = vmatprep.subr.bf16.mxu1 %v2213_v9  ;;  %v2020_v63 = vmax.f32 %v1418_v16, 0.0 }
 0x1c7   : > { %v2023_v20 = vmax.f32 %v1429_v1, 0.0 }
 0x1c8   : > { %v2021_v21 = vmax.f32 %v1421_v18, 0.0 }
 0x1c9   : > { %v2215_v22 = vpack.c.bf16 %v2023_v20, %v2022_v19  ;;  %3262 = vmatpush3.bf16.msra.mxu1 %v4393_v14  ;;  %v3567_v14 = vpop.f32.mrb[0].mxu1 }
 0x1ca   : > { %v2214_v55 = vpack.c.bf16 %v2021_v21, %v2020_v63  ;;  %v3483_v26 = vpop.f32.mrb[64].mxu0  ;;  %v1769_v41 = vpop.f32.mrb[1].mxu1 }
 0x1cb   : > { %v1442_v27 = vadd.f32 %v3483_v26, %v4296_v24  ;;  %v1433_v28 = vpop.f32.mrb[65].mxu0  ;;  %v3568_v43 = vpop.f32.mrb[2].mxu1  ;;  %v1770_v47 = vadd.f32 %v4296_v24, %v1769_v41 }
 0x1cc   : > { %v1434_v31 = vadd.f32 %v4296_v24, %v1433_v28  ;;  %v3484_v32 = vpop.f32.mrb[66].mxu0  ;;  %3263 = vmatprep.subr.bf16.mxu1 %v2214_v55  ;;  %v1781_v49 = vadd.f32 %v3568_v43, %v4296_v24  ;;  %v1772_v25 = vpop.f32.mrb[3].mxu1 }
 0x1cd   : > { %v1445_v15 = vadd.f32 %v3484_v32, %v4296_v24  ;;  %v1436_v33 = vpop.f32.mrb[67].mxu0  ;;  %3264 = vmatpush3.bf16.msra.mxu1 %v4403_v30  ;;  %v2026_v8 = vmax.f32 %v1442_v27, 0.0  ;;  %v1778_v30 = vadd.f32 %v3567_v14, %v4296_v24  ;;  %v1773_v52 = vadd.f32 %v4296_v24, %v1772_v25  ;;  %v3571_v48 = vpop.f32.mrb[4].mxu1 }
 0x1ce   : > { %v1437_v34 = vadd.f32 %v4296_v24, %v1436_v33  ;;  %3265 = vmatprep.subr.bf16.mxu1 %v2215_v22  ;;  %v2024_v36 = vmax.f32 %v1434_v31, 0.0  ;;  %v2108_v57 = vmax.f32 %v1770_v47, 0.0  ;;  %v2111_v58 = vmax.f32 %v1781_v49, 0.0  ;;  %v1785_v6 = vpop.f32.mrb[5].mxu1 }
 0x1cf   : > { %v2027_v35 = vmax.f32 %v1445_v15, 0.0  ;;  %v2110_v54 = vmax.f32 %v1778_v30, 0.0  ;;  %v2109_v60 = vmax.f32 %v1773_v52, 0.0  ;;  %v3572_v9 = vpop.f32.mrb[6].mxu1  ;;  %v1794_v12 = vadd.f32 %v3571_v48, %v4296_v24 }
 0x1d0   : > { %v2025_v37 = vmax.f32 %v1437_v34, 0.0  ;;  %v1786_v13 = vadd.f32 %v4296_v24, %v1785_v6  ;;  %v1797_v16 = vadd.f32 %v3572_v9, %v4296_v24  ;;  %v1788_v17 = vpop.f32.mrb[7].mxu1 }
 0x1d1   : > { %v4432_v7 = vpack.c.bf16 %v2027_v35, %v2026_v8  ;;  %3266 = vmatpush3.bf16.msra.mxu1 %v4401_v29  ;;  %v4445_v62 = vpack.c.bf16 %v2111_v58, %v2110_v54  ;;  %v4447_v2 = vpack.c.bf16 %v2109_v60, %v2108_v57  ;;  %v1789_v18 = vadd.f32 %v4296_v24, %v1788_v17  ;;  %v3575_v34 = vpop.f32.mrb[8].mxu1 }
 0x1d2   : > { %v4435_v44 = vpack.c.bf16 %v2025_v37, %v2024_v36  ;;  %v3487_v45 = vpop.f32.mrb[68].mxu0  ;;  %v2114_v63 = vmax.f32 %v1794_v12, 0.0  ;;  %v2112_v21 = vmax.f32 %v1786_v13, 0.0  ;;  %v2115_v22 = vmax.f32 %v1797_v16, 0.0  ;;  %v1801_v14 = vpop.f32.mrb[9].mxu1 }
 0x1d3   : > { %v1458_v50 = vadd.f32 %v3487_v45, %v4296_v24  ;;  %v1449_v51 = vpop.f32.mrb[69].mxu0  ;;  %v2113_v27 = vmax.f32 %v1789_v18, 0.0  ;;  %v3576_v37 = vpop.f32.mrb[10].mxu1  ;;  %v1802_v43 = vadd.f32 %v4296_v24, %v1801_v14 }
 0x1d4   : > { %v1450_v53 = vadd.f32 %v4296_v24, %v1449_v51  ;;  %v3488_v29 = vpop.f32.mrb[70].mxu0  ;;  %2501 = vmatmul.mubr.bf16.vlgmr.msra.gmra.mrb[56].mxu1 %v3826_v38  ;;  %v4461_v31 = vpack.c.bf16 %v2115_v22, %v2114_v63  ;;  %v1813_v45 = vadd.f32 %v3576_v37, %v4296_v24  ;;  %v1804_v30 = vpop.f32.mrb[11].mxu1 }
 0x1d5   : > { %v1461_v59 = vadd.f32 %v3488_v29, %v4296_v24  ;;  %v1452_v23 = vpop.f32.mrb[71].mxu0  ;;  %2508 = vmatprep.mubr.bf16.mxu1 %v3829_v42  ;;  %v2030_v0 = vmax.f32 %v1458_v50, 0.0  ;;  %v4463_v33 = vpack.c.bf16 %v2113_v27, %v2112_v21  ;;  %v1810_v42 = vadd.f32 %v3575_v34, %v4296_v24 }
 0x1d6   : > { %v1453_v61 = vadd.f32 %v4296_v24, %v1452_v23  ;;  %v2028_v3 = vmax.f32 %v1450_v53, 0.0  ;;  %v1805_v25 = vadd.f32 %v4296_v24, %v1804_v30  ;;  %v2116_v53 = vmax.f32 %v1802_v43, 0.0 }
 0x1d7   : > { %v2031_v40 = vmax.f32 %v1461_v59, 0.0  ;;  %v2118_v52 = vmax.f32 %v1810_v42, 0.0  ;;  %v2119_v29 = vmax.f32 %v1813_v45, 0.0 }
 0x1d8   : > { %v2029_v4 = vmax.f32 %v1453_v61, 0.0  ;;  %v2117_v58 = vmax.f32 %v1805_v25, 0.0 }
 0x1d9   : > { %v4449_v46 = vpack.c.bf16 %v2031_v40, %v2030_v0  ;;  %v4477_v23 = vpack.c.bf16 %v2119_v29, %v2118_v52  ;;  %v3579_v40 = vpop.f32.mrb[12].mxu1 }
 0x1da   : > { %v4451_v10 = vpack.c.bf16 %v2029_v4, %v2028_v3  ;;  %v3491_v11 = vpop.f32.mrb[72].mxu0  ;;  %v4479_v0 = vpack.c.bf16 %v2117_v58, %v2116_v53  ;;  %v1817_v4 = vpop.f32.mrb[13].mxu1 }
 0x1db   : > { %v1474_v1 = vadd.f32 %v3491_v11, %v4296_v24  ;;  %v1465_v56 = vpop.f32.mrb[73].mxu0  ;;  %v3580_v6 = vpop.f32.mrb[14].mxu1  ;;  %v1826_v11 = vadd.f32 %v3579_v40, %v4296_v24  ;;  %v1818_v12 = vadd.f32 %v4296_v24, %v1817_v4 }
 0x1dc   : > { %v1466_v19 = vadd.f32 %v4296_v24, %v1465_v56  ;;  %v3492_v20 = vpop.f32.mrb[74].mxu0  ;;  %2509 = vmatmul.mubr.bf16.gmra.mrb[60].mxu1 %v3831_v5  ;;  %v1829_v13 = vadd.f32 %v3580_v6, %v4296_v24  ;;  %v1820_v16 = vpop.f32.mrb[15].mxu1 }
 0x1dd   : > { %v1477_v55 = vadd.f32 %v3492_v20, %v4296_v24  ;;  %v1468_v26 = vpop.f32.mrb[75].mxu0  ;;  %2549 = vmatprep.mubr.bf16.mxu1 %v3834_v39  ;;  %v2034_v32 = vmax.f32 %v1474_v1, 0.0  ;;  %v1821_v56 = vadd.f32 %v4296_v24, %v1820_v16  ;;  %v2122_v20 = vmax.f32 %v1826_v11, 0.0 }
 0x1de   : > { %v1469_v28 = vadd.f32 %v4296_v24, %v1468_v26  ;;  %v2032_v8 = vmax.f32 %v1466_v19, 0.0  ;;  %v2120_v63 = vmax.f32 %v1818_v12, 0.0  ;;  %v2123_v21 = vmax.f32 %v1829_v13, 0.0 }
 0x1df   : > { %v2035_v15 = vmax.f32 %v1477_v55, 0.0  ;;  %v2121_v26 = vmax.f32 %v1821_v56, 0.0 }
 0x1e0   : > { %v2033_v35 = vmax.f32 %v1469_v28, 0.0  ;;  %v4493_v28 = vpack.c.bf16 %v2123_v21, %v2122_v20 }
 0x1e1   : > { %v4465_v36 = vpack.c.bf16 %v2035_v15, %v2034_v32  ;;  %v4495_v34 = vpack.c.bf16 %v2121_v26, %v2120_v63 }
 0x1e2   : > { %v4467_v38 = vpack.c.bf16 %v2033_v35, %v2032_v8  ;;  %v3495_v41 = vpop.f32.mrb[76].mxu0  ;;  %v3583_v8 = vpop.f32.mrb[16].mxu1 }
 0x1e3   : > { %v1490_v47 = vadd.f32 %v3495_v41, %v4296_v24  ;;  %v1481_v49 = vpop.f32.mrb[77].mxu0  ;;  %v1833_v37 = vpop.f32.mrb[17].mxu1  ;;  %v1842_v30 = vadd.f32 %v3583_v8, %v4296_v24 }
 0x1e4   : > { %v1482_v50 = vadd.f32 %v4296_v24, %v1481_v49  ;;  %v3496_v51 = vpop.f32.mrb[78].mxu0  ;;  %v3584_v42 = vpop.f32.mrb[18].mxu1 }
 0x1e5   : > { %v1493_v54 = vadd.f32 %v3496_v51, %v4296_v24  ;;  %v1484_v57 = vpop.f32.mrb[79].mxu0  ;;  %v2038_v60 = vmax.f32 %v1490_v47, 0.0  ;;  %v1834_v47 = vadd.f32 %v4296_v24, %v1833_v37  ;;  %v1845_v49 = vadd.f32 %v3584_v42, %v4296_v24  ;;  %v1836_v25 = vpop.f32.mrb[19].mxu1 }
 0x1e6   : > { %v1485_v59 = vadd.f32 %v4296_v24, %v1484_v57  ;;  %v2036_v48 = vmax.f32 %v1482_v50, 0.0  ;;  %v1837_v52 = vadd.f32 %v4296_v24, %v1836_v25 }
 0x1e7   : > { %v2039_v61 = vmax.f32 %v1493_v54, 0.0  ;;  %v2126_v54 = vmax.f32 %v1842_v30, 0.0  ;;  %v2124_v57 = vmax.f32 %v1834_v47, 0.0  ;;  %v2127_v58 = vmax.f32 %v1845_v49, 0.0 }
 0x1e8   : > { %v2037_v3 = vmax.f32 %v1485_v59, 0.0 }
 0x1e9   : > { %v4481_v5 = vpack.c.bf16 %v2039_v61, %v2038_v60  ;;  %v2125_v61 = vmax.f32 %v1837_v52, 0.0 }
 0x1ea   : > { %v4483_v39 = vpack.c.bf16 %v2037_v3, %v2036_v48  ;;  %v3499_v9 = vpop.f32.mrb[80].mxu0  ;;  %v4506_v48 = vpack.c.bf16 %v2127_v58, %v2126_v54  ;;  %v3587_v3 = vpop.f32.mrb[20].mxu1 }
 0x1eb   : > { %v1506_v17 = vadd.f32 %v3499_v9, %v4296_v24  ;;  %v1497_v1 = vpop.f32.mrb[81].mxu0  ;;  %v4508_v9 = vpack.c.bf16 %v2125_v61, %v2124_v57  ;;  %v1858_v11 = vadd.f32 %v3587_v3, %v4296_v24  ;;  %v1849_v12 = vpop.f32.mrb[21].mxu1 }
 0x1ec   : > { %v1498_v18 = vadd.f32 %v4296_v24, %v1497_v1  ;;  %v3500_v19 = vpop.f32.mrb[82].mxu0  ;;  %v3588_v1 = vpop.f32.mrb[22].mxu1 }
 0x1ed   : > { %v1509_v22 = vadd.f32 %v3500_v19, %v4296_v24  ;;  %v1500_v55 = vpop.f32.mrb[83].mxu0  ;;  %v2042_v32 = vmax.f32 %v1506_v17, 0.0  ;;  %v1850_v17 = vadd.f32 %v4296_v24, %v1849_v12  ;;  %v2130_v56 = vmax.f32 %v1858_v11, 0.0  ;;  %v1852_v19 = vpop.f32.mrb[23].mxu1 }
 0x1ee   : > { %v1501_v27 = vadd.f32 %v4296_v24, %v1500_v55  ;;  %v2040_v35 = vmax.f32 %v1498_v18, 0.0  ;;  %v1861_v18 = vadd.f32 %v3588_v1, %v4296_v24  ;;  %v3591_v42 = vpop.f32.mrb[24].mxu1 }
 0x1ef   : > { %v2043_v15 = vmax.f32 %v1509_v22, 0.0  ;;  %v2128_v21 = vmax.f32 %v1850_v17, 0.0  ;;  %v1853_v22 = vadd.f32 %v4296_v24, %v1852_v19  ;;  %v1874_v30 = vadd.f32 %v3591_v42, %v4296_v24  ;;  %v1865_v47 = vpop.f32.mrb[25].mxu1 }
 0x1f0   : > { %v2041_v14 = vmax.f32 %v1501_v27, 0.0  ;;  %v2131_v27 = vmax.f32 %v1861_v18, 0.0 }
 0x1f1   : > { %v2225_v41 = vpack.c.bf16 %v2043_v15, %v2042_v32  ;;  %v2129_v8 = vmax.f32 %v1853_v22, 0.0 }
 0x1f2   : > { %v2224_v43 = vpack.c.bf16 %v2041_v14, %v2040_v35  ;;  %v3503_v45 = vpop.f32.mrb[84].mxu0  ;;  %v4519_v14 = vpack.c.bf16 %v2131_v27, %v2130_v56 }
 0x1f3   : > { %v1522_v50 = vadd.f32 %v3503_v45, %v4296_v24  ;;  %v1513_v51 = vpop.f32.mrb[85].mxu0 }
 0x1f4   : > { %v1514_v53 = vadd.f32 %v4296_v24, %v1513_v51  ;;  %v3504_v29 = vpop.f32.mrb[86].mxu0  ;;  %3279 = vmatprep.subr.bf16.mxu1 %v2224_v43  ;;  %v3592_v51 = vpop.f32.mrb[26].mxu1 }
 0x1f5   : > { %v1525_v59 = vadd.f32 %v3504_v29, %v4296_v24  ;;  %v1516_v60 = vpop.f32.mrb[87].mxu0  ;;  %3280 = vmatpush3.bf16.msra.mxu1 %v4435_v44  ;;  %v2046_v4 = vmax.f32 %v1522_v50, 0.0  ;;  %v1866_v50 = vadd.f32 %v4296_v24, %v1865_v47  ;;  %v1868_v29 = vpop.f32.mrb[27].mxu1 }
 0x1f6   : > { %v1517_v40 = vadd.f32 %v4296_v24, %v1516_v60  ;;  %3281 = vmatprep.subr.bf16.mxu1 %v2225_v41  ;;  %v2044_v13 = vmax.f32 %v1514_v53, 0.0  ;;  %v4522_v41 = vpack.c.bf16 %v2129_v8, %v2128_v21  ;;  %v1877_v53 = vadd.f32 %v3592_v51, %v4296_v24  ;;  %v3595_v17 = vpop.f32.mrb[28].mxu1 }
 0x1f7   : > { %v2047_v6 = vmax.f32 %v1525_v59, 0.0  ;;  %v2132_v58 = vmax.f32 %v1866_v50, 0.0  ;;  %v4531_v59 = vld [vmem:[%s4771_s2] ss:$0 sm:$0xff]  ;;  %v1881_v18 = vpop.f32.mrb[29].mxu1 }
 0x1f8   : > { %v2045_v16 = vmax.f32 %v1517_v40, 0.0  ;;  %v1869_v60 = vadd.f32 %v4531_v59, %v1868_v29  ;;  %v2135_v3 = vmax.f32 %v1877_v53, 0.0  ;;  %v1890_v56 = vadd.f32 %v4531_v59, %v3595_v17  ;;  %v3596_v21 = vpop.f32.mrb[30].mxu1 }
 0x1f9   : > { %v2227_v44 = vpack.c.bf16 %v2047_v6, %v2046_v4  ;;  %3282 = vmatpush3.bf16.msra.mxu1 %v4432_v7 }
 0x1fa   : > { %v2226_v20 = vpack.c.bf16 %v2045_v16, %v2044_v13  ;;  %v3507_v63 = vpop.f32.mrb[88].mxu0 }
 0x1fb   : > { %v1538_v55 = vadd.f32 %v3507_v63, %v4296_v24  ;;  %v1529_v26 = vpop.f32.mrb[89].mxu0  ;;  %v1882_v63 = vadd.f32 %v4531_v59, %v1881_v18 }
 0x1fc   : > { %v1530_v32 = vadd.f32 %v4296_v24, %v1529_v26  ;;  %v3508_v15 = vpop.f32.mrb[90].mxu0  ;;  %3283 = vmatprep.subr.bf16.mxu1 %v2226_v20  ;;  %v1884_v26 = vpop.f32.mrb[31].mxu1 }
 0x1fd   : > { %v1541_v7 = vadd.f32 %v3508_v15, %v4296_v24  ;;  %v1532_v35 = vpop.f32.mrb[91].mxu0  ;;  %3284 = vmatpush3.bf16.msra.mxu1 %v4451_v10  ;;  %v2050_v43 = vmax.f32 %v1538_v55, 0.0  ;;  %v2134_v10 = vmax.f32 %v1874_v30, 0.0  ;;  %v1893_v55 = vadd.f32 %v4531_v59, %v3596_v21  ;;  %v3599_v50 = vpop.f32.mrb[32].mxu1 }
 0x1fe   : > { %v1533_v37 = vadd.f32 %v4296_v24, %v1532_v35  ;;  %3285 = vmatprep.subr.bf16.mxu1 %v2227_v44  ;;  %v2048_v49 = vmax.f32 %v1530_v32, 0.0  ;;  %v2133_v24 = vmax.f32 %v1869_v60, 0.0  ;;  %v2136_v15 = vmax.f32 %v1882_v63, 0.0  ;;  %v1897_v53 = vpop.f32.mrb[33].mxu1 }
 0x1ff   : > { %v2051_v45 = vmax.f32 %v1541_v7, 0.0  ;;  %v4538_v12 = vpack.c.bf16 %v2135_v3, %v2134_v10  ;;  %v1885_v8 = vadd.f32 %v4531_v59, %v1884_v26  ;;  %v1906_v10 = vadd.f32 %v4531_v59, %v3599_v50  ;;  %v3600_v60 = vpop.f32.mrb[34].mxu1 }
 0x200   : > { %v2049_v25 = vmax.f32 %v1533_v37, 0.0  ;;  %v4541_v16 = vpack.c.bf16 %v2133_v24, %v2132_v58  ;;  %v2139_v37 = vmax.f32 %v1893_v55, 0.0  ;;  %v1898_v58 = vadd.f32 %v4531_v59, %v1897_v53 }
 0x201   : > { %v2229_v52 = vpack.c.bf16 %v2051_v45, %v2050_v43  ;;  %3286 = vmatpush3.bf16.msra.mxu1 %v4449_v46  ;;  %v2137_v45 = vmax.f32 %v1885_v8, 0.0  ;;  %v1909_v3 = vadd.f32 %v4531_v59, %v3600_v60  ;;  %v3837_v8 = vld [vmem:[#allocation5 + $0x78] ss:$52 sps:$4 sm:$0xff]  }
 0x202   : > { %v2228_v54 = vpack.c.bf16 %v2049_v25, %v2048_v49  ;;  %v3511_v57 = vpop.f32.mrb[92].mxu0 }
 0x203   : > { %v1554_v61 = vadd.f32 %v4531_v59, %v3511_v57  ;;  %v1545_v40 = vpop.f32.mrb[93].mxu0  ;;  %v4555_v25 = vpack.c.bf16 %v2137_v45, %v2136_v15  ;;  %v3832_v57 = vld [vmem:[#allocation5 + $0x10] ss:$52 sps:$4 sm:$0xff]  }
 0x204   : > { %v1546_v46 = vadd.f32 %v4531_v59, %v1545_v40  ;;  %v3512_v4 = vpop.f32.mrb[94].mxu0  ;;  %3287 = vmatprep.subr.bf16.mxu1 %v2228_v54  ;;  %v2142_v40 = vmax.f32 %v1906_v10, 0.0 }
 0x205   : > { %v1557_v6 = vadd.f32 %v4531_v59, %v3512_v4  ;;  %v1548_v11 = vpop.f32.mrb[95].mxu0  ;;  %3288 = vmatpush3.bf16.msra.mxu1 %v4467_v38  ;;  %v2054_v1 = vmax.f32 %v1554_v61, 0.0  ;;  %v2138_v38 = vmax.f32 %v1890_v56, 0.0  ;;  %v3835_v61 = vld [vmem:[#allocation5 + $0x7c] ss:$52 sps:$4 sm:$0xff]  }
 0x206   : > { %v1549_v13 = vadd.f32 %v4531_v59, %v1548_v11  ;;  %3289 = vmatprep.subr.bf16.mxu1 %v2229_v52  ;;  %v2052_v19 = vmax.f32 %v1546_v46, 0.0  ;;  %v1900_v46 = vpop.f32.mrb[35].mxu1 }
 0x207   : > { %v2055_v44 = vmax.f32 %v1557_v6, 0.0  ;;  %v4552_v47 = vpack.c.bf16 %v2139_v37, %v2138_v38  ;;  %v2140_v6 = vmax.f32 %v1898_v58, 0.0  ;;  %v1901_v11 = vadd.f32 %v4531_v59, %v1900_v46 }
 0x208   : > { %v2053_v20 = vmax.f32 %v1549_v13, 0.0 }
 0x209   : > { %v2231_v22 = vpack.c.bf16 %v2055_v44, %v2054_v1  ;;  %3290 = vmatpush3.bf16.msra.mxu1 %v4465_v36  ;;  %v2143_v1 = vmax.f32 %v1909_v3, 0.0 }
 0x20a   : > { %v2230_v27 = vpack.c.bf16 %v2053_v20, %v2052_v19  ;;  %v3515_v32 = vpop.f32.mrb[96].mxu0 }
 0x20b   : > { %v1570_v7 = vadd.f32 %v4531_v59, %v3515_v32  ;;  %v1561_v35 = vpop.f32.mrb[97].mxu0  ;;  %v4569_v20 = vpack.c.bf16 %v2143_v1, %v2142_v40 }
 0x20c   : > { %v1562_v42 = vadd.f32 %v4531_v59, %v1561_v35  ;;  %v3516_v43 = vpop.f32.mrb[98].mxu0  ;;  %3291 = vmatprep.subr.bf16.mxu1 %v2230_v27 }
 0x20d   : > { %v1573_v36 = vadd.f32 %v4531_v59, %v3516_v43  ;;  %v1564_v30 = vpop.f32.mrb[99].mxu0  ;;  %3292 = vmatpush3.bf16.msra.mxu1 %v4483_v39  ;;  %v2058_v51 = vmax.f32 %v1570_v7, 0.0 }
 0x20e   : > { %v1565_v49 = vadd.f32 %v4531_v59, %v1564_v30  ;;  %3293 = vmatprep.subr.bf16.mxu1 %v2231_v22  ;;  %v2056_v29 = vmax.f32 %v1562_v42, 0.0  ;;  %v3603_v22 = vpop.f32.mrb[36].mxu1  ;;  %v3840_v42 = vld [vmem:[#allocation5 + $0x1c] ss:$52 sps:$4 sm:$0xff]  }
 0x20f   : > { %v2059_v52 = vmax.f32 %v1573_v36, 0.0  ;;  %v1922_v26 = vadd.f32 %v4531_v59, %v3603_v22  ;;  %v1913_v27 = vpop.f32.mrb[37].mxu1 }
 0x210   : > { %v2057_v54 = vmax.f32 %v1565_v49, 0.0  ;;  %v1914_v7 = vadd.f32 %v4531_v59, %v1913_v27  ;;  %v3604_v35 = vpop.f32.mrb[38].mxu1 }
 0x211   : > { %v4559_v39 = vpack.c.bf16 %v2059_v52, %v2058_v51  ;;  %3294 = vmatpush3.bf16.msra.mxu1 %v4481_v5  ;;  %v2141_v5 = vmax.f32 %v1901_v11, 0.0  ;;  %v2146_v43 = vmax.f32 %v1922_v26, 0.0  ;;  %v1925_v45 = vadd.f32 %v4531_v59, %v3604_v35  ;;  %v1916_v36 = vpop.f32.mrb[39].mxu1 }
 0x212   : > { %v4563_v4 = vpack.c.bf16 %v2057_v54, %v2056_v29  ;;  %v3519_v24 = vpop.f32.mrb[100].mxu0  ;;  %v2144_v50 = vmax.f32 %v1914_v7, 0.0  ;;  %v1917_v51 = vadd.f32 %v4531_v59, %v1916_v36  ;;  %v3607_v46 = vpop.f32.mrb[40].mxu1 }
 0x213   : > { %v1586_v13 = vadd.f32 %v4531_v59, %v3519_v24  ;;  %v1577_v17 = vpop.f32.mrb[101].mxu0  ;;  %v4572_v21 = vpack.c.bf16 %v2141_v5, %v2140_v6  ;;  %v2147_v53 = vmax.f32 %v1925_v45, 0.0  ;;  %v1938_v11 = vadd.f32 %v4531_v59, %v3607_v46 }
 0x214   : > { %v1578_v44 = vadd.f32 %v4531_v59, %v1577_v17  ;;  %v3520_v56 = vpop.f32.mrb[102].mxu0  ;;  %2550 = vmatmul.mubr.bf16.vlgmr.msra.gmra.mrb[64].mxu1 %v3832_v57  ;;  %v2145_v57 = vmax.f32 %v1917_v51, 0.0 }
 0x215   : > { %v1589_v18 = vadd.f32 %v4531_v59, %v3520_v56  ;;  %v1580_v19 = vpop.f32.mrb[103].mxu0  ;;  %2557 = vmatprep.mubr.bf16.mxu1 %v3835_v61  ;;  %v2062_v38 = vmax.f32 %v1586_v13, 0.0  ;;  %v4585_v61 = vpack.c.bf16 %v2147_v53, %v2146_v43  ;;  %v1929_v13 = vpop.f32.mrb[41].mxu1 }
 0x216   : > { %v1581_v63 = vadd.f32 %v4531_v59, %v1580_v19  ;;  %v2060_v32 = vmax.f32 %v1578_v44, 0.0  ;;  %v4588_v3 = vpack.c.bf16 %v2145_v57, %v2144_v50  ;;  %v1930_v44 = vadd.f32 %v4531_v59, %v1929_v13  ;;  %v3608_v56 = vpop.f32.mrb[42].mxu1 }
 0x217   : > { %v2063_v55 = vmax.f32 %v1589_v18, 0.0  ;;  %v2150_v18 = vmax.f32 %v1938_v11, 0.0  ;;  %v1941_v19 = vadd.f32 %v4531_v59, %v3608_v56 }
 0x218   : > { %v2061_v15 = vmax.f32 %v1581_v63, 0.0  ;;  %v1932_v63 = vpop.f32.mrb[43].mxu1 }
 0x219   : > { %v4576_v37 = vpack.c.bf16 %v2063_v55, %v2062_v38  ;;  %v2148_v55 = vmax.f32 %v1930_v44, 0.0  ;;  %v1933_v26 = vadd.f32 %v4531_v59, %v1932_v63  ;;  %v3611_v50 = vpop.f32.mrb[44].mxu1 }
 0x21a   : > { %v4579_v30 = vpack.c.bf16 %v2061_v15, %v2060_v32  ;;  %v3523_v49 = vpop.f32.mrb[104].mxu0  ;;  %v2151_v15 = vmax.f32 %v1941_v19, 0.0  ;;  %v1945_v53 = vpop.f32.mrb[45].mxu1 }
 0x21b   : > { %v1602_v52 = vadd.f32 %v4531_v59, %v3523_v49  ;;  %v1593_v10 = vpop.f32.mrb[105].mxu0  ;;  %v2149_v35 = vmax.f32 %v1933_v26, 0.0  ;;  %v1946_v57 = vadd.f32 %v4531_v59, %v1945_v53 }
 0x21c   : > { %v1594_v29 = vadd.f32 %v4531_v59, %v1593_v10  ;;  %v3524_v54 = vpop.f32.mrb[106].mxu0  ;;  %2558 = vmatmul.mubr.bf16.gmra.mrb[68].mxu1 %v3837_v8  ;;  %v4601_v45 = vpack.c.bf16 %v2151_v15, %v2150_v18  ;;  %v1954_v10 = vadd.f32 %v4531_v59, %v3611_v50 }
 0x21d   : > { %v1605_v58 = vadd.f32 %v4531_v59, %v3524_v54  ;;  %v1596_v60 = vpop.f32.mrb[107].mxu0  ;;  %2598 = vmatprep.mubr.bf16.mxu1 %v3840_v42  ;;  %v2066_v24 = vmax.f32 %v1602_v52, 0.0  ;;  %v4604_v49 = vpack.c.bf16 %v2149_v35, %v2148_v55  ;;  %v2152_v13 = vmax.f32 %v1946_v57, 0.0 }
 0x21e   : > { %v1597_v40 = vadd.f32 %v4531_v59, %v1596_v60  ;;  %v2064_v17 = vmax.f32 %v1594_v29, 0.0 }
 0x21f   : > { %v2067_v6 = vmax.f32 %v1605_v58, 0.0  ;;  %v3612_v58 = vpop.f32.mrb[46].mxu1 }
 0x220   : > { %v2065_v1 = vmax.f32 %v1597_v40, 0.0  ;;  %v2154_v40 = vmax.f32 %v1954_v10, 0.0  ;;  %v1957_v46 = vadd.f32 %v4531_v59, %v3612_v58 }
 0x221   : > { %v4592_v5 = vpack.c.bf16 %v2067_v6, %v2066_v24  ;;  %v1948_v24 = vpop.f32.mrb[47].mxu1 }
 0x222   : > { %v4595_v22 = vpack.c.bf16 %v2065_v1, %v2064_v17  ;;  %v3527_v38 = vpop.f32.mrb[108].mxu0  ;;  %v1949_v17 = vadd.f32 %v4531_v59, %v1948_v24  ;;  %v2155_v56 = vmax.f32 %v1957_v46, 0.0 }
 0x223   : > { %v1618_v27 = vadd.f32 %v4531_v59, %v3527_v38  ;;  %v1609_v32 = vpop.f32.mrb[109].mxu0 }
 0x224   : > { %v1610_v8 = vadd.f32 %v4531_v59, %v1609_v32  ;;  %v3528_v7 = vpop.f32.mrb[110].mxu0  ;;  %v2153_v63 = vmax.f32 %v1949_v17, 0.0  ;;  %v4617_v26 = vpack.c.bf16 %v2155_v56, %v2154_v40 }
 0x225   : > { %v1621_v42 = vadd.f32 %v4531_v59, %v3528_v7  ;;  %v1612_v43 = vpop.f32.mrb[111].mxu0  ;;  %v2070_v51 = vmax.f32 %v1618_v27, 0.0 }
 0x226   : > { %v1613_v36 = vadd.f32 %v4531_v59, %v1612_v43  ;;  %v2068_v29 = vmax.f32 %v1610_v8, 0.0  ;;  %v4620_v32 = vpack.c.bf16 %v2153_v63, %v2152_v13 }
 0x227   : > { %v2071_v52 = vmax.f32 %v1621_v42, 0.0 }
 0x228   : > { %v2069_v54 = vmax.f32 %v1613_v36, 0.0 }
 0x229   : > { %v4608_v60 = vpack.c.bf16 %v2071_v52, %v2070_v51 }
 0x22a   : > { %v4611_v6 = vpack.c.bf16 %v2069_v54, %v2068_v29  ;;  %v3531_v11 = vpop.f32.mrb[112].mxu0 }
 0x22b   : > { %v1634_v1 = vadd.f32 %v4531_v59, %v3531_v11  ;;  %v1625_v44 = vpop.f32.mrb[113].mxu0 }
 0x22c   : > { %v1626_v18 = vadd.f32 %v4531_v59, %v1625_v44  ;;  %v3532_v19 = vpop.f32.mrb[114].mxu0 }
 0x22d   : > { %v1637_v38 = vadd.f32 %v4531_v59, %v3532_v19  ;;  %v1628_v55 = vpop.f32.mrb[115].mxu0  ;;  %v2074_v15 = vmax.f32 %v1634_v1, 0.0 }
 0x22e   : > { %v1629_v27 = vadd.f32 %v4531_v59, %v1628_v55  ;;  %v2072_v7 = vmax.f32 %v1626_v18, 0.0 }
 0x22f   : > { %v2075_v8 = vmax.f32 %v1637_v38, 0.0 }
 0x230   : > { %v2073_v35 = vmax.f32 %v1629_v27, 0.0 }
 0x231   : > { %v2241_v42 = vpack.c.bf16 %v2075_v8, %v2074_v15 }
 0x232   : > { %v2240_v43 = vpack.c.bf16 %v2073_v35, %v2072_v7  ;;  %v3535_v36 = vpop.f32.mrb[116].mxu0 }
 0x233   : > { %v1650_v50 = vadd.f32 %v4531_v59, %v3535_v36  ;;  %v1641_v51 = vpop.f32.mrb[117].mxu0 }
 0x234   : > { %v1642_v52 = vadd.f32 %v4531_v59, %v1641_v51  ;;  %v3536_v10 = vpop.f32.mrb[118].mxu0  ;;  %3307 = vmatprep.subr.bf16.mxu1 %v2240_v43 }
 0x235   : > { %v1653_v53 = vadd.f32 %v4531_v59, %v3536_v10  ;;  %v1644_v29 = vpop.f32.mrb[119].mxu0  ;;  %3308 = vmatpush3.bf16.msra.mxu1 %v4563_v4  ;;  %v2078_v57 = vmax.f32 %v1650_v50, 0.0 }
 0x236   : > { %v1645_v54 = vadd.f32 %v4531_v59, %v1644_v29  ;;  %3309 = vmatprep.subr.bf16.mxu1 %v2241_v42  ;;  %v2076_v40 = vmax.f32 %v1642_v52, 0.0 }
 0x237   : > { %v2079_v58 = vmax.f32 %v1653_v53, 0.0 }
 0x238   : > { %v2077_v46 = vmax.f32 %v1645_v54, 0.0 }
 0x239   : > { %v2243_v24 = vpack.c.bf16 %v2079_v58, %v2078_v57  ;;  %3310 = vmatpush3.bf16.msra.mxu1 %v4559_v39 }
 0x23a   : > { %v2242_v11 = vpack.c.bf16 %v2077_v46, %v2076_v40  ;;  %v3539_v13 = vpop.f32.mrb[120].mxu0 }
 0x23b   : > { %v1666_v17 = vadd.f32 %v4531_v59, %v3539_v13  ;;  %v1657_v1 = vpop.f32.mrb[121].mxu0 }
 0x23c   : > { %v1658_v44 = vadd.f32 %v4531_v59, %v1657_v1  ;;  %v3540_v56 = vpop.f32.mrb[122].mxu0  ;;  %3311 = vmatprep.subr.bf16.mxu1 %v2242_v11 }
 0x23d   : > { %v1669_v4 = vadd.f32 %v4531_v59, %v3540_v56  ;;  %v1660_v18 = vpop.f32.mrb[123].mxu0  ;;  %3312 = vmatpush3.bf16.msra.mxu1 %v4579_v30  ;;  %v2082_v63 = vmax.f32 %v1666_v17, 0.0 }
 0x23e   : > { %v1661_v19 = vadd.f32 %v4531_v59, %v1660_v18  ;;  %3313 = vmatprep.subr.bf16.mxu1 %v2243_v24  ;;  %v2080_v39 = vmax.f32 %v1658_v44, 0.0  ;;  %v3838_v44 = vld [vmem:[#allocation5 + $0x18] ss:$52 sps:$4 sm:$0xff]  }
 0x23f   : > { %v2083_v38 = vmax.f32 %v1669_v4, 0.0  ;;  %v3841_v4 = vld [vmem:[#allocation5 + $0x84] ss:$52 sps:$4 sm:$0xff]  }
 0x240   : > { %v2081_v55 = vmax.f32 %v1661_v19, 0.0 }
 0x241   : > { %v2245_v27 = vpack.c.bf16 %v2083_v38, %v2082_v63  ;;  %3314 = vmatpush3.bf16.msra.mxu1 %v4576_v37 }
 0x242   : > { %v2244_v15 = vpack.c.bf16 %v2081_v55, %v2080_v39  ;;  %v3543_v8 = vpop.f32.mrb[124].mxu0 }
 0x243   : > { %v1682_v7 = vadd.f32 %v4531_v59, %v3543_v8  ;;  %v1673_v35 = vpop.f32.mrb[125].mxu0 }
 0x244   : > { %v1674_v42 = vadd.f32 %v4531_v59, %v1673_v35  ;;  %v3544_v43 = vpop.f32.mrb[126].mxu0  ;;  %3315 = vmatprep.subr.bf16.mxu1 %v2244_v15 }
 0x245   : > { %v1685_v30 = vadd.f32 %v4531_v59, %v3544_v43  ;;  %v1676_v36 = vpop.f32.mrb[127].mxu0  ;;  %3316 = vmatpush3.bf16.msra.mxu1 %v4595_v22  ;;  %v2086_v51 = vmax.f32 %v1682_v7, 0.0 }
 0x246   : > { %v1677_v50 = vadd.f32 %v4531_v59, %v1676_v36  ;;  %3317 = vmatprep.subr.bf16.mxu1 %v2245_v27  ;;  %v2084_v37 = vmax.f32 %v1674_v42, 0.0  ;;  %v3843_v42 = vld [vmem:[#allocation5 + $0x80] ss:$52 sps:$4 sm:$0xff]  }
 0x247   : > { %v2087_v52 = vmax.f32 %v1685_v30, 0.0  ;;  %v3846_v30 = vld [vmem:[#allocation5 + $0x24] ss:$52 sps:$4 sm:$0xff]  }
 0x248   : > { %v2085_v10 = vmax.f32 %v1677_v50, 0.0 }
 0x249   : > { %v2247_v53 = vpack.c.bf16 %v2087_v52, %v2086_v51  ;;  %3318 = vmatpush3.bf16.msra.mxu1 %v4592_v5 }
 0x24a   : > { %v2246_v29 = vpack.c.bf16 %v2085_v10, %v2084_v37  ;;  %v3547_v54 = vpop.f32.mrb[128].mxu0 }
 0x24b   : > { %v1698_v57 = vadd.f32 %v4531_v59, %v3547_v54  ;;  %v1689_v58 = vpop.f32.mrb[129].mxu0 }
 0x24c   : > { %v1690_v40 = vadd.f32 %v4531_v59, %v1689_v58  ;;  %v3548_v46 = vpop.f32.mrb[130].mxu0  ;;  %3319 = vmatprep.subr.bf16.mxu1 %v2246_v29 }
 0x24d   : > { %v1701_v22 = vadd.f32 %v4531_v59, %v3548_v46  ;;  %v1692_v24 = vpop.f32.mrb[131].mxu0  ;;  %3320 = vmatpush3.bf16.msra.mxu1 %v4611_v6  ;;  %v2090_v13 = vmax.f32 %v1698_v57, 0.0 }
 0x24e   : > { %v1693_v11 = vadd.f32 %v4531_v59, %v1692_v24  ;;  %3321 = vmatprep.subr.bf16.mxu1 %v2247_v53  ;;  %v2088_v5 = vmax.f32 %v1690_v40, 0.0 }
 0x24f   : > { %v2091_v17 = vmax.f32 %v1701_v22, 0.0 }
 0x250   : > { %v2089_v1 = vmax.f32 %v1693_v11, 0.0 }
 0x251   : > { %v4645_v56 = vpack.c.bf16 %v2091_v17, %v2090_v13  ;;  %3322 = vmatpush3.bf16.msra.mxu1 %v4608_v60 }
 0x252   : > { %v4648_v18 = vpack.c.bf16 %v2089_v1, %v2088_v5  ;;  %v3551_v19 = vpop.f32.mrb[132].mxu0 }
 0x253   : > { %v1714_v63 = vadd.f32 %v4531_v59, %v3551_v19  ;;  %v1705_v38 = vpop.f32.mrb[133].mxu0 }
 0x254   : > { %v1706_v6 = vadd.f32 %v4531_v59, %v1705_v38  ;;  %v3552_v39 = vpop.f32.mrb[134].mxu0  ;;  %2599 = vmatmul.mubr.bf16.vlgmr.msra.gmra.mrb[72].mxu1 %v3838_v44 }
 0x255   : > { %v1717_v55 = vadd.f32 %v4531_v59, %v3552_v39  ;;  %v1708_v27 = vpop.f32.mrb[135].mxu0  ;;  %2606 = vmatprep.mubr.bf16.mxu1 %v3841_v4  ;;  %v2094_v8 = vmax.f32 %v1714_v63, 0.0 }
 0x256   : > { %v1709_v15 = vadd.f32 %v4531_v59, %v1708_v27  ;;  %v2092_v60 = vmax.f32 %v1706_v6, 0.0 }
 0x257   : > { %v2095_v7 = vmax.f32 %v1717_v55, 0.0 }
 0x258   : > { %v2093_v35 = vmax.f32 %v1709_v15, 0.0 }
 0x259   : > { %v4654_v43 = vpack.c.bf16 %v2095_v7, %v2094_v8 }
 0x25a   : > { %v2250_v36 = vpack.c.bf16 %v2093_v35, %v2092_v60  ;;  %v3555_v50 = vpop.f32.mrb[136].mxu0 }
 0x25b   : > { %v1730_v51 = vadd.f32 %v4531_v59, %v3555_v50  ;;  %v1721_v52 = vpop.f32.mrb[137].mxu0 }
 0x25c   : > { %v1722_v37 = vadd.f32 %v4531_v59, %v1721_v52  ;;  %v3556_v10 = vpop.f32.mrb[138].mxu0  ;;  %2607 = vmatmul.mubr.bf16.gmra.mrb[76].mxu1 %v3843_v42 }
 0x25d   : > { %v1733_v53 = vadd.f32 %v4531_v59, %v3556_v10  ;;  %v1724_v29 = vpop.f32.mrb[139].mxu0  ;;  %2647 = vmatprep.mubr.bf16.mxu1 %v3846_v30  ;;  %v2098_v57 = vmax.f32 %v1730_v51, 0.0 }
 0x25e   : > { %v1725_v54 = vadd.f32 %v4531_v59, %v1724_v29  ;;  %v2096_v40 = vmax.f32 %v1722_v37, 0.0 }
 0x25f   : > { %v2099_v58 = vmax.f32 %v1733_v53, 0.0 }
 0x260   : > { %v2097_v46 = vmax.f32 %v1725_v54, 0.0 }
 0x261   : > { %v2253_v22 = vpack.c.bf16 %v2099_v58, %v2098_v57 }
 0x262   : > { %v2252_v24 = vpack.c.bf16 %v2097_v46, %v2096_v40  ;;  %v3559_v11 = vpop.f32.mrb[140].mxu0 }
 0x263   : > { %v1746_v13 = vadd.f32 %v4531_v59, %v3559_v11  ;;  %v1737_v17 = vpop.f32.mrb[141].mxu0 }
 0x264   : > { %v1738_v5 = vadd.f32 %v4531_v59, %v1737_v17  ;;  %v3560_v1 = vpop.f32.mrb[142].mxu0 }
 0x265   : > { %v1749_v44 = vadd.f32 %v4531_v59, %v3560_v1  ;;  %v1740_v4 = vpop.f32.mrb[143].mxu0  ;;  %v2102_v63 = vmax.f32 %v1746_v13, 0.0 }
 0x266   : > { %v1741_v19 = vadd.f32 %v4531_v59, %v1740_v4  ;;  %v2100_v39 = vmax.f32 %v1738_v5, 0.0 }
 0x267   : > { %v2103_v38 = vmax.f32 %v1749_v44, 0.0  ;;  %v3239_v6 = vpop.f32.mrb[48].mxu1 }
 0x268   : > { %v2101_v55 = vmax.f32 %v1741_v19, 0.0  ;;  %v3240_v27 = vpop.f32.mrb[49].mxu1 }
 0x269   : > { %v2255_v15 = vpack.c.bf16 %v2103_v38, %v2102_v63  ;;  %v4664_v8 = vadd.f32 %v3240_v27, %v3239_v6  ;;  %v3242_v7 = vpop.f32.mrb[50].mxu1 }
 0x26a   : > { %v2254_v60 = vpack.c.bf16 %v2101_v55, %v2100_v39  ;;  %v3563_v35 = vpop.f32.mrb[144].mxu0  ;;  %v3243_v42 = vpop.f32.mrb[51].mxu1 }
 0x26b   : > { %v1762_v30 = vadd.f32 %v4531_v59, %v3563_v35  ;;  %v1753_v50 = vpop.f32.mrb[145].mxu0  ;;  %v4667_v51 = vadd.f32 %v3243_v42, %v3242_v7  ;;  %v3859_v35 = vld [vmem:[%s4773_s4 + $0x8] sm:$0xff]   ;;  %v3860_v42 = vld [vmem:[%s4773_s4 + $0x10] sm:$0xff]  }
 0x26c   : > { %v1754_v52 = vadd.f32 %v4531_v59, %v1753_v50  ;;  %v3564_v37 = vpop.f32.mrb[146].mxu0 }
 0x26d   : > { %v1765_v10 = vadd.f32 %v4531_v59, %v3564_v37  ;;  %v1756_v53 = vpop.f32.mrb[147].mxu0  ;;  %v2106_v54 = vmax.f32 %v1762_v30, 0.0  ;;  %v3861_v30 = vld [vmem:[%s4773_s4 + $0x18] sm:$0xff]  }
 0x26e   : > { %v1757_v29 = vadd.f32 %v4531_v59, %v1756_v53  ;;  %v2104_v40 = vmax.f32 %v1754_v52, 0.0  ;;  %v3844_v59 = vld [vmem:[#allocation5 + $0x20] ss:$52 sps:$4 sm:$0xff]  }
 0x26f   : > { %v2107_v57 = vmax.f32 %v1765_v10, 0.0  ;;  %v3245_v58 = vpop.f32.mrb[52].mxu1 }
 0x270   : > { %v2105_v46 = vmax.f32 %v1757_v29, 0.0  ;;  %v3246_v11 = vpop.f32.mrb[53].mxu1 }
 0x271   : > { %v2257_v13 = vpack.c.bf16 %v2107_v57, %v2106_v54  ;;  %v3247_v17 = vadd.f32 %v3246_v11, %v3245_v58  ;;  %v3248_v5 = vpop.f32.mrb[54].mxu1 }
 0x272   : > { %v2256_v1 = vpack.c.bf16 %v2105_v46, %v2104_v40  ;;  %v3249_v44 = vpop.f32.mrb[55].mxu1 }
 0x273   : > { %v3250_v4 = vadd.f32 %v3249_v44, %v3248_v5 }
 0x274   : > { %3335 = vmatprep.subr.bf16.mxu1 %v2256_v1 }
 0x275   : > { %3336 = vmatpush3.bf16.msra.mxu1 %v4648_v18  ;;  %v3856_v18 = vld [vmem:[#allocation5 + $0x30] ss:$52 sps:$4 sm:$0xff]  }
 0x276   : > { %3337 = vmatprep.subr.bf16.mxu1 %v2257_v13 }
 0x279   : > { %3338 = vmatpush3.bf16.msra.mxu1 %v4645_v56  ;;  %v3847_v56 = vld [vmem:[#allocation5 + $0x8c] ss:$52 sps:$4 sm:$0xff]  }
 0x27a   : > { %3339 = vmatprep.subr.bf16.mxu1 %v4447_v2  ;;  %v3852_v2 = vld [vmem:[#allocation5 + $0x2c] ss:$52 sps:$4 sm:$0xff]  }
 0x27d   : > { %3340 = vmatpush3.bf16.msra.mxu1 %v2250_v36 }
 0x27e   : > { %3341 = vmatprep.subr.bf16.mxu1 %v4445_v62  ;;  %v3849_v62 = vld [vmem:[#allocation5 + $0x88] ss:$52 sps:$4 sm:$0xff]  }
 0x281   : > { %3342 = vmatpush3.bf16.msra.mxu1 %v4654_v43 }
 0x282   : > { %3343 = vmatprep.subr.bf16.mxu1 %v4463_v33 }
 0x285   : > { %3344 = vmatpush3.bf16.msra.mxu1 %v2252_v24 }
 0x286   : > { %3345 = vmatprep.subr.bf16.mxu1 %v4461_v31 }
 0x289   : > { %3346 = vmatpush3.bf16.msra.mxu1 %v2253_v22 }
 0x28a   : > { %3347 = vmatprep.subr.bf16.mxu1 %v4479_v0 }
 0x28d   : > { %3348 = vmatpush3.bf16.msra.mxu1 %v2254_v60  ;;  %v3858_v60 = vld [vmem:[%s4773_s4] sm:$0xff]  }
 0x28e   : > { %3349 = vmatprep.subr.bf16.mxu1 %v4477_v23 }
 0x291   : > { %3350 = vmatpush3.bf16.msra.mxu1 %v2255_v15 }
 0x292   : > { %3363 = vmatprep.subr.bf16.mxu1 %v4555_v25 }
 0x294   : > { %2648 = vmatmul.mubr.bf16.vlgmr.msra.gmra.mrb[80].mxu1 %v3844_v59 }
 0x295   : > { %3364 = vmatpush3.bf16.msra.mxu1 %v4495_v34  ;;  %2655 = vmatprep.mubr.bf16.mxu1 %v3847_v56 }
 0x296   : > { %3365 = vmatprep.subr.bf16.mxu1 %v4552_v47  ;;  %v3850_v47 = vld [vmem:[#allocation5 + $0x28] ss:$52 sps:$4 sm:$0xff]  }
 0x299   : > { %3366 = vmatpush3.bf16.msra.mxu1 %v4493_v28 }
 0x29a   : > { %3367 = vmatprep.subr.bf16.mxu1 %v4572_v21 }
 0x29c   : > { %2656 = vmatmul.mubr.bf16.gmra.mrb[84].mxu1 %v3849_v62 }
 0x29d   : > { %3368 = vmatpush3.bf16.msra.mxu1 %v4508_v9  ;;  %2696 = vmatprep.mubr.bf16.mxu1 %v3852_v2 }
 0x29e   : > { %3369 = vmatprep.subr.bf16.mxu1 %v4569_v20 }
 0x2a1   : > { %3370 = vmatpush3.bf16.msra.mxu1 %v4506_v48 }
 0x2a2   : > { %3371 = vmatprep.subr.bf16.mxu1 %v4588_v3 }
 0x2a5   : > { %3372 = vmatpush3.bf16.msra.mxu1 %v4522_v41 }
 0x2a6   : > { %3373 = vmatprep.subr.bf16.mxu1 %v4585_v61 }
 0x2a7   : > { %v3267_v31 = vpop.f32.mrb[56].mxu1 }
 0x2a8   : > { %v3268_v33 = vpop.f32.mrb[57].mxu1 }
 0x2a9   : > { %3374 = vmatpush3.bf16.msra.mxu1 %v4519_v14  ;;  %v3269_v23 = vadd.f32 %v3268_v33, %v3267_v31  ;;  %v3270_v0 = vpop.f32.mrb[58].mxu1  ;;  %v3853_v14 = vld [vmem:[#allocation5 + $0x94] ss:$52 sps:$4 sm:$0xff]  }
 0x2aa   : > { %3375 = vmatprep.subr.bf16.mxu1 %v4604_v49  ;;  %v3271_v28 = vpop.f32.mrb[59].mxu1 }
 0x2ab   : > { %v2503_v34 = vadd.f32 %v3269_v23, %v4664_v8  ;;  %v3272_v9 = vadd.f32 %v3271_v28, %v3270_v0 }
 0x2ad   : > { %3376 = vmatpush3.bf16.msra.mxu1 %v4541_v16  ;;  %v2506_v48 = vadd.f32 %v3272_v9, %v4667_v51 }
 0x2ae   : > { %3377 = vmatprep.subr.bf16.mxu1 %v4601_v45  ;;  %v3855_v45 = vld [vmem:[#allocation5 + $0x90] ss:$52 sps:$4 sm:$0xff]  }
 0x2af   : > { %v3273_v41 = vpop.f32.mrb[60].mxu1 }
 0x2b0   : > { %v3274_v25 = vpop.f32.mrb[61].mxu1 }
 0x2b1   : > { %3378 = vmatpush3.bf16.msra.mxu1 %v4538_v12  ;;  %v3275_v20 = vadd.f32 %v3274_v25, %v3273_v41  ;;  %v3276_v21 = vpop.f32.mrb[62].mxu1  ;;  %v3857_v12 = vld [vmem:[#allocation5 + $0x98] ss:$52 sps:$4 sm:$0xff]  }
 0x2b2   : > { %3613 = vmatprep.subr.bf16.mxu1 %v4620_v32  ;;  %v3277_v61 = vpop.f32.mrb[63].mxu1 }
 0x2b3   : > { %v2511_v3 = vadd.f32 %v3275_v20, %v3247_v17  ;;  %v3278_v49 = vadd.f32 %v3277_v61, %v3276_v21 }
 0x2b4   : > { %2697 = vmatmul.mubr.bf16.vlgmr.msra.gmra.mrb[88].mxu1 %v3850_v47 }
 0x2b5   : > { %3614 = vmatpush3.bf16.msra.mxu1 %v4620_v32  ;;  %2704 = vmatprep.mubr.bf16.mxu1 %v3853_v14  ;;  %v2514_v16 = vadd.f32 %v3278_v49, %v3250_v4 }
 0x2b6   : > { %3615 = vmatprep.subr.bf16.mxu1 %v4617_v26 }
 0x2b9   : > { %3616 = vmatpush3.bf16.msra.mxu1 %v4617_v26 }
 0x2ba   : > { %3621 = vmatprep.subr.bf16.mxu1 %v3858_v60 }
 0x2bc   : > { %2705 = vmatmul.mubr.bf16.gmra.mrb[92].mxu1 %v3855_v45 }
 0x2bd   : > { %3617 = vmatprep.mubr.msk.bf16.mxu1 %vm2412_vm0, %v3856_v18 }
 0x2c4   : > { %3618 = vmatmul.mubr.msk.bf16.vlgmr.msra.gmra.mrb[96].mxu1 %vm2412_vm0, %v3857_v12 }
 0x2c5   : > { %3622 = vmatpush3.bf16.msra.mxu1 %v3858_v60 }
 0x2c6   : > { %3623 = vmatprep.subr.bf16.mxu1 %v3859_v35 }
 0x2c9   : > { %3624 = vmatpush3.bf16.msra.mxu1 %v3859_v35 }
 0x2ca   : > { %3625 = vmatprep.subr.bf16.mxu1 %v3860_v42 }
 0x2cd   : > { %3626 = vmatpush3.bf16.msra.mxu1 %v3860_v42 }
 0x2ce   : > { %3627 = vmatprep.subr.bf16.mxu1 %v3861_v30 }
 0x2d1   : > { %3628 = vmatpush3.bf16.msra.mxu1 %v3861_v30 }
 0x2e7   : > { %v3295_v43 = vpop.f32.mrb[64].mxu1 }
 0x2e8   : > { %v3296_v36 = vpop.f32.mrb[65].mxu1 }
 0x2e9   : > { %v3297_v22 = vadd.f32 %v3296_v36, %v3295_v43  ;;  %v3298_v24 = vpop.f32.mrb[66].mxu1 }
 0x2ea   : > { %v3299_v19 = vpop.f32.mrb[67].mxu1 }
 0x2eb   : > { %v2552_v63 = vadd.f32 %v3297_v22, %v2503_v34  ;;  %v3300_v32 = vadd.f32 %v3299_v19, %v3298_v24 }
 0x2ed   : > { %v2555_v38 = vadd.f32 %v3300_v32, %v2506_v48 }
 0x2ef   : > { %v3301_v6 = vpop.f32.mrb[68].mxu1 }
 0x2f0   : > { %v3302_v39 = vpop.f32.mrb[69].mxu1 }
 0x2f1   : > { %v3303_v55 = vadd.f32 %v3302_v39, %v3301_v6  ;;  %v3304_v27 = vpop.f32.mrb[70].mxu1 }
 0x2f2   : > { %v3305_v15 = vpop.f32.mrb[71].mxu1 }
 0x2f3   : > { %v2560_v26 = vadd.f32 %v3303_v55, %v2511_v3  ;;  %v3306_v8 = vadd.f32 %v3305_v15, %v3304_v27 }
 0x2f5   : > { %v2563_v7 = vadd.f32 %v3306_v8, %v2514_v16  ;;  %v3103_v8 = vld [vmem:[%s4774_s5] ss:$0 sm:$0xff] }
 0x327   : > { %v3323_v50 = vpop.f32.mrb[72].mxu1 }
 0x328   : > { %v3324_v51 = vpop.f32.mrb[73].mxu1 }
 0x329   : > { %v3325_v52 = vadd.f32 %v3324_v51, %v3323_v50  ;;  %v3326_v37 = vpop.f32.mrb[74].mxu1 }
 0x32a   : > { %v3327_v10 = vpop.f32.mrb[75].mxu1 }
 0x32b   : > { %v2601_v53 = vadd.f32 %v3325_v52, %v2552_v63  ;;  %v3328_v29 = vadd.f32 %v3327_v10, %v3326_v37 }
 0x32d   : > { %v2604_v54 = vadd.f32 %v3328_v29, %v2555_v38 }
 0x32f   : > { %v3329_v57 = vpop.f32.mrb[76].mxu1 }
 0x330   : > { %v3330_v58 = vpop.f32.mrb[77].mxu1 }
 0x331   : > { %v3331_v40 = vadd.f32 %v3330_v58, %v3329_v57  ;;  %v3332_v46 = vpop.f32.mrb[78].mxu1 }
 0x332   : > { %v3333_v11 = vpop.f32.mrb[79].mxu1 }
 0x333   : > { %v2609_v13 = vadd.f32 %v3331_v40, %v2560_v26  ;;  %v3334_v17 = vadd.f32 %v3333_v11, %v3332_v46 }
 0x335   : > { %v2612_v5 = vadd.f32 %v3334_v17, %v2563_v7 }
 0x367   : > { %v3351_v1 = vpop.f32.mrb[80].mxu1 }
 0x368   : > { %v3352_v44 = vpop.f32.mrb[81].mxu1 }
 0x369   : > { %v3353_v4 = vadd.f32 %v3352_v44, %v3351_v1  ;;  %v3354_v59 = vpop.f32.mrb[82].mxu1 }
 0x36a   : > { %v3355_v56 = vpop.f32.mrb[83].mxu1 }
 0x36b   : > { %v2650_v62 = vadd.f32 %v3353_v4, %v2601_v53  ;;  %v3356_v2 = vadd.f32 %v3355_v56, %v3354_v59 }
 0x36d   : > { %v2653_v31 = vadd.f32 %v3356_v2, %v2604_v54 }
 0x36f   : > { %v3357_v33 = vpop.f32.mrb[84].mxu1 }
 0x370   : > { %v3358_v23 = vpop.f32.mrb[85].mxu1 }
 0x371   : > { %v3359_v0 = vadd.f32 %v3358_v23, %v3357_v33  ;;  %v3360_v28 = vpop.f32.mrb[86].mxu1 }
 0x372   : > { %v3361_v34 = vpop.f32.mrb[87].mxu1 }
 0x373   : > { %v2658_v9 = vadd.f32 %v3359_v0, %v2609_v13  ;;  %v3362_v48 = vadd.f32 %v3361_v34, %v3360_v28 }
 0x375   : > { %v2661_v41 = vadd.f32 %v3362_v48, %v2612_v5 }
 0x387   : > { %v3379_v47 = vpop.f32.mrb[88].mxu1 }
 0x388   : > { %v3380_v25 = vpop.f32.mrb[89].mxu1 }
 0x389   : > { %v3381_v14 = vadd.f32 %v3380_v25, %v3379_v47  ;;  %v3382_v20 = vpop.f32.mrb[90].mxu1 }
 0x38a   : > { %v3383_v21 = vpop.f32.mrb[91].mxu1 }
 0x38b   : > { %v3384_v61 = vadd.f32 %v3383_v21, %v3382_v20  ;;  %v2699_v3 = vadd.f32 %v3381_v14, %v2650_v62 }
 0x38d   : > { %v2702_v49 = vadd.f32 %v3384_v61, %v2653_v31 }
 0x38f   : > { %v3385_v16 = vpop.f32.mrb[92].mxu1 }
 0x390   : > { %v3386_v45 = vpop.f32.mrb[93].mxu1 }
 0x391   : > { %v3387_v18 = vadd.f32 %v3386_v45, %v3385_v16  ;;  %v3388_v12 = vpop.f32.mrb[94].mxu1 }
 0x392   : > { %v3389_v43 = vpop.f32.mrb[95].mxu1 }
 0x393   : > { %v3390_v36 = vadd.f32 %v3389_v43, %v3388_v12  ;;  %v2707_v22 = vadd.f32 %v3387_v18, %v2658_v9 }
 0x395   : > { %v2710_v24 = vadd.f32 %v3390_v36, %v2661_v41 }
 0x397   : > { %v3619_v19 = vpop.f32.mrb[96].mxu1 }
 0x398   : > { %v2756_v63 = vadd.f32 %v3619_v19, %v2707_v22  ;;  %v2747_v32 = vpop.f32.mrb[97].mxu1 }
 0x399   : > { %v2748_v38 = vadd.f32 %v2747_v32, %v2699_v3  ;;  %v3620_v6 = vpop.f32.mrb[98].mxu1 }
 0x39a   : > { %v2759_v39 = vadd.f32 %v3620_v6, %v2710_v24  ;;  %v2750_v55 = vpop.f32.mrb[99].mxu1 }
 0x39b   : > { %v2751_v27 = vadd.f32 %v2750_v55, %v2702_v49 }
 0x39c   : > { %v2763_v15 = vpack.c.bf16 %v2759_v39, %v2756_v63 }
 0x39d   : > { %v2762_v26 = vpack.c.bf16 %v2751_v27, %v2748_v38 }
 0x39f   : > { %3629 = vmatprep.mubr.msk.bf16.mxu1 %vm2803_vm1, %v2762_v26 }
 0x3a0   : > { %3630 = vmatmul.mubr.msk.bf16.vlgmr.msra.gmra.mrb[100].mxu1 %vm2803_vm1, %v2763_v15 }
 0x473   : > { %v3631_v7 = vpop.f32.mrb[100].mxu1 }
 0x474   : > { %v2853_v60 = vadd.f32 %v3631_v7, %v3103_v8  ;;  %v2844_v35 = vpop.f32.mrb[101].mxu1 }
 0x475   : > { %v2845_v42 = vadd.f32 %v3103_v8, %v2844_v35  ;;  %v3632_v30 = vpop.f32.mrb[102].mxu1 }
 0x476   : > { %2861 = vst [vmem:[%s284_s27 + $0x10] sm:$0xff] %v2853_v60  ;;  %v2856_v50 = vadd.f32 %v3632_v30, %v3103_v8  ;;  %v2847_v51 = vpop.f32.mrb[103].mxu1 }
 0x477   : > { %2859 = vst [vmem:[%s284_s27] sm:$0xff] %v2845_v42  ;;  %v2848_v52 = vadd.f32 %v3103_v8, %v2847_v51 }
 0x478   : > { %2862 = vst [vmem:[%s284_s27 + $0x18] sm:$0xff] %v2856_v50 }
 0x479   : > { %2860 = vst [vmem:[%s284_s27 + $0x8] sm:$0xff] %v2848_v52 }
 0x47a   : > { %3934 = shalt.err (!%p3931_p7)
}
 0x47b   : > { %s3935_s29 = scalar_lea.hbm %s4725_s30, 512  ;;  %s3939_s11 = scalar_lea.hbm %s4775_s6, 1024 }
 0x47c   : > { %p3936_p9 = scmp.ne.s32.totalorder %s4725_s30, %s3935_s29  ;;  %p3940_p5 = scmp.lt.u32.totalorder %s4725_s30, %s4775_s6 }
 0x47d   : > { %p3941_p11 = scmp.lt.u32.totalorder %s3939_s11, %s3935_s29  ;;  %p3943_p4 = scmp.lt.u32.totalorder %s3935_s29, %s4725_s30 }
 0x47e   : > { %p3937_p2 = pnand %p3936_p9, %p4128_p12 }
 0x47f   : > { %p3942_p1 = por %p3941_p11, %p3940_p5 }
 0x480   : > { %p3938_p0 = pneg %p3937_p2 }
 0x481   : > { %p3944_p6 = por %p3943_p4, %p3942_p1 }
 0x483   : > { %p3945_p8 = pnand %p3944_p6, %p3938_p0 }
 0x485   : > { %3948 = shalt.err (!%p3945_p8)
}
 0x486   : > { %s4000_s17 = smov 128   ;;  %s4001_s10 = smov 8  }
 0x487   : > { %3657 = dma.vmem_to_hbm [thread:$0]  (%p4128_p12), %s4720_s15, 512, %s4725_s30, %s2864_s25, %s4000_s17, %s4000_s17, %s4001_s10  }
 0x488 PF: > { %s2892_s26 = sand.u32 1, %s3979_s21   ;;  %p4790_p10 = scmp.ne.s32.totalorder %s4780_s28, 0 }
 0x489   : > { %p4791_p13 = scmp.ge.s32.totalorder %s3991_s24, 2  ;;  %s2893_s12 = scalar_lea.sflag [#allocation4], %s2892_s26 }
 0x48b   : > { %p3668_p3 = pnand %p4791_p13, %p4790_p10 }
 0x48d   : > { %3974 = dma.done.wait (!%p3668_p3), %s2893_s12, 512  }
 0x48e   : > { %3976 = vsyncadd (!%p3668_p3), %s2893_s12, 4294966784  ;;  %p20_p7 = scmp.ge.s32.totalorder %s4093_s9, 4   ;;  %s4792_s21 = smov %s3983_s22 }
 0x48f   : > { %s4793_s22 = smov %s3987_s23  ;;  %s4794_s23 = smov %s4124_s13 }
 0x490   : > { %s4795_s24 = smov %s4093_s9  ;;  %22 = sbr.rel (!%p20_p7) target bundleno = 6 (0x6), region = 93 }
 0x497   :  { %2898 = vsyncpa [#allocation3], 1 }
 0x498   :  { %2900 = vsyncpa [#allocation3 + $0x1], 1 }
 0x499   :  { %2901 = vsyncpa [#allocation6], 1 }
 0x49a   :  { %2902 = vsyncpa [#allocation4], 1 }
 0x49b   :  { %2904 = vsyncpa [#allocation4 + $0x1], 1 }

</bundles_post_ra>
